<compile_context>
chip_gen: v5e
topology: v5e:2x2
jax: 0.10.0
libtpu: 0.0.40
codegen_flags: <defaults>
</compile_context>

<pallas_src>
import functools

import jax
import jax.numpy as jnp
import numpy as np
from jax.experimental import pallas as pl
from jax.experimental.pallas import tpu as pltpu


# ----------------------------------------------------------------------------
# small helpers
# ----------------------------------------------------------------------------
def _pad_top(W):
    # zero rows in front of the flattened (H*W, C) activation: >= W+1, 8-aligned
    return ((W + 1 + 7) // 8) * 8


def _pad_total(H, W):
    return _pad_top(W) + H * W + W + 1


def _const_spec(a):
    nd = a.ndim
    return pl.BlockSpec(tuple(a.shape), lambda n: (0,) * nd)


# ----------------------------------------------------------------------------
# in-kernel 3x3 depthwise conv (pad=1) from a zero-padded flat VMEM scratch
#   pad_ref layout (rows of the flattened image, C lanes):
#     [0, pad_top)                zeros
#     [pad_top, pad_top + H*W)    activation rows (h*W + w)
#     [pad_top + H*W, ...)        >= W+1 zero rows
# ----------------------------------------------------------------------------
def _dw3x3_s1(pad_ref, wd, H, W):
    """Stride-1 depthwise taps.  Returns (H*W, C) f32 (bias NOT added)."""
    C = wd.shape[-1]
    M = H * W
    pt = _pad_top(W)

    def tap(kh, kw):
        # input (h+kh-1, w+kw-1) for output flat row h*W + w
        return pad_ref[pl.ds(pt - (W + 1) + kh * W + kw, M), :]

    # column index of every flat row -> edge masks (left / right neighbour valid)
    wcol = jax.lax.broadcasted_iota(jnp.int32, (H, W, C), 1).reshape(M, C)
    lm = (wcol >= 1).astype(jnp.float32)
    rm = (wcol <= W - 2).astype(jnp.float32)

    acc_c = tap(0, 1) * wd[0, 1] + tap(1, 1) * wd[1, 1] + tap(2, 1) * wd[2, 1]
    acc_l = tap(0, 0) * wd[0, 0] + tap(1, 0) * wd[1, 0] + tap(2, 0) * wd[2, 0]
    acc_r = tap(0, 2) * wd[0, 2] + tap(1, 2) * wd[1, 2] + tap(2, 2) * wd[2, 2]
    return acc_c + acc_l * lm + acc_r * rm


def _dw3x3_s2(pad_ref, wd, H, W):
    """Stride-2 depthwise taps, computed directly at output resolution.
    Returns (H//2, W//2, C) f32 (bias NOT added)."""
    C = wd.shape[-1]
    R, Wout = H // 2, W // 2
    Mh = H * Wout
    pt = _pad_top(W)

    def tap(kh, kw):
        # stride-2 sublane read: all input rows, columns 2*wo + kw - 1
        base = pt + (kh - 1) * W + (kw - 1)
        t = pad_ref[pl.ds(base, Mh, stride=2), :]          # (H*Wout, C)
        # keep even input rows h = 2r (input row 2r + kh - 1 is inside `base`)
        return t.reshape(R, 2, Wout, C)[:, 0]               # (R, Wout, C)

    # output column 0 has no left neighbour (input column -1)
    lm = (jax.lax.broadcasted_iota(jnp.int32, (1, Wout, C), 1) >= 1
          ).astype(jnp.float32)

    acc_c = tap(0, 1) * wd[0, 1] + tap(1, 1) * wd[1, 1] + tap(2, 1) * wd[2, 1]
    acc_l = tap(0, 0) * wd[0, 0] + tap(1, 0) * wd[1, 0] + tap(2, 0) * wd[2, 0]
    acc_r = tap(0, 2) * wd[0, 2] + tap(1, 2) * wd[1, 2] + tap(2, 2) * wd[2, 2]
    return acc_c + acc_l * lm + acc_r


def _fill_pad_scratch(pad_ref, act, H, W):
    """Write activation (H*W, C) into the zero-padded flat scratch."""
    C = act.shape[-1]
    M = H * W
    pt = _pad_top(W)
    pad_ref[pl.ds(0, pt), :] = jnp.zeros((pt, C), jnp.float32)
    pad_ref[pl.ds(pt + M, W + 1), :] = jnp.zeros((W + 1, C), jnp.float32)
    pad_ref[pl.ds(pt, M), :] = act


# ----------------------------------------------------------------------------
# fused block kernels (one grid step == one batch sample)
# ----------------------------------------------------------------------------
def _block_s1_kernel(x_ref, w1_ref, b1_ref, wd_ref, bd_ref, w2_ref, b2_ref,
                     o_ref, pad_scr, *, H, W, Cb):
    """stride-1 block:  x -> split -> [x1 | pw1+BN+ReLU -> dw+BN -> pw2+BN+ReLU]."""
    M = H * W
    x = x_ref[...].astype(jnp.float32)                      # (M, 2*Cb)

    # branch2: 1x1 conv + BN + ReLU (MXU)
    y = jnp.maximum(
        jnp.dot(x[:, Cb:], w1_ref[...], preferred_element_type=jnp.float32)
        + b1_ref[...], 0.0)                                 # (M, Cb)

    # 3x3 depthwise + BN (VPU), taps via zero-padded VMEM scratch
    _fill_pad_scratch(pad_scr, y, H, W)
    z = _dw3x3_s1(pad_scr, wd_ref[...], H, W) + bd_ref[...]  # (M, Cb)

    # 1x1 conv + BN + ReLU (MXU)
    a2 = jnp.maximum(
        jnp.dot(z, w2_ref[...], preferred_element_type=jnp.float32)
        + b2_ref[...], 0.0)                                 # (M, Cb)

    # lane-concatenated [x1 | branch2]; channel_shuffle applied by the caller
    o_ref[:, :Cb] = x[:, :Cb].astype(o_ref.dtype)
    o_ref[:, Cb:] = a2.astype(o_ref.dtype)


def _block_s2_kernel(x_ref, wd1_ref, bd1_ref, wp1_ref, bp1_ref,
                     w21_ref, b21_ref, wd2_ref, bd2_ref, w22_ref, b22_ref,
                     o_ref, pad1_scr, pad2_scr, *, H, W, Cin, Cb):
    """stride-2 block: both branches fused, x read once, output lane-concat."""
    R, Wout = H // 2, W // 2
    Mo = R * Wout
    x = x_ref[...].astype(jnp.float32)                      # (H*W, Cin)

    # ---- branch1: 3x3 dw(stride 2) + BN -> 1x1 conv + BN + ReLU ----
    _fill_pad_scratch(pad1_scr, x, H, W)
    z1 = _dw3x3_s2(pad1_scr, wd1_ref[...], H, W) + bd1_ref[...]   # (R, Wout, Cin)
    a1 = jnp.maximum(
        jnp.dot(z1.reshape(Mo, Cin), wp1_ref[...],
                preferred_element_type=jnp.float32) + bp1_ref[...], 0.0)

    # ---- branch2: 1x1 conv + BN + ReLU -> dw(stride 2) + BN -> 1x1 + BN + ReLU
    y = jnp.maximum(
        jnp.dot(x, w21_ref[...], preferred_element_type=jnp.float32)
        + b21_ref[...], 0.0)                                 # (H*W, Cb)
    _fill_pad_scratch(pad2_scr, y, H, W)
    z2 = _dw3x3_s2(pad2_scr, wd2_ref[...], H, W) + bd2_ref[...]   # (R, Wout, Cb)
    a2 = jnp.maximum(
        jnp.dot(z2.reshape(Mo, Cb), w22_ref[...],
                preferred_element_type=jnp.float32) + b22_ref[...], 0.0)

    o_ref[:, :Cb] = a1.astype(o_ref.dtype)
    o_ref[:, Cb:] = a2.astype(o_ref.dtype)


# ----------------------------------------------------------------------------
# pallas_call wrappers
# ----------------------------------------------------------------------------
def _block_s1_call(x_nhwc, p2):
    N, H, W, Cin = x_nhwc.shape
    Cb = Cin // 2
    w1, b1 = fold_pw(p2["pw1_w"], p2["pw1_bn"])
    wd, bd = fold_dw(p2["dw_w"], p2["dw_bn"])
    w2, b2 = fold_pw(p2["pw2_w"], p2["pw2_bn"])
    M = H * W

    x2 = x_nhwc.reshape(N, M, Cin)
    operands = [x2, w1, b1.reshape(1, Cb), wd, bd.reshape(1, Cb),
                w2, b2.reshape(1, Cb)]
    in_specs = [pl.BlockSpec((None, M, Cin), lambda n: (n, 0, 0))] + \
               [_const_spec(a) for a in operands[1:]]

    kernel = functools.partial(_block_s1_kernel, H=H, W=W, Cb=Cb)
    out = pl.pallas_call(
        kernel,
        out_shape=jax.ShapeDtypeStruct((N, M, Cin), jnp.float32),
        grid=(N,),
        in_specs=in_specs,
        out_specs=pl.BlockSpec((None, M, Cin), lambda n: (n, 0, 0)),
        scratch_shapes=[pltpu.VMEM((_pad_total(H, W), Cb), jnp.float32)],
        compiler_params=pltpu.CompilerParams(
            dimension_semantics=("parallel",)),
    )(*operands)
    return out.reshape(N, H, W, Cin)


def _block_s2_call(x_nhwc, p1, p2):
    N, H, W, Cin = x_nhwc.shape
    assert H % 2 == 0 and W % 2 == 0, "stride-2 block needs even H, W"
    Cb = p2["pw2_w"].shape[0]
    wd1, bd1 = fold_dw(p1["dw_w"], p1["dw_bn"])
    wp1, bp1 = fold_pw(p1["pw_w"], p1["pw_bn"])
    w21, b21 = fold_pw(p2["pw1_w"], p2["pw1_bn"])
    wd2, bd2 = fold_dw(p2["dw_w"], p2["dw_bn"])
    w22, b22 = fold_pw(p2["pw2_w"], p2["pw2_bn"])
    M = H * W
    R, Wout = H // 2, W // 2
    Mo = R * Wout

    x2 = x_nhwc.reshape(N, M, Cin)
    operands = [x2,
                wd1, bd1.reshape(1, Cin), wp1, bp1.reshape(1, Cb),
                w21, b21.reshape(1, Cb), wd2, bd2.reshape(1, Cb),
                w22, b22.reshape(1, Cb)]
    in_specs = [pl.BlockSpec((None, M, Cin), lambda n: (n, 0, 0))] + \
               [_const_spec(a) for a in operands[1:]]

    kernel = functools.partial(_block_s2_kernel, H=H, W=W, Cin=Cin, Cb=Cb)
    out = pl.pallas_call(
        kernel,
        out_shape=jax.ShapeDtypeStruct((N, Mo, 2 * Cb), jnp.float32),
        grid=(N,),
        in_specs=in_specs,
        out_specs=pl.BlockSpec((None, Mo, 2 * Cb), lambda n: (n, 0, 0)),
        scratch_shapes=[pltpu.VMEM((_pad_total(H, W), Cin), jnp.float32),
                        pltpu.VMEM((_pad_total(H, W), Cb), jnp.float32)],
        compiler_params=pltpu.CompilerParams(
            dimension_semantics=("parallel",)),
    )(*operands)
    return out.reshape(N, R, Wout, 2 * Cb)


# ----------------------------------------------------------------------------
# BatchNorm folding (eval-mode) + weight folding
# ----------------------------------------------------------------------------
def fold_bn(gamma, beta, mean, var, eps=1e-5):
    s = gamma / jnp.sqrt(var + eps)
    return s, beta - mean * s


def fold_pw(w_oihw, bn):
    s, b = fold_bn(*bn)
    w = w_oihw[:, :, 0, 0].T * s[None, :]            # (Cin, Cout)
    return w, b


def fold_dw(w_c1kk, bn):
    s, b = fold_bn(*bn)
    c = w_c1kk.shape[0]
    w = jnp.transpose(w_c1kk[:, 0], (1, 2, 0)) * s[None, None, :]   # (3, 3, C)
    return w.reshape(3, 3, 1, c), b


# ----------------------------------------------------------------------------
# InvertedResidual forward (Pallas path)
# ----------------------------------------------------------------------------
def _channel_shuffle2_nhwc(x):
    # concat(dim=C) followed by channel_shuffle(groups=2) == channel interleave
    N, H, W, C = x.shape
    h = C // 2
    return (x.reshape(N, H, W, 2, h)
             .transpose(0, 1, 2, 4, 3).reshape(N, H, W, C))


def inverted_residual_nhwc(x_nhwc, bp):
    stride = bp["stride"]
    if stride == 1:
        out = _block_s1_call(x_nhwc, bp["branch2"])
    elif stride == 2:
        out = _block_s2_call(x_nhwc, bp["branch1"], bp["branch2"])
    else:
        raise NotImplementedError("only strides 1 and 2 are supported")
    return _channel_shuffle2_nhwc(out)


def inverted_residual_pallas(x_nchw, bp):
    x = jnp.transpose(x_nchw, (0, 2, 3, 1))          # NCHW -> NHWC
    y = inverted_residual_nhwc(x, bp)
    return jnp.transpose(y, (0, 3, 1, 2))            # NHWC -> NCHW


# ----------------------------------------------------------------------------
# Pure-JAX (lax.conv) reference, mirroring the PyTorch module exactly
# ----------------------------------------------------------------------------
def ref_conv(x, w, stride, padding, groups=1):
    return jax.lax.conv_general_dilated(
        x, w, window_strides=(stride, stride),
        padding=((padding, padding), (padding, padding)),
        dimension_numbers=("NCHW", "OIHW", "NCHW"),
        feature_group_count=groups)


def ref_bn(x, gamma, beta, mean, var, eps=1e-5):
    s = gamma / jnp.sqrt(var + eps)
    return x * s[None, :, None, None] + (beta - mean * s)[None, :, None, None]


def ref_channel_shuffle(x, groups):
    N, C, H, W = x.shape
    return (x.reshape(N, groups, C // groups, H, W)
             .transpose(0, 2, 1, 3, 4).reshape(N, C, H, W))


def ref_branch2(x, p, stride):
    y = jax.nn.relu(ref_bn(ref_conv(x, p["pw1_w"], 1, 0), *p["pw1_bn"]))
    y = ref_bn(ref_conv(y, p["dw_w"], stride, 1, groups=y.shape[1]), *p["dw_bn"])
    return jax.nn.relu(ref_bn(ref_conv(y, p["pw2_w"], 1, 0), *p["pw2_bn"]))


def ref_inverted_residual(x, bp):
    if bp["stride"] == 1:
        c = x.shape[1] // 2
        out = jnp.concatenate(
            [x[:, :c], ref_branch2(x[:, c:], bp["branch2"], 1)], axis=1)
    else:
        p1 = bp["branch1"]
        b1 = ref_bn(ref_conv(x, p1["dw_w"], bp["stride"], 1, groups=x.shape[1]),
                    *p1["dw_bn"])
        b1 = jax.nn.relu(ref_bn(ref_conv(b1, p1["pw_w"], 1, 0), *p1["pw_bn"]))
        b2 = ref_branch2(x, bp["branch2"], bp["stride"])
        out = jnp.concatenate([b1, b2], axis=1)
    return ref_channel_shuffle(out, 2)


# ----------------------------------------------------------------------------
# Deterministic parameter construction (same shapes as the PyTorch module)
# ----------------------------------------------------------------------------
class ParamGen:
    def __init__(self, seed=0):
        self._key = jax.random.PRNGKey(seed)
        self._n = 0

    def _next(self):
        self._n += 1
        return jax.random.fold_in(self._key, self._n)

    def conv(self, shape, scale=0.1):
        return scale * jax.random.normal(self._next(), shape, jnp.float32)

    def bn(self, c):
        gamma = 1.0 + 0.1 * jax.random.normal(self._next(), (c,), jnp.float32)
        beta = 0.1 * jax.random.normal(self._next(), (c,), jnp.float32)
        mean = 0.1 * jax.random.normal(self._next(), (c,), jnp.float32)
        var = 0.5 + 0.1 * jnp.abs(jax.random.normal(self._next(), (c,), jnp.float32))
        return (gamma, beta, mean, var)


def make_block_params(gen, cin, cout, stride):
    bf = cout // 2
    p = {"stride": stride}
    if stride > 1:
        p["branch1"] = {
            "dw_w": gen.conv((cin, 1, 3, 3)), "dw_bn": gen.bn(cin),
            "pw_w": gen.conv((bf, cin, 1, 1)), "pw_bn": gen.bn(bf),
        }
        in2 = cin
    else:
        assert cin == bf * 2
        in2 = bf
    p["branch2"] = {
        "pw1_w": gen.conv((bf, in2, 1, 1)), "pw1_bn": gen.bn(bf),
        "dw_w": gen.conv((bf, 1, 3, 3)), "dw_bn": gen.bn(bf),
        "pw2_w": gen.conv((bf, bf, 1, 1)), "pw2_bn": gen.bn(bf),
    }
    return p


# ----------------------------------------------------------------------------
if __name__ == "__main__":
    key = jax.random.PRNGKey(0)
    x = jax.random.normal(key, (2, 32, 16, 16), jnp.float32)   # NCHW like PyTorch

    gen = ParamGen(0)
    block_down = make_block_params(gen, 32, 64, stride=2)      # downsampling block
    block_keep = make_block_params(gen, 64, 64, stride=1)      # stride-1 block

    @jax.jit
    def fwd(xin):
        # keep activations NHWC across the chain; transpose only at the edges
        y = jnp.transpose(xin, (0, 2, 3, 1))
        y = inverted_residual_nhwc(y, block_down)
        y = inverted_residual_nhwc(y, block_keep)
        return jnp.transpose(y, (0, 3, 1, 2))

    out = jax.block_until_ready(fwd(x))
    assert out.shape == (2, 64, 8, 8), out.shape

    ref = ref_inverted_residual(ref_inverted_residual(x, block_down), block_keep)
    np.testing.assert_allclose(np.asarray(out), np.asarray(ref),
                               atol=1e-3, rtol=1e-3)
    print("KERNEL_OK")
</pallas_src>

<mosaic_0001>
module attributes {stable_mosaic.version = 11 : i64} {
  func.func @_block_s2_kernel(%arg0: i32, %arg1: memref<1x256x32xf32, #tpu.memory_space<vmem>>, %arg2: memref<3x3x1x32xf32, #tpu.memory_space<vmem>>, %arg3: memref<1x32xf32, #tpu.memory_space<vmem>>, %arg4: memref<32x32xf32, #tpu.memory_space<vmem>>, %arg5: memref<1x32xf32, #tpu.memory_space<vmem>>, %arg6: memref<32x32xf32, #tpu.memory_space<vmem>>, %arg7: memref<1x32xf32, #tpu.memory_space<vmem>>, %arg8: memref<3x3x1x32xf32, #tpu.memory_space<vmem>>, %arg9: memref<1x32xf32, #tpu.memory_space<vmem>>, %arg10: memref<32x32xf32, #tpu.memory_space<vmem>>, %arg11: memref<1x32xf32, #tpu.memory_space<vmem>>, %arg12: memref<1x64x64xf32, #tpu.memory_space<vmem>>, %arg13: memref<297x32xf32, #tpu.memory_space<vmem>>, %arg14: memref<297x32xf32, #tpu.memory_space<vmem>>) attributes {dimension_semantics = [#tpu.dimension_semantics<parallel>], iteration_bounds = array<i64: 2>, scalar_prefetch = 0 : i64, scratch_operands = 2 : i64, tpu.core_type = #tpu.core_type<tc>, window_params = [{transform_indices = @transform_0, window_bounds = array<i64: 1, 256, 32>}, {pipeline_mode = #tpu.pipeline_mode<synchronous>, transform_indices = @transform_1, window_bounds = array<i64: 3, 3, 1, 32>}, {pipeline_mode = #tpu.pipeline_mode<synchronous>, transform_indices = @transform_2, window_bounds = array<i64: 1, 32>}, {pipeline_mode = #tpu.pipeline_mode<synchronous>, transform_indices = @transform_3, window_bounds = array<i64: 32, 32>}, {pipeline_mode = #tpu.pipeline_mode<synchronous>, transform_indices = @transform_4, window_bounds = array<i64: 1, 32>}, {pipeline_mode = #tpu.pipeline_mode<synchronous>, transform_indices = @transform_5, window_bounds = array<i64: 32, 32>}, {pipeline_mode = #tpu.pipeline_mode<synchronous>, transform_indices = @transform_6, window_bounds = array<i64: 1, 32>}, {pipeline_mode = #tpu.pipeline_mode<synchronous>, transform_indices = @transform_7, window_bounds = array<i64: 3, 3, 1, 32>}, {pipeline_mode = #tpu.pipeline_mode<synchronous>, transform_indices = @transform_8, window_bounds = array<i64: 1, 32>}, {pipeline_mode = #tpu.pipeline_mode<synchronous>, transform_indices = @transform_9, window_bounds = array<i64: 32, 32>}, {pipeline_mode = #tpu.pipeline_mode<synchronous>, transform_indices = @transform_10, window_bounds = array<i64: 1, 32>}, {transform_indices = @transform_11, window_bounds = array<i64: 1, 64, 64>}]} {
    %c0 = arith.constant 0 : index
    %c0_0 = arith.constant 0 : index
    %c0_1 = arith.constant 0 : index
    %0 = vector.load %arg1[%c0, %c0_0, %c0_1] : memref<1x256x32xf32, #tpu.memory_space<vmem>>, vector<1x256x32xf32>
    %1 = vector.shape_cast %0 : vector<1x256x32xf32> to vector<256x32xf32>
    %cst = arith.constant 0.000000e+00 : f32
    %2 = vector.broadcast %cst : f32 to vector<24x32xf32>
    %c0_2 = arith.constant 0 : index
    %c0_3 = arith.constant 0 : index
    %3 = vector.load %arg13[%c0_2, %c0_3] : memref<297x32xf32, #tpu.memory_space<vmem>>, vector<24x32xf32>
    tpu.vector_store %arg13[%c0_2, %c0_3], %2 {strides = array<i32>} : memref<297x32xf32, #tpu.memory_space<vmem>>, vector<24x32xf32>,
    %cst_4 = arith.constant 0.000000e+00 : f32
    %4 = vector.broadcast %cst_4 : f32 to vector<17x32xf32>
    %c280 = arith.constant 280 : index
    %c0_5 = arith.constant 0 : index
    %5 = vector.load %arg13[%c280, %c0_5] : memref<297x32xf32, #tpu.memory_space<vmem>>, vector<17x32xf32>
    tpu.vector_store %arg13[%c280, %c0_5], %4 {strides = array<i32>} : memref<297x32xf32, #tpu.memory_space<vmem>>, vector<17x32xf32>,
    %c24 = arith.constant 24 : index
    %c0_6 = arith.constant 0 : index
    %6 = vector.load %arg13[%c24, %c0_6] : memref<297x32xf32, #tpu.memory_space<vmem>>, vector<256x32xf32>
    tpu.vector_store %arg13[%c24, %c0_6], %1 {strides = array<i32>} : memref<297x32xf32, #tpu.memory_space<vmem>>, vector<256x32xf32>,
    %c0_7 = arith.constant 0 : index
    %c0_8 = arith.constant 0 : index
    %c0_9 = arith.constant 0 : index
    %c0_10 = arith.constant 0 : index
    %7 = vector.load %arg2[%c0_7, %c0_8, %c0_9, %c0_10] : memref<3x3x1x32xf32, #tpu.memory_space<vmem>>, vector<3x3x1x32xf32>
    %8 = tpu.iota {dimensions = array<i32: 1>} : vector<1x8x32xi32>
    %c1_i32 = arith.constant 1 : i32
    %9 = vector.broadcast %c1_i32 : i32 to vector<1x8x32xi32>
    %10 = arith.cmpi sge, %8, %9 : vector<1x8x32xi32>
    %11 = arith.extui %10 : vector<1x8x32xi1> to vector<1x8x32xi32>
    %12 = arith.sitofp %11 : vector<1x8x32xi32> to vector<1x8x32xf32>
    %c8 = arith.constant 8 : index
    %c0_11 = arith.constant 0 : index
    %13 = tpu.strided_load %arg13[%c8, %c0_11] {strides = array<i32: 2, 1>} : memref<297x32xf32, #tpu.memory_space<vmem>>, vector<128x32xf32>
    %14 = vector.shape_cast %13 : vector<128x32xf32> to vector<8x2x8x32xf32>
    %15 = vector.extract_strided_slice %14 {offsets = [0, 0, 0, 0], sizes = [8, 1, 8, 32], strides = [1, 1, 1, 1]} : vector<8x2x8x32xf32> to vector<8x1x8x32xf32>
    %16 = vector.shape_cast %15 : vector<8x1x8x32xf32> to vector<8x8x32xf32>
    %17 = vector.extract_strided_slice %7 {offsets = [0, 1, 0, 0], sizes = [1, 1, 1, 32], strides = [1, 1, 1, 1]} : vector<3x3x1x32xf32> to vector<1x1x1x32xf32>
    %18 = vector.shape_cast %17 : vector<1x1x1x32xf32> to vector<1x32xf32>
    %19 = vector.shape_cast %18 : vector<1x32xf32> to vector<1x1x32xf32>
    %20 = vector.broadcast %19 : vector<1x1x32xf32> to vector<8x8x32xf32>
    %21 = arith.mulf %16, %20 : vector<8x8x32xf32>
    %c24_12 = arith.constant 24 : index
    %c0_13 = arith.constant 0 : index
    %22 = tpu.strided_load %arg13[%c24_12, %c0_13] {strides = array<i32: 2, 1>} : memref<297x32xf32, #tpu.memory_space<vmem>>, vector<128x32xf32>
    %23 = vector.shape_cast %22 : vector<128x32xf32> to vector<8x2x8x32xf32>
    %24 = vector.extract_strided_slice %23 {offsets = [0, 0, 0, 0], sizes = [8, 1, 8, 32], strides = [1, 1, 1, 1]} : vector<8x2x8x32xf32> to vector<8x1x8x32xf32>
    %25 = vector.shape_cast %24 : vector<8x1x8x32xf32> to vector<8x8x32xf32>
    %26 = vector.extract_strided_slice %7 {offsets = [1, 1, 0, 0], sizes = [1, 1, 1, 32], strides = [1, 1, 1, 1]} : vector<3x3x1x32xf32> to vector<1x1x1x32xf32>
    %27 = vector.shape_cast %26 : vector<1x1x1x32xf32> to vector<1x32xf32>
    %28 = vector.shape_cast %27 : vector<1x32xf32> to vector<1x1x32xf32>
    %29 = vector.broadcast %28 : vector<1x1x32xf32> to vector<8x8x32xf32>
    %30 = arith.mulf %25, %29 : vector<8x8x32xf32>
    %31 = arith.addf %21, %30 : vector<8x8x32xf32>
    %c40 = arith.constant 40 : index
    %c0_14 = arith.constant 0 : index
    %32 = tpu.strided_load %arg13[%c40, %c0_14] {strides = array<i32: 2, 1>} : memref<297x32xf32, #tpu.memory_space<vmem>>, vector<128x32xf32>
    %33 = vector.shape_cast %32 : vector<128x32xf32> to vector<8x2x8x32xf32>
    %34 = vector.extract_strided_slice %33 {offsets = [0, 0, 0, 0], sizes = [8, 1, 8, 32], strides = [1, 1, 1, 1]} : vector<8x2x8x32xf32> to vector<8x1x8x32xf32>
    %35 = vector.shape_cast %34 : vector<8x1x8x32xf32> to vector<8x8x32xf32>
    %36 = vector.extract_strided_slice %7 {offsets = [2, 1, 0, 0], sizes = [1, 1, 1, 32], strides = [1, 1, 1, 1]} : vector<3x3x1x32xf32> to vector<1x1x1x32xf32>
    %37 = vector.shape_cast %36 : vector<1x1x1x32xf32> to vector<1x32xf32>
    %38 = vector.shape_cast %37 : vector<1x32xf32> to vector<1x1x32xf32>
    %39 = vector.broadcast %38 : vector<1x1x32xf32> to vector<8x8x32xf32>
    %40 = arith.mulf %35, %39 : vector<8x8x32xf32>
    %41 = arith.addf %31, %40 : vector<8x8x32xf32>
    %c7 = arith.constant 7 : index
    %c0_15 = arith.constant 0 : index
    %42 = tpu.strided_load %arg13[%c7, %c0_15] {strides = array<i32: 2, 1>} : memref<297x32xf32, #tpu.memory_space<vmem>>, vector<128x32xf32>
    %43 = vector.shape_cast %42 : vector<128x32xf32> to vector<8x2x8x32xf32>
    %44 = vector.extract_strided_slice %43 {offsets = [0, 0, 0, 0], sizes = [8, 1, 8, 32], strides = [1, 1, 1, 1]} : vector<8x2x8x32xf32> to vector<8x1x8x32xf32>
    %45 = vector.shape_cast %44 : vector<8x1x8x32xf32> to vector<8x8x32xf32>
    %46 = vector.extract_strided_slice %7 {offsets = [0, 0, 0, 0], sizes = [1, 1, 1, 32], strides = [1, 1, 1, 1]} : vector<3x3x1x32xf32> to vector<1x1x1x32xf32>
    %47 = vector.shape_cast %46 : vector<1x1x1x32xf32> to vector<1x32xf32>
    %48 = vector.shape_cast %47 : vector<1x32xf32> to vector<1x1x32xf32>
    %49 = vector.broadcast %48 : vector<1x1x32xf32> to vector<8x8x32xf32>
    %50 = arith.mulf %45, %49 : vector<8x8x32xf32>
    %c23 = arith.constant 23 : index
    %c0_16 = arith.constant 0 : index
    %51 = tpu.strided_load %arg13[%c23, %c0_16] {strides = array<i32: 2, 1>} : memref<297x32xf32, #tpu.memory_space<vmem>>, vector<128x32xf32>
    %52 = vector.shape_cast %51 : vector<128x32xf32> to vector<8x2x8x32xf32>
    %53 = vector.extract_strided_slice %52 {offsets = [0, 0, 0, 0], sizes = [8, 1, 8, 32], strides = [1, 1, 1, 1]} : vector<8x2x8x32xf32> to vector<8x1x8x32xf32>
    %54 = vector.shape_cast %53 : vector<8x1x8x32xf32> to vector<8x8x32xf32>
    %55 = vector.extract_strided_slice %7 {offsets = [1, 0, 0, 0], sizes = [1, 1, 1, 32], strides = [1, 1, 1, 1]} : vector<3x3x1x32xf32> to vector<1x1x1x32xf32>
    %56 = vector.shape_cast %55 : vector<1x1x1x32xf32> to vector<1x32xf32>
    %57 = vector.shape_cast %56 : vector<1x32xf32> to vector<1x1x32xf32>
    %58 = vector.broadcast %57 : vector<1x1x32xf32> to vector<8x8x32xf32>
    %59 = arith.mulf %54, %58 : vector<8x8x32xf32>
    %60 = arith.addf %50, %59 : vector<8x8x32xf32>
    %c39 = arith.constant 39 : index
    %c0_17 = arith.constant 0 : index
    %61 = tpu.strided_load %arg13[%c39, %c0_17] {strides = array<i32: 2, 1>} : memref<297x32xf32, #tpu.memory_space<vmem>>, vector<128x32xf32>
    %62 = vector.shape_cast %61 : vector<128x32xf32> to vector<8x2x8x32xf32>
    %63 = vector.extract_strided_slice %62 {offsets = [0, 0, 0, 0], sizes = [8, 1, 8, 32], strides = [1, 1, 1, 1]} : vector<8x2x8x32xf32> to vector<8x1x8x32xf32>
    %64 = vector.shape_cast %63 : vector<8x1x8x32xf32> to vector<8x8x32xf32>
    %65 = vector.extract_strided_slice %7 {offsets = [2, 0, 0, 0], sizes = [1, 1, 1, 32], strides = [1, 1, 1, 1]} : vector<3x3x1x32xf32> to vector<1x1x1x32xf32>
    %66 = vector.shape_cast %65 : vector<1x1x1x32xf32> to vector<1x32xf32>
    %67 = vector.shape_cast %66 : vector<1x32xf32> to vector<1x1x32xf32>
    %68 = vector.broadcast %67 : vector<1x1x32xf32> to vector<8x8x32xf32>
    %69 = arith.mulf %64, %68 : vector<8x8x32xf32>
    %70 = arith.addf %60, %69 : vector<8x8x32xf32>
    %c9 = arith.constant 9 : index
    %c0_18 = arith.constant 0 : index
    %71 = tpu.strided_load %arg13[%c9, %c0_18] {strides = array<i32: 2, 1>} : memref<297x32xf32, #tpu.memory_space<vmem>>, vector<128x32xf32>
    %72 = vector.shape_cast %71 : vector<128x32xf32> to vector<8x2x8x32xf32>
    %73 = vector.extract_strided_slice %72 {offsets = [0, 0, 0, 0], sizes = [8, 1, 8, 32], strides = [1, 1, 1, 1]} : vector<8x2x8x32xf32> to vector<8x1x8x32xf32>
    %74 = vector.shape_cast %73 : vector<8x1x8x32xf32> to vector<8x8x32xf32>
    %75 = vector.extract_strided_slice %7 {offsets = [0, 2, 0, 0], sizes = [1, 1, 1, 32], strides = [1, 1, 1, 1]} : vector<3x3x1x32xf32> to vector<1x1x1x32xf32>
    %76 = vector.shape_cast %75 : vector<1x1x1x32xf32> to vector<1x32xf32>
    %77 = vector.shape_cast %76 : vector<1x32xf32> to vector<1x1x32xf32>
    %78 = vector.broadcast %77 : vector<1x1x32xf32> to vector<8x8x32xf32>
    %79 = arith.mulf %74, %78 : vector<8x8x32xf32>
    %c25 = arith.constant 25 : index
    %c0_19 = arith.constant 0 : index
    %80 = tpu.strided_load %arg13[%c25, %c0_19] {strides = array<i32: 2, 1>} : memref<297x32xf32, #tpu.memory_space<vmem>>, vector<128x32xf32>
    %81 = vector.shape_cast %80 : vector<128x32xf32> to vector<8x2x8x32xf32>
    %82 = vector.extract_strided_slice %81 {offsets = [0, 0, 0, 0], sizes = [8, 1, 8, 32], strides = [1, 1, 1, 1]} : vector<8x2x8x32xf32> to vector<8x1x8x32xf32>
    %83 = vector.shape_cast %82 : vector<8x1x8x32xf32> to vector<8x8x32xf32>
    %84 = vector.extract_strided_slice %7 {offsets = [1, 2, 0, 0], sizes = [1, 1, 1, 32], strides = [1, 1, 1, 1]} : vector<3x3x1x32xf32> to vector<1x1x1x32xf32>
    %85 = vector.shape_cast %84 : vector<1x1x1x32xf32> to vector<1x32xf32>
    %86 = vector.shape_cast %85 : vector<1x32xf32> to vector<1x1x32xf32>
    %87 = vector.broadcast %86 : vector<1x1x32xf32> to vector<8x8x32xf32>
    %88 = arith.mulf %83, %87 : vector<8x8x32xf32>
    %89 = arith.addf %79, %88 : vector<8x8x32xf32>
    %c41 = arith.constant 41 : index
    %c0_20 = arith.constant 0 : index
    %90 = tpu.strided_load %arg13[%c41, %c0_20] {strides = array<i32: 2, 1>} : memref<297x32xf32, #tpu.memory_space<vmem>>, vector<128x32xf32>
    %91 = vector.shape_cast %90 : vector<128x32xf32> to vector<8x2x8x32xf32>
    %92 = vector.extract_strided_slice %91 {offsets = [0, 0, 0, 0], sizes = [8, 1, 8, 32], strides = [1, 1, 1, 1]} : vector<8x2x8x32xf32> to vector<8x1x8x32xf32>
    %93 = vector.shape_cast %92 : vector<8x1x8x32xf32> to vector<8x8x32xf32>
    %94 = vector.extract_strided_slice %7 {offsets = [2, 2, 0, 0], sizes = [1, 1, 1, 32], strides = [1, 1, 1, 1]} : vector<3x3x1x32xf32> to vector<1x1x1x32xf32>
    %95 = vector.shape_cast %94 : vector<1x1x1x32xf32> to vector<1x32xf32>
    %96 = vector.shape_cast %95 : vector<1x32xf32> to vector<1x1x32xf32>
    %97 = vector.broadcast %96 : vector<1x1x32xf32> to vector<8x8x32xf32>
    %98 = arith.mulf %93, %97 : vector<8x8x32xf32>
    %99 = arith.addf %89, %98 : vector<8x8x32xf32>
    %100 = vector.broadcast %12 : vector<1x8x32xf32> to vector<8x8x32xf32>
    %101 = arith.mulf %70, %100 : vector<8x8x32xf32>
    %102 = arith.addf %41, %101 : vector<8x8x32xf32>
    %103 = arith.addf %102, %99 : vector<8x8x32xf32>
    %c0_21 = arith.constant 0 : index
    %c0_22 = arith.constant 0 : index
    %104 = vector.load %arg3[%c0_21, %c0_22] : memref<1x32xf32, #tpu.memory_space<vmem>>, vector<1x32xf32>
    %105 = vector.shape_cast %104 : vector<1x32xf32> to vector<1x1x32xf32>
    %106 = vector.broadcast %105 : vector<1x1x32xf32> to vector<8x8x32xf32>
    %107 = arith.addf %103, %106 : vector<8x8x32xf32>
    %108 = vector.shape_cast %107 : vector<8x8x32xf32> to vector<64x32xf32>
    %c0_23 = arith.constant 0 : index
    %c0_24 = arith.constant 0 : index
    %109 = vector.load %arg4[%c0_23, %c0_24] : memref<32x32xf32, #tpu.memory_space<vmem>>, vector<32x32xf32>
    %cst_25 = arith.constant dense<0.000000e+00> : vector<64x32xf32>
    %110 = tpu.matmul %108, %109, %cst_25 {dimension_numbers = #tpu.dot_dimension_numbers<[1], [0], [0], [1], [0, 0, 1, 1], [], []>} : vector<64x32xf32>, vector<32x32xf32>, vector<64x32xf32> -> vector<64x32xf32>
    %c0_26 = arith.constant 0 : index
    %c0_27 = arith.constant 0 : index
    %111 = vector.load %arg5[%c0_26, %c0_27] : memref<1x32xf32, #tpu.memory_space<vmem>>, vector<1x32xf32>
    %112 = vector.broadcast %111 : vector<1x32xf32> to vector<64x32xf32>
    %113 = arith.addf %110, %112 : vector<64x32xf32>
    %cst_28 = arith.constant 0.000000e+00 : f32
    %114 = vector.broadcast %cst_28 : f32 to vector<64x32xf32>
    %115 = arith.maximumf %113, %114 : vector<64x32xf32>
    %c0_29 = arith.constant 0 : index
    %c0_30 = arith.constant 0 : index
    %116 = vector.load %arg6[%c0_29, %c0_30] : memref<32x32xf32, #tpu.memory_space<vmem>>, vector<32x32xf32>
    %cst_31 = arith.constant dense<0.000000e+00> : vector<256x32xf32>
    %117 = tpu.matmul %1, %116, %cst_31 {dimension_numbers = #tpu.dot_dimension_numbers<[1], [0], [0], [1], [0, 0, 1, 1], [], []>} : vector<256x32xf32>, vector<32x32xf32>, vector<256x32xf32> -> vector<256x32xf32>
    %c0_32 = arith.constant 0 : index
    %c0_33 = arith.constant 0 : index
    %118 = vector.load %arg7[%c0_32, %c0_33] : memref<1x32xf32, #tpu.memory_space<vmem>>, vector<1x32xf32>
    %119 = vector.broadcast %118 : vector<1x32xf32> to vector<256x32xf32>
    %120 = arith.addf %117, %119 : vector<256x32xf32>
    %cst_34 = arith.constant 0.000000e+00 : f32
    %121 = vector.broadcast %cst_34 : f32 to vector<256x32xf32>
    %122 = arith.maximumf %120, %121 : vector<256x32xf32>
    %cst_35 = arith.constant 0.000000e+00 : f32
    %123 = vector.broadcast %cst_35 : f32 to vector<24x32xf32>
    %c0_36 = arith.constant 0 : index
    %c0_37 = arith.constant 0 : index
    %124 = vector.load %arg14[%c0_36, %c0_37] : memref<297x32xf32, #tpu.memory_space<vmem>>, vector<24x32xf32>
    tpu.vector_store %arg14[%c0_36, %c0_37], %123 {strides = array<i32>} : memref<297x32xf32, #tpu.memory_space<vmem>>, vector<24x32xf32>,
    %cst_38 = arith.constant 0.000000e+00 : f32
    %125 = vector.broadcast %cst_38 : f32 to vector<17x32xf32>
    %c280_39 = arith.constant 280 : index
    %c0_40 = arith.constant 0 : index
    %126 = vector.load %arg14[%c280_39, %c0_40] : memref<297x32xf32, #tpu.memory_space<vmem>>, vector<17x32xf32>
    tpu.vector_store %arg14[%c280_39, %c0_40], %125 {strides = array<i32>} : memref<297x32xf32, #tpu.memory_space<vmem>>, vector<17x32xf32>,
    %c24_41 = arith.constant 24 : index
    %c0_42 = arith.constant 0 : index
    %127 = vector.load %arg14[%c24_41, %c0_42] : memref<297x32xf32, #tpu.memory_space<vmem>>, vector<256x32xf32>
    tpu.vector_store %arg14[%c24_41, %c0_42], %122 {strides = array<i32>} : memref<297x32xf32, #tpu.memory_space<vmem>>, vector<256x32xf32>,
    %c0_43 = arith.constant 0 : index
    %c0_44 = arith.constant 0 : index
    %c0_45 = arith.constant 0 : index
    %c0_46 = arith.constant 0 : index
    %128 = vector.load %arg8[%c0_43, %c0_44, %c0_45, %c0_46] : memref<3x3x1x32xf32, #tpu.memory_space<vmem>>, vector<3x3x1x32xf32>
    %129 = tpu.iota {dimensions = array<i32: 1>} : vector<1x8x32xi32>
    %c1_i32_47 = arith.constant 1 : i32
    %130 = vector.broadcast %c1_i32_47 : i32 to vector<1x8x32xi32>
    %131 = arith.cmpi sge, %129, %130 : vector<1x8x32xi32>
    %132 = arith.extui %131 : vector<1x8x32xi1> to vector<1x8x32xi32>
    %133 = arith.sitofp %132 : vector<1x8x32xi32> to vector<1x8x32xf32>
    %c8_48 = arith.constant 8 : index
    %c0_49 = arith.constant 0 : index
    %134 = tpu.strided_load %arg14[%c8_48, %c0_49] {strides = array<i32: 2, 1>} : memref<297x32xf32, #tpu.memory_space<vmem>>, vector<128x32xf32>
    %135 = vector.shape_cast %134 : vector<128x32xf32> to vector<8x2x8x32xf32>
    %136 = vector.extract_strided_slice %135 {offsets = [0, 0, 0, 0], sizes = [8, 1, 8, 32], strides = [1, 1, 1, 1]} : vector<8x2x8x32xf32> to vector<8x1x8x32xf32>
    %137 = vector.shape_cast %136 : vector<8x1x8x32xf32> to vector<8x8x32xf32>
    %138 = vector.extract_strided_slice %128 {offsets = [0, 1, 0, 0], sizes = [1, 1, 1, 32], strides = [1, 1, 1, 1]} : vector<3x3x1x32xf32> to vector<1x1x1x32xf32>
    %139 = vector.shape_cast %138 : vector<1x1x1x32xf32> to vector<1x32xf32>
    %140 = vector.shape_cast %139 : vector<1x32xf32> to vector<1x1x32xf32>
    %141 = vector.broadcast %140 : vector<1x1x32xf32> to vector<8x8x32xf32>
    %142 = arith.mulf %137, %141 : vector<8x8x32xf32>
    %c24_50 = arith.constant 24 : index
    %c0_51 = arith.constant 0 : index
    %143 = tpu.strided_load %arg14[%c24_50, %c0_51] {strides = array<i32: 2, 1>} : memref<297x32xf32, #tpu.memory_space<vmem>>, vector<128x32xf32>
    %144 = vector.shape_cast %143 : vector<128x32xf32> to vector<8x2x8x32xf32>
    %145 = vector.extract_strided_slice %144 {offsets = [0, 0, 0, 0], sizes = [8, 1, 8, 32], strides = [1, 1, 1, 1]} : vector<8x2x8x32xf32> to vector<8x1x8x32xf32>
    %146 = vector.shape_cast %145 : vector<8x1x8x32xf32> to vector<8x8x32xf32>
    %147 = vector.extract_strided_slice %128 {offsets = [1, 1, 0, 0], sizes = [1, 1, 1, 32], strides = [1, 1, 1, 1]} : vector<3x3x1x32xf32> to vector<1x1x1x32xf32>
    %148 = vector.shape_cast %147 : vector<1x1x1x32xf32> to vector<1x32xf32>
    %149 = vector.shape_cast %148 : vector<1x32xf32> to vector<1x1x32xf32>
    %150 = vector.broadcast %149 : vector<1x1x32xf32> to vector<8x8x32xf32>
    %151 = arith.mulf %146, %150 : vector<8x8x32xf32>
    %152 = arith.addf %142, %151 : vector<8x8x32xf32>
    %c40_52 = arith.constant 40 : index
    %c0_53 = arith.constant 0 : index
    %153 = tpu.strided_load %arg14[%c40_52, %c0_53] {strides = array<i32: 2, 1>} : memref<297x32xf32, #tpu.memory_space<vmem>>, vector<128x32xf32>
    %154 = vector.shape_cast %153 : vector<128x32xf32> to vector<8x2x8x32xf32>
    %155 = vector.extract_strided_slice %154 {offsets = [0, 0, 0, 0], sizes = [8, 1, 8, 32], strides = [1, 1, 1, 1]} : vector<8x2x8x32xf32> to vector<8x1x8x32xf32>
    %156 = vector.shape_cast %155 : vector<8x1x8x32xf32> to vector<8x8x32xf32>
    %157 = vector.extract_strided_slice %128 {offsets = [2, 1, 0, 0], sizes = [1, 1, 1, 32], strides = [1, 1, 1, 1]} : vector<3x3x1x32xf32> to vector<1x1x1x32xf32>
    %158 = vector.shape_cast %157 : vector<1x1x1x32xf32> to vector<1x32xf32>
    %159 = vector.shape_cast %158 : vector<1x32xf32> to vector<1x1x32xf32>
    %160 = vector.broadcast %159 : vector<1x1x32xf32> to vector<8x8x32xf32>
    %161 = arith.mulf %156, %160 : vector<8x8x32xf32>
    %162 = arith.addf %152, %161 : vector<8x8x32xf32>
    %c7_54 = arith.constant 7 : index
    %c0_55 = arith.constant 0 : index
    %163 = tpu.strided_load %arg14[%c7_54, %c0_55] {strides = array<i32: 2, 1>} : memref<297x32xf32, #tpu.memory_space<vmem>>, vector<128x32xf32>
    %164 = vector.shape_cast %163 : vector<128x32xf32> to vector<8x2x8x32xf32>
    %165 = vector.extract_strided_slice %164 {offsets = [0, 0, 0, 0], sizes = [8, 1, 8, 32], strides = [1, 1, 1, 1]} : vector<8x2x8x32xf32> to vector<8x1x8x32xf32>
    %166 = vector.shape_cast %165 : vector<8x1x8x32xf32> to vector<8x8x32xf32>
    %167 = vector.extract_strided_slice %128 {offsets = [0, 0, 0, 0], sizes = [1, 1, 1, 32], strides = [1, 1, 1, 1]} : vector<3x3x1x32xf32> to vector<1x1x1x32xf32>
    %168 = vector.shape_cast %167 : vector<1x1x1x32xf32> to vector<1x32xf32>
    %169 = vector.shape_cast %168 : vector<1x32xf32> to vector<1x1x32xf32>
    %170 = vector.broadcast %169 : vector<1x1x32xf32> to vector<8x8x32xf32>
    %171 = arith.mulf %166, %170 : vector<8x8x32xf32>
    %c23_56 = arith.constant 23 : index
    %c0_57 = arith.constant 0 : index
    %172 = tpu.strided_load %arg14[%c23_56, %c0_57] {strides = array<i32: 2, 1>} : memref<297x32xf32, #tpu.memory_space<vmem>>, vector<128x32xf32>
    %173 = vector.shape_cast %172 : vector<128x32xf32> to vector<8x2x8x32xf32>
    %174 = vector.extract_strided_slice %173 {offsets = [0, 0, 0, 0], sizes = [8, 1, 8, 32], strides = [1, 1, 1, 1]} : vector<8x2x8x32xf32> to vector<8x1x8x32xf32>
    %175 = vector.shape_cast %174 : vector<8x1x8x32xf32> to vector<8x8x32xf32>
    %176 = vector.extract_strided_slice %128 {offsets = [1, 0, 0, 0], sizes = [1, 1, 1, 32], strides = [1, 1, 1, 1]} : vector<3x3x1x32xf32> to vector<1x1x1x32xf32>
    %177 = vector.shape_cast %176 : vector<1x1x1x32xf32> to vector<1x32xf32>
    %178 = vector.shape_cast %177 : vector<1x32xf32> to vector<1x1x32xf32>
    %179 = vector.broadcast %178 : vector<1x1x32xf32> to vector<8x8x32xf32>
    %180 = arith.mulf %175, %179 : vector<8x8x32xf32>
    %181 = arith.addf %171, %180 : vector<8x8x32xf32>
    %c39_58 = arith.constant 39 : index
    %c0_59 = arith.constant 0 : index
    %182 = tpu.strided_load %arg14[%c39_58, %c0_59] {strides = array<i32: 2, 1>} : memref<297x32xf32, #tpu.memory_space<vmem>>, vector<128x32xf32>
    %183 = vector.shape_cast %182 : vector<128x32xf32> to vector<8x2x8x32xf32>
    %184 = vector.extract_strided_slice %183 {offsets = [0, 0, 0, 0], sizes = [8, 1, 8, 32], strides = [1, 1, 1, 1]} : vector<8x2x8x32xf32> to vector<8x1x8x32xf32>
    %185 = vector.shape_cast %184 : vector<8x1x8x32xf32> to vector<8x8x32xf32>
    %186 = vector.extract_strided_slice %128 {offsets = [2, 0, 0, 0], sizes = [1, 1, 1, 32], strides = [1, 1, 1, 1]} : vector<3x3x1x32xf32> to vector<1x1x1x32xf32>
    %187 = vector.shape_cast %186 : vector<1x1x1x32xf32> to vector<1x32xf32>
    %188 = vector.shape_cast %187 : vector<1x32xf32> to vector<1x1x32xf32>
    %189 = vector.broadcast %188 : vector<1x1x32xf32> to vector<8x8x32xf32>
    %190 = arith.mulf %185, %189 : vector<8x8x32xf32>
    %191 = arith.addf %181, %190 : vector<8x8x32xf32>
    %c9_60 = arith.constant 9 : index
    %c0_61 = arith.constant 0 : index
    %192 = tpu.strided_load %arg14[%c9_60, %c0_61] {strides = array<i32: 2, 1>} : memref<297x32xf32, #tpu.memory_space<vmem>>, vector<128x32xf32>
    %193 = vector.shape_cast %192 : vector<128x32xf32> to vector<8x2x8x32xf32>
    %194 = vector.extract_strided_slice %193 {offsets = [0, 0, 0, 0], sizes = [8, 1, 8, 32], strides = [1, 1, 1, 1]} : vector<8x2x8x32xf32> to vector<8x1x8x32xf32>
    %195 = vector.shape_cast %194 : vector<8x1x8x32xf32> to vector<8x8x32xf32>
    %196 = vector.extract_strided_slice %128 {offsets = [0, 2, 0, 0], sizes = [1, 1, 1, 32], strides = [1, 1, 1, 1]} : vector<3x3x1x32xf32> to vector<1x1x1x32xf32>
    %197 = vector.shape_cast %196 : vector<1x1x1x32xf32> to vector<1x32xf32>
    %198 = vector.shape_cast %197 : vector<1x32xf32> to vector<1x1x32xf32>
    %199 = vector.broadcast %198 : vector<1x1x32xf32> to vector<8x8x32xf32>
    %200 = arith.mulf %195, %199 : vector<8x8x32xf32>
    %c25_62 = arith.constant 25 : index
    %c0_63 = arith.constant 0 : index
    %201 = tpu.strided_load %arg14[%c25_62, %c0_63] {strides = array<i32: 2, 1>} : memref<297x32xf32, #tpu.memory_space<vmem>>, vector<128x32xf32>
    %202 = vector.shape_cast %201 : vector<128x32xf32> to vector<8x2x8x32xf32>
    %203 = vector.extract_strided_slice %202 {offsets = [0, 0, 0, 0], sizes = [8, 1, 8, 32], strides = [1, 1, 1, 1]} : vector<8x2x8x32xf32> to vector<8x1x8x32xf32>
    %204 = vector.shape_cast %203 : vector<8x1x8x32xf32> to vector<8x8x32xf32>
    %205 = vector.extract_strided_slice %128 {offsets = [1, 2, 0, 0], sizes = [1, 1, 1, 32], strides = [1, 1, 1, 1]} : vector<3x3x1x32xf32> to vector<1x1x1x32xf32>
    %206 = vector.shape_cast %205 : vector<1x1x1x32xf32> to vector<1x32xf32>
    %207 = vector.shape_cast %206 : vector<1x32xf32> to vector<1x1x32xf32>
    %208 = vector.broadcast %207 : vector<1x1x32xf32> to vector<8x8x32xf32>
    %209 = arith.mulf %204, %208 : vector<8x8x32xf32>
    %210 = arith.addf %200, %209 : vector<8x8x32xf32>
    %c41_64 = arith.constant 41 : index
    %c0_65 = arith.constant 0 : index
    %211 = tpu.strided_load %arg14[%c41_64, %c0_65] {strides = array<i32: 2, 1>} : memref<297x32xf32, #tpu.memory_space<vmem>>, vector<128x32xf32>
    %212 = vector.shape_cast %211 : vector<128x32xf32> to vector<8x2x8x32xf32>
    %213 = vector.extract_strided_slice %212 {offsets = [0, 0, 0, 0], sizes = [8, 1, 8, 32], strides = [1, 1, 1, 1]} : vector<8x2x8x32xf32> to vector<8x1x8x32xf32>
    %214 = vector.shape_cast %213 : vector<8x1x8x32xf32> to vector<8x8x32xf32>
    %215 = vector.extract_strided_slice %128 {offsets = [2, 2, 0, 0], sizes = [1, 1, 1, 32], strides = [1, 1, 1, 1]} : vector<3x3x1x32xf32> to vector<1x1x1x32xf32>
    %216 = vector.shape_cast %215 : vector<1x1x1x32xf32> to vector<1x32xf32>
    %217 = vector.shape_cast %216 : vector<1x32xf32> to vector<1x1x32xf32>
    %218 = vector.broadcast %217 : vector<1x1x32xf32> to vector<8x8x32xf32>
    %219 = arith.mulf %214, %218 : vector<8x8x32xf32>
    %220 = arith.addf %210, %219 : vector<8x8x32xf32>
    %221 = vector.broadcast %133 : vector<1x8x32xf32> to vector<8x8x32xf32>
    %222 = arith.mulf %191, %221 : vector<8x8x32xf32>
    %223 = arith.addf %162, %222 : vector<8x8x32xf32>
    %224 = arith.addf %223, %220 : vector<8x8x32xf32>
    %c0_66 = arith.constant 0 : index
    %c0_67 = arith.constant 0 : index
    %225 = vector.load %arg9[%c0_66, %c0_67] : memref<1x32xf32, #tpu.memory_space<vmem>>, vector<1x32xf32>
    %226 = vector.shape_cast %225 : vector<1x32xf32> to vector<1x1x32xf32>
    %227 = vector.broadcast %226 : vector<1x1x32xf32> to vector<8x8x32xf32>
    %228 = arith.addf %224, %227 : vector<8x8x32xf32>
    %229 = vector.shape_cast %228 : vector<8x8x32xf32> to vector<64x32xf32>
    %c0_68 = arith.constant 0 : index
    %c0_69 = arith.constant 0 : index
    %230 = vector.load %arg10[%c0_68, %c0_69] : memref<32x32xf32, #tpu.memory_space<vmem>>, vector<32x32xf32>
    %cst_70 = arith.constant dense<0.000000e+00> : vector<64x32xf32>
    %231 = tpu.matmul %229, %230, %cst_70 {dimension_numbers = #tpu.dot_dimension_numbers<[1], [0], [0], [1], [0, 0, 1, 1], [], []>} : vector<64x32xf32>, vector<32x32xf32>, vector<64x32xf32> -> vector<64x32xf32>
    %c0_71 = arith.constant 0 : index
    %c0_72 = arith.constant 0 : index
    %232 = vector.load %arg11[%c0_71, %c0_72] : memref<1x32xf32, #tpu.memory_space<vmem>>, vector<1x32xf32>
    %233 = vector.broadcast %232 : vector<1x32xf32> to vector<64x32xf32>
    %234 = arith.addf %231, %233 : vector<64x32xf32>
    %cst_73 = arith.constant 0.000000e+00 : f32
    %235 = vector.broadcast %cst_73 : f32 to vector<64x32xf32>
    %236 = arith.maximumf %234, %235 : vector<64x32xf32>
    %c0_74 = arith.constant 0 : index
    %c0_75 = arith.constant 0 : index
    %c0_76 = arith.constant 0 : index
    %237 = vector.load %arg12[%c0_74, %c0_75, %c0_76] : memref<1x64x64xf32, #tpu.memory_space<vmem>>, vector<1x64x32xf32>
    %238 = vector.shape_cast %237 : vector<1x64x32xf32> to vector<64x32xf32>
    %239 = vector.shape_cast %115 : vector<64x32xf32> to vector<1x64x32xf32>
    tpu.vector_store %arg12[%c0_74, %c0_75, %c0_76], %239 {strides = array<i32>} : memref<1x64x64xf32, #tpu.memory_space<vmem>>, vector<1x64x32xf32>,
    %c0_77 = arith.constant 0 : index
    %c0_78 = arith.constant 0 : index
    %c32 = arith.constant 32 : index
    %240 = vector.load %arg12[%c0_77, %c0_78, %c32] : memref<1x64x64xf32, #tpu.memory_space<vmem>>, vector<1x64x32xf32>
    %241 = vector.shape_cast %240 : vector<1x64x32xf32> to vector<64x32xf32>
    %242 = vector.shape_cast %236 : vector<64x32xf32> to vector<1x64x32xf32>
    tpu.vector_store %arg12[%c0_77, %c0_78, %c32], %242 {strides = array<i32>} : memref<1x64x64xf32, #tpu.memory_space<vmem>>, vector<1x64x32xf32>,
    return
  }
  func.func @transform_0(%arg0: i32) -> (i32, i32, i32) {
    %c0_i32 = arith.constant 0 : i32
    %c0_i32_0 = arith.constant 0 : i32
    %c0_i32_1 = arith.constant 0 : i32
    return %arg0, %c0_i32, %c0_i32_0 : i32, i32, i32
  }
  func.func @transform_1(%arg0: i32) -> (i32, i32, i32, i32) {
    %c0_i32 = arith.constant 0 : i32
    %c0_i32_0 = arith.constant 0 : i32
    %c0_i32_1 = arith.constant 0 : i32
    %c0_i32_2 = arith.constant 0 : i32
    %c0_i32_3 = arith.constant 0 : i32
    return %c0_i32, %c0_i32_0, %c0_i32_1, %c0_i32_2 : i32, i32, i32, i32
  }
  func.func @transform_2(%arg0: i32) -> (i32, i32) {
    %c0_i32 = arith.constant 0 : i32
    %c0_i32_0 = arith.constant 0 : i32
    %c0_i32_1 = arith.constant 0 : i32
    return %c0_i32, %c0_i32_0 : i32, i32
  }
  func.func @transform_3(%arg0: i32) -> (i32, i32) {
    %c0_i32 = arith.constant 0 : i32
    %c0_i32_0 = arith.constant 0 : i32
    %c0_i32_1 = arith.constant 0 : i32
    return %c0_i32, %c0_i32_0 : i32, i32
  }
  func.func @transform_4(%arg0: i32) -> (i32, i32) {
    %c0_i32 = arith.constant 0 : i32
    %c0_i32_0 = arith.constant 0 : i32
    %c0_i32_1 = arith.constant 0 : i32
    return %c0_i32, %c0_i32_0 : i32, i32
  }
  func.func @transform_5(%arg0: i32) -> (i32, i32) {
    %c0_i32 = arith.constant 0 : i32
    %c0_i32_0 = arith.constant 0 : i32
    %c0_i32_1 = arith.constant 0 : i32
    return %c0_i32, %c0_i32_0 : i32, i32
  }
  func.func @transform_6(%arg0: i32) -> (i32, i32) {
    %c0_i32 = arith.constant 0 : i32
    %c0_i32_0 = arith.constant 0 : i32
    %c0_i32_1 = arith.constant 0 : i32
    return %c0_i32, %c0_i32_0 : i32, i32
  }
  func.func @transform_7(%arg0: i32) -> (i32, i32, i32, i32) {
    %c0_i32 = arith.constant 0 : i32
    %c0_i32_0 = arith.constant 0 : i32
    %c0_i32_1 = arith.constant 0 : i32
    %c0_i32_2 = arith.constant 0 : i32
    %c0_i32_3 = arith.constant 0 : i32
    return %c0_i32, %c0_i32_0, %c0_i32_1, %c0_i32_2 : i32, i32, i32, i32
  }
  func.func @transform_8(%arg0: i32) -> (i32, i32) {
    %c0_i32 = arith.constant 0 : i32
    %c0_i32_0 = arith.constant 0 : i32
    %c0_i32_1 = arith.constant 0 : i32
    return %c0_i32, %c0_i32_0 : i32, i32
  }
  func.func @transform_9(%arg0: i32) -> (i32, i32) {
    %c0_i32 = arith.constant 0 : i32
    %c0_i32_0 = arith.constant 0 : i32
    %c0_i32_1 = arith.constant 0 : i32
    return %c0_i32, %c0_i32_0 : i32, i32
  }
  func.func @transform_10(%arg0: i32) -> (i32, i32) {
    %c0_i32 = arith.constant 0 : i32
    %c0_i32_0 = arith.constant 0 : i32
    %c0_i32_1 = arith.constant 0 : i32
    return %c0_i32, %c0_i32_0 : i32, i32
  }
  func.func @transform_11(%arg0: i32) -> (i32, i32, i32) {
    %c0_i32 = arith.constant 0 : i32
    %c0_i32_0 = arith.constant 0 : i32
    %c0_i32_1 = arith.constant 0 : i32
    return %arg0, %c0_i32, %c0_i32_0 : i32, i32, i32
  }
}

module attributes {stable_mosaic.version = 11 : i64} {
  func.func @_block_s1_kernel(%arg0: i32, %arg1: memref<1x64x64xf32, #tpu.memory_space<vmem>>, %arg2: memref<32x32xf32, #tpu.memory_space<vmem>>, %arg3: memref<1x32xf32, #tpu.memory_space<vmem>>, %arg4: memref<3x3x1x32xf32, #tpu.memory_space<vmem>>, %arg5: memref<1x32xf32, #tpu.memory_space<vmem>>, %arg6: memref<32x32xf32, #tpu.memory_space<vmem>>, %arg7: memref<1x32xf32, #tpu.memory_space<vmem>>, %arg8: memref<1x64x64xf32, #tpu.memory_space<vmem>>, %arg9: memref<89x32xf32, #tpu.memory_space<vmem>>) attributes {dimension_semantics = [#tpu.dimension_semantics<parallel>], iteration_bounds = array<i64: 2>, scalar_prefetch = 0 : i64, scratch_operands = 1 : i64, tpu.core_type = #tpu.core_type<tc>, window_params = [{transform_indices = @transform_0, window_bounds = array<i64: 1, 64, 64>}, {pipeline_mode = #tpu.pipeline_mode<synchronous>, transform_indices = @transform_1, window_bounds = array<i64: 32, 32>}, {pipeline_mode = #tpu.pipeline_mode<synchronous>, transform_indices = @transform_2, window_bounds = array<i64: 1, 32>}, {pipeline_mode = #tpu.pipeline_mode<synchronous>, transform_indices = @transform_3, window_bounds = array<i64: 3, 3, 1, 32>}, {pipeline_mode = #tpu.pipeline_mode<synchronous>, transform_indices = @transform_4, window_bounds = array<i64: 1, 32>}, {pipeline_mode = #tpu.pipeline_mode<synchronous>, transform_indices = @transform_5, window_bounds = array<i64: 32, 32>}, {pipeline_mode = #tpu.pipeline_mode<synchronous>, transform_indices = @transform_6, window_bounds = array<i64: 1, 32>}, {transform_indices = @transform_7, window_bounds = array<i64: 1, 64, 64>}]} {
    %c0 = arith.constant 0 : index
    %c0_0 = arith.constant 0 : index
    %c0_1 = arith.constant 0 : index
    %0 = vector.load %arg1[%c0, %c0_0, %c0_1] : memref<1x64x64xf32, #tpu.memory_space<vmem>>, vector<1x64x64xf32>
    %1 = vector.shape_cast %0 : vector<1x64x64xf32> to vector<64x64xf32>
    %2 = vector.extract_strided_slice %1 {offsets = [0, 32], sizes = [64, 32], strides = [1, 1]} : vector<64x64xf32> to vector<64x32xf32>
    %c0_2 = arith.constant 0 : index
    %c0_3 = arith.constant 0 : index
    %3 = vector.load %arg2[%c0_2, %c0_3] : memref<32x32xf32, #tpu.memory_space<vmem>>, vector<32x32xf32>
    %cst = arith.constant dense<0.000000e+00> : vector<64x32xf32>
    %4 = tpu.matmul %2, %3, %cst {dimension_numbers = #tpu.dot_dimension_numbers<[1], [0], [0], [1], [0, 0, 1, 1], [], []>} : vector<64x32xf32>, vector<32x32xf32>, vector<64x32xf32> -> vector<64x32xf32>
    %c0_4 = arith.constant 0 : index
    %c0_5 = arith.constant 0 : index
    %5 = vector.load %arg3[%c0_4, %c0_5] : memref<1x32xf32, #tpu.memory_space<vmem>>, vector<1x32xf32>
    %6 = vector.broadcast %5 : vector<1x32xf32> to vector<64x32xf32>
    %7 = arith.addf %4, %6 : vector<64x32xf32>
    %cst_6 = arith.constant 0.000000e+00 : f32
    %8 = vector.broadcast %cst_6 : f32 to vector<64x32xf32>
    %9 = arith.maximumf %7, %8 : vector<64x32xf32>
    %cst_7 = arith.constant 0.000000e+00 : f32
    %10 = vector.broadcast %cst_7 : f32 to vector<16x32xf32>
    %c0_8 = arith.constant 0 : index
    %c0_9 = arith.constant 0 : index
    %11 = vector.load %arg9[%c0_8, %c0_9] : memref<89x32xf32, #tpu.memory_space<vmem>>, vector<16x32xf32>
    tpu.vector_store %arg9[%c0_8, %c0_9], %10 {strides = array<i32>} : memref<89x32xf32, #tpu.memory_space<vmem>>, vector<16x32xf32>,
    %cst_10 = arith.constant 0.000000e+00 : f32
    %12 = vector.broadcast %cst_10 : f32 to vector<9x32xf32>
    %c80 = arith.constant 80 : index
    %c0_11 = arith.constant 0 : index
    %13 = vector.load %arg9[%c80, %c0_11] : memref<89x32xf32, #tpu.memory_space<vmem>>, vector<9x32xf32>
    tpu.vector_store %arg9[%c80, %c0_11], %12 {strides = array<i32>} : memref<89x32xf32, #tpu.memory_space<vmem>>, vector<9x32xf32>,
    %c16 = arith.constant 16 : index
    %c0_12 = arith.constant 0 : index
    %14 = vector.load %arg9[%c16, %c0_12] : memref<89x32xf32, #tpu.memory_space<vmem>>, vector<64x32xf32>
    tpu.vector_store %arg9[%c16, %c0_12], %9 {strides = array<i32>} : memref<89x32xf32, #tpu.memory_space<vmem>>, vector<64x32xf32>,
    %c0_13 = arith.constant 0 : index
    %c0_14 = arith.constant 0 : index
    %c0_15 = arith.constant 0 : index
    %c0_16 = arith.constant 0 : index
    %15 = vector.load %arg4[%c0_13, %c0_14, %c0_15, %c0_16] : memref<3x3x1x32xf32, #tpu.memory_space<vmem>>, vector<3x3x1x32xf32>
    %16 = tpu.iota {dimensions = array<i32: 1>} : vector<8x8x32xi32>
    %17 = vector.shape_cast %16 : vector<8x8x32xi32> to vector<64x32xi32>
    %c1_i32 = arith.constant 1 : i32
    %18 = vector.broadcast %c1_i32 : i32 to vector<64x32xi32>
    %19 = arith.cmpi sge, %17, %18 : vector<64x32xi32>
    %20 = arith.extui %19 : vector<64x32xi1> to vector<64x32xi32>
    %21 = arith.sitofp %20 : vector<64x32xi32> to vector<64x32xf32>
    %c6_i32 = arith.constant 6 : i32
    %22 = vector.broadcast %c6_i32 : i32 to vector<64x32xi32>
    %23 = arith.cmpi sle, %17, %22 : vector<64x32xi32>
    %24 = arith.extui %23 : vector<64x32xi1> to vector<64x32xi32>
    %25 = arith.sitofp %24 : vector<64x32xi32> to vector<64x32xf32>
    %c8 = arith.constant 8 : index
    %c0_17 = arith.constant 0 : index
    %26 = vector.load %arg9[%c8, %c0_17] : memref<89x32xf32, #tpu.memory_space<vmem>>, vector<64x32xf32>
    %27 = vector.extract_strided_slice %15 {offsets = [0, 1, 0, 0], sizes = [1, 1, 1, 32], strides = [1, 1, 1, 1]} : vector<3x3x1x32xf32> to vector<1x1x1x32xf32>
    %28 = vector.shape_cast %27 : vector<1x1x1x32xf32> to vector<1x32xf32>
    %29 = vector.broadcast %28 : vector<1x32xf32> to vector<64x32xf32>
    %30 = arith.mulf %26, %29 : vector<64x32xf32>
    %c16_18 = arith.constant 16 : index
    %c0_19 = arith.constant 0 : index
    %31 = vector.load %arg9[%c16_18, %c0_19] : memref<89x32xf32, #tpu.memory_space<vmem>>, vector<64x32xf32>
    %32 = vector.extract_strided_slice %15 {offsets = [1, 1, 0, 0], sizes = [1, 1, 1, 32], strides = [1, 1, 1, 1]} : vector<3x3x1x32xf32> to vector<1x1x1x32xf32>
    %33 = vector.shape_cast %32 : vector<1x1x1x32xf32> to vector<1x32xf32>
    %34 = vector.broadcast %33 : vector<1x32xf32> to vector<64x32xf32>
    %35 = arith.mulf %31, %34 : vector<64x32xf32>
    %36 = arith.addf %30, %35 : vector<64x32xf32>
    %c24 = arith.constant 24 : index
    %c0_20 = arith.constant 0 : index
    %37 = vector.load %arg9[%c24, %c0_20] : memref<89x32xf32, #tpu.memory_space<vmem>>, vector<64x32xf32>
    %38 = vector.extract_strided_slice %15 {offsets = [2, 1, 0, 0], sizes = [1, 1, 1, 32], strides = [1, 1, 1, 1]} : vector<3x3x1x32xf32> to vector<1x1x1x32xf32>
    %39 = vector.shape_cast %38 : vector<1x1x1x32xf32> to vector<1x32xf32>
    %40 = vector.broadcast %39 : vector<1x32xf32> to vector<64x32xf32>
    %41 = arith.mulf %37, %40 : vector<64x32xf32>
    %42 = arith.addf %36, %41 : vector<64x32xf32>
    %c7 = arith.constant 7 : index
    %c0_21 = arith.constant 0 : index
    %43 = vector.load %arg9[%c7, %c0_21] : memref<89x32xf32, #tpu.memory_space<vmem>>, vector<64x32xf32>
    %44 = vector.extract_strided_slice %15 {offsets = [0, 0, 0, 0], sizes = [1, 1, 1, 32], strides = [1, 1, 1, 1]} : vector<3x3x1x32xf32> to vector<1x1x1x32xf32>
    %45 = vector.shape_cast %44 : vector<1x1x1x32xf32> to vector<1x32xf32>
    %46 = vector.broadcast %45 : vector<1x32xf32> to vector<64x32xf32>
    %47 = arith.mulf %43, %46 : vector<64x32xf32>
    %c15 = arith.constant 15 : index
    %c0_22 = arith.constant 0 : index
    %48 = vector.load %arg9[%c15, %c0_22] : memref<89x32xf32, #tpu.memory_space<vmem>>, vector<64x32xf32>
    %49 = vector.extract_strided_slice %15 {offsets = [1, 0, 0, 0], sizes = [1, 1, 1, 32], strides = [1, 1, 1, 1]} : vector<3x3x1x32xf32> to vector<1x1x1x32xf32>
    %50 = vector.shape_cast %49 : vector<1x1x1x32xf32> to vector<1x32xf32>
    %51 = vector.broadcast %50 : vector<1x32xf32> to vector<64x32xf32>
    %52 = arith.mulf %48, %51 : vector<64x32xf32>
    %53 = arith.addf %47, %52 : vector<64x32xf32>
    %c23 = arith.constant 23 : index
    %c0_23 = arith.constant 0 : index
    %54 = vector.load %arg9[%c23, %c0_23] : memref<89x32xf32, #tpu.memory_space<vmem>>, vector<64x32xf32>
    %55 = vector.extract_strided_slice %15 {offsets = [2, 0, 0, 0], sizes = [1, 1, 1, 32], strides = [1, 1, 1, 1]} : vector<3x3x1x32xf32> to vector<1x1x1x32xf32>
    %56 = vector.shape_cast %55 : vector<1x1x1x32xf32> to vector<1x32xf32>
    %57 = vector.broadcast %56 : vector<1x32xf32> to vector<64x32xf32>
    %58 = arith.mulf %54, %57 : vector<64x32xf32>
    %59 = arith.addf %53, %58 : vector<64x32xf32>
    %c9 = arith.constant 9 : index
    %c0_24 = arith.constant 0 : index
    %60 = vector.load %arg9[%c9, %c0_24] : memref<89x32xf32, #tpu.memory_space<vmem>>, vector<64x32xf32>
    %61 = vector.extract_strided_slice %15 {offsets = [0, 2, 0, 0], sizes = [1, 1, 1, 32], strides = [1, 1, 1, 1]} : vector<3x3x1x32xf32> to vector<1x1x1x32xf32>
    %62 = vector.shape_cast %61 : vector<1x1x1x32xf32> to vector<1x32xf32>
    %63 = vector.broadcast %62 : vector<1x32xf32> to vector<64x32xf32>
    %64 = arith.mulf %60, %63 : vector<64x32xf32>
    %c17 = arith.constant 17 : index
    %c0_25 = arith.constant 0 : index
    %65 = vector.load %arg9[%c17, %c0_25] : memref<89x32xf32, #tpu.memory_space<vmem>>, vector<64x32xf32>
    %66 = vector.extract_strided_slice %15 {offsets = [1, 2, 0, 0], sizes = [1, 1, 1, 32], strides = [1, 1, 1, 1]} : vector<3x3x1x32xf32> to vector<1x1x1x32xf32>
    %67 = vector.shape_cast %66 : vector<1x1x1x32xf32> to vector<1x32xf32>
    %68 = vector.broadcast %67 : vector<1x32xf32> to vector<64x32xf32>
    %69 = arith.mulf %65, %68 : vector<64x32xf32>
    %70 = arith.addf %64, %69 : vector<64x32xf32>
    %c25 = arith.constant 25 : index
    %c0_26 = arith.constant 0 : index
    %71 = vector.load %arg9[%c25, %c0_26] : memref<89x32xf32, #tpu.memory_space<vmem>>, vector<64x32xf32>
    %72 = vector.extract_strided_slice %15 {offsets = [2, 2, 0, 0], sizes = [1, 1, 1, 32], strides = [1, 1, 1, 1]} : vector<3x3x1x32xf32> to vector<1x1x1x32xf32>
    %73 = vector.shape_cast %72 : vector<1x1x1x32xf32> to vector<1x32xf32>
    %74 = vector.broadcast %73 : vector<1x32xf32> to vector<64x32xf32>
    %75 = arith.mulf %71, %74 : vector<64x32xf32>
    %76 = arith.addf %70, %75 : vector<64x32xf32>
    %77 = arith.mulf %59, %21 : vector<64x32xf32>
    %78 = arith.addf %42, %77 : vector<64x32xf32>
    %79 = arith.mulf %76, %25 : vector<64x32xf32>
    %80 = arith.addf %78, %79 : vector<64x32xf32>
    %c0_27 = arith.constant 0 : index
    %c0_28 = arith.constant 0 : index
    %81 = vector.load %arg5[%c0_27, %c0_28] : memref<1x32xf32, #tpu.memory_space<vmem>>, vector<1x32xf32>
    %82 = vector.broadcast %81 : vector<1x32xf32> to vector<64x32xf32>
    %83 = arith.addf %80, %82 : vector<64x32xf32>
    %c0_29 = arith.constant 0 : index
    %c0_30 = arith.constant 0 : index
    %84 = vector.load %arg6[%c0_29, %c0_30] : memref<32x32xf32, #tpu.memory_space<vmem>>, vector<32x32xf32>
    %cst_31 = arith.constant dense<0.000000e+00> : vector<64x32xf32>
    %85 = tpu.matmul %83, %84, %cst_31 {dimension_numbers = #tpu.dot_dimension_numbers<[1], [0], [0], [1], [0, 0, 1, 1], [], []>} : vector<64x32xf32>, vector<32x32xf32>, vector<64x32xf32> -> vector<64x32xf32>
    %c0_32 = arith.constant 0 : index
    %c0_33 = arith.constant 0 : index
    %86 = vector.load %arg7[%c0_32, %c0_33] : memref<1x32xf32, #tpu.memory_space<vmem>>, vector<1x32xf32>
    %87 = vector.broadcast %86 : vector<1x32xf32> to vector<64x32xf32>
    %88 = arith.addf %85, %87 : vector<64x32xf32>
    %cst_34 = arith.constant 0.000000e+00 : f32
    %89 = vector.broadcast %cst_34 : f32 to vector<64x32xf32>
    %90 = arith.maximumf %88, %89 : vector<64x32xf32>
    %91 = vector.extract_strided_slice %1 {offsets = [0, 0], sizes = [64, 32], strides = [1, 1]} : vector<64x64xf32> to vector<64x32xf32>
    %c0_35 = arith.constant 0 : index
    %c0_36 = arith.constant 0 : index
    %c0_37 = arith.constant 0 : index
    %92 = vector.load %arg8[%c0_35, %c0_36, %c0_37] : memref<1x64x64xf32, #tpu.memory_space<vmem>>, vector<1x64x32xf32>
    %93 = vector.shape_cast %92 : vector<1x64x32xf32> to vector<64x32xf32>
    %94 = vector.shape_cast %91 : vector<64x32xf32> to vector<1x64x32xf32>
    tpu.vector_store %arg8[%c0_35, %c0_36, %c0_37], %94 {strides = array<i32>} : memref<1x64x64xf32, #tpu.memory_space<vmem>>, vector<1x64x32xf32>,
    %c0_38 = arith.constant 0 : index
    %c0_39 = arith.constant 0 : index
    %c32 = arith.constant 32 : index
    %95 = vector.load %arg8[%c0_38, %c0_39, %c32] : memref<1x64x64xf32, #tpu.memory_space<vmem>>, vector<1x64x32xf32>
    %96 = vector.shape_cast %95 : vector<1x64x32xf32> to vector<64x32xf32>
    %97 = vector.shape_cast %90 : vector<64x32xf32> to vector<1x64x32xf32>
    tpu.vector_store %arg8[%c0_38, %c0_39, %c32], %97 {strides = array<i32>} : memref<1x64x64xf32, #tpu.memory_space<vmem>>, vector<1x64x32xf32>,
    return
  }
  func.func @transform_0(%arg0: i32) -> (i32, i32, i32) {
    %c0_i32 = arith.constant 0 : i32
    %c0_i32_0 = arith.constant 0 : i32
    %c0_i32_1 = arith.constant 0 : i32
    return %arg0, %c0_i32, %c0_i32_0 : i32, i32, i32
  }
  func.func @transform_1(%arg0: i32) -> (i32, i32) {
    %c0_i32 = arith.constant 0 : i32
    %c0_i32_0 = arith.constant 0 : i32
    %c0_i32_1 = arith.constant 0 : i32
    return %c0_i32, %c0_i32_0 : i32, i32
  }
  func.func @transform_2(%arg0: i32) -> (i32, i32) {
    %c0_i32 = arith.constant 0 : i32
    %c0_i32_0 = arith.constant 0 : i32
    %c0_i32_1 = arith.constant 0 : i32
    return %c0_i32, %c0_i32_0 : i32, i32
  }
  func.func @transform_3(%arg0: i32) -> (i32, i32, i32, i32) {
    %c0_i32 = arith.constant 0 : i32
    %c0_i32_0 = arith.constant 0 : i32
    %c0_i32_1 = arith.constant 0 : i32
    %c0_i32_2 = arith.constant 0 : i32
    %c0_i32_3 = arith.constant 0 : i32
    return %c0_i32, %c0_i32_0, %c0_i32_1, %c0_i32_2 : i32, i32, i32, i32
  }
  func.func @transform_4(%arg0: i32) -> (i32, i32) {
    %c0_i32 = arith.constant 0 : i32
    %c0_i32_0 = arith.constant 0 : i32
    %c0_i32_1 = arith.constant 0 : i32
    return %c0_i32, %c0_i32_0 : i32, i32
  }
  func.func @transform_5(%arg0: i32) -> (i32, i32) {
    %c0_i32 = arith.constant 0 : i32
    %c0_i32_0 = arith.constant 0 : i32
    %c0_i32_1 = arith.constant 0 : i32
    return %c0_i32, %c0_i32_0 : i32, i32
  }
  func.func @transform_6(%arg0: i32) -> (i32, i32) {
    %c0_i32 = arith.constant 0 : i32
    %c0_i32_0 = arith.constant 0 : i32
    %c0_i32_1 = arith.constant 0 : i32
    return %c0_i32, %c0_i32_0 : i32, i32
  }
  func.func @transform_7(%arg0: i32) -> (i32, i32, i32) {
    %c0_i32 = arith.constant 0 : i32
    %c0_i32_0 = arith.constant 0 : i32
    %c0_i32_1 = arith.constant 0 : i32
    return %arg0, %c0_i32, %c0_i32_0 : i32, i32, i32
  }
}

</mosaic_0001>

<bundles_post_ra>
// kernel: fwd.3
= control target key start
LH: loop header
LB: loop body
LE: loop exit
PB: predicated region body
PF: predicated region fallthrough
CT: control target
= control target key end

     0   :  { %s934_s24 = smov 0   ;;  %s1247_s0 = inlined_call_operand.vmem [shape: f32[2,64,64], index: 0, kind: input, shape index: {}]   ;;  %s1248_s1 = inlined_call_operand.vmem [shape: f32[32,32], index: 1, kind: input, shape index: {}]   ;;  %s1249_s2 = inlined_call_operand.vmem [shape: f32[1,32], index: 2, kind: input, shape index: {}]   ;;  %s1250_s3 = inlined_call_operand.vmem [shape: f32[3,3,1,32], index: 3, kind: input, shape index: {}]   ;;  %s1251_s4 = inlined_call_operand.vmem [shape: f32[1,32], index: 4, kind: input, shape index: {}]   ;;  %s1252_s5 = inlined_call_operand.vmem [shape: f32[32,32], index: 5, kind: input, shape index: {}]   ;;  %s1253_s6 = inlined_call_operand.vmem [shape: f32[1,32], index: 6, kind: input, shape index: {}]   ;;  %s1254_s7 = inlined_call_operand.vmem [shape: f32[2,64,64], index: 7, kind: output, shape index: {}]  }
   0x1 LB: > { %s821_s25 = sadd.s32 4294967295, %s889_s24   ;;  %p825_p0 = scmp.ge.s32.totalorder %s889_s24, 1  ;;  %s889_s24 = sphi %s934_s24, %s17_s24  }
   0x2   : > { %p237_p1 = scmp.lt.s32.totalorder %s889_s24, 3 }
   0x4   : > { %p238_p2 = pnand %p825_p0, %p237_p1 }
   0x5   : > { %p269_p3 = scmp.lt.s32.totalorder (!%p238_p2), %s821_s25, 1  ;;  %s891_s18 = smov (!%p238_p2), 96  }
   0x6   : > { %241 = sbr.rel (%p238_p2) target bundleno = 584 (0x248), region = 48  ;;  %s893_s8 = smov (!%p238_p2), 32  }
   0xb   : > { %v290_v0 = vld [vmem:[%s1248_s1 + $0x18] sm:$0xff]  ;;  %v289_v1 = vld [vmem:[%s1248_s1 + $0x10] sm:$0xff]  ;;  %s1256_s25 = smov (!%p269_p3, %s821_s25), 1  ;;  %v288_v2 = vld [vmem:[%s1248_s1 + $0x8] sm:$0xff]  ;;  %vm319_vm0 = vcmask 261120   ;;  %v892_v20 = vmov 0.0   ;;  %v407_v33 = vlaneseq }
   0xc   : > { %348 = vmatpush.msra.mxu0 %v290_v0  ;;  %852 = vmatpush.msra.mxu2 %v290_v0  ;;  %s850_s9 = sshll.u32 %s1256_s25, 6  ;;  %v287_v3 = vld [vmem:[%s1248_s1] sm:$0xff]  ;;  %385 = vst.msk [vmem:[#allocation2] sm:$0xff] %vm319_vm0, %v892_v20  ;;  %v639_v22 = vld [vmem:[%s1252_s5 + $0x18] sm:$0xff]  ;;  %v638_v25 = vld [vmem:[%s1252_s5 + $0x10] sm:$0xff]  ;;  %vm388_vm1 = vcmask 253952  }
   0xd   : > { %s273_s14 = scalar_lea.vmem %s1247_s0, %s850_s9  ;;  %s960_s17 = scalar_lea.vmem %s1254_s7, %s850_s9  ;;  %386 = vst.msk [vmem:[#allocation2 + $0x8] sm:$0xff] %vm319_vm0, %v892_v20  ;;  %v995_v21 = vld [vmem:[%s1249_s2] ss:$0 sm:$0xff]  ;;  %680 = vmatpush.msra.mxu1 %v639_v22  ;;  %856 = vmatpush.msra.mxu3 %v639_v22  ;;  %v637_v27 = vld [vmem:[%s1252_s5 + $0x8] sm:$0xff]  ;;  %v1022_v35 = vld [vmem:[%s1250_s3 + $0x3] ss:$0 sm:$0xff] }
   0xe   : > { %349 = vmatpush.msra.mxu0 %v289_v1  ;;  %853 = vmatpush.msra.mxu2 %v289_v1  ;;  %v279_v4 = vld [vmem:[%s273_s14] sm:$0xff]  ;;  %v280_v5 = vld [vmem:[%s273_s14 + $0x8] sm:$0xff]  ;;  %v281_v7 = vld [vmem:[%s273_s14 + $0x10] sm:$0xff]  ;;  %387 = vst.msk [vmem:[#allocation2 + $0x50] sm:$0xff] %vm319_vm0, %v892_v20  ;;  %v408_v43 = vshrl.u32 %v407_v33, 7  ;;  %vm757_vm4 = vcmask 523520  }
   0xf   : > { %303 = vrot.lane.b32.xlu0 %v279_v4, %s891_s18  ;;  %717 = vst.msk [vmem:[%s960_s17] sm:$0xff] %vm319_vm0, %v279_v4  ;;  %305 = vrot.lane.b32.xlu1 %v280_v5, %s891_s18  ;;  %v283_v6 = vld [vmem:[%s273_s14 + $0x20] sm:$0xff] }
  0x10   : > { %350 = vmatpush.msra.mxu0 %v288_v2  ;;  %854 = vmatpush.msra.mxu2 %v288_v2  ;;  %718 = vst.msk [vmem:[%s960_s17 + $0x8] sm:$0xff] %vm319_vm0, %v280_v5  ;;  %v284_v8 = vld [vmem:[%s273_s14 + $0x28] sm:$0xff]  ;;  %v282_v9 = vld [vmem:[%s273_s14 + $0x18] sm:$0xff]  ;;  %v285_v11 = vld [vmem:[%s273_s14 + $0x30] sm:$0xff]  ;;  %vm409_vm2 = vcmp.ge.s32.totalorder %v408_v43, 1  ;;  %vm412_vm3 = vcmp.le.s32.totalorder %v408_v43, 6 }
  0x11   : > { %721 = vst.msk [vmem:[%s960_s17 + $0x20] sm:$0xff] %vm319_vm0, %v283_v6  ;;  %307 = vrot.lane.b32.xlu2 %v281_v7, %s891_s18  ;;  %v286_v10 = vld [vmem:[%s273_s14 + $0x38] sm:$0xff]  ;;  %681 = vmatpush.msra.mxu1 %v638_v25  ;;  %v636_v28 = vld [vmem:[%s1252_s5] sm:$0xff]  ;;  %v1065_v2 = vsel %vm409_vm2, 1.0, %v892_v20 }
  0x12   : > { %351 = vmatpush.msra.mxu0 %v287_v3  ;;  %855 = vmatpush.msra.mxu2 %v287_v3  ;;  %722 = vst.msk [vmem:[%s960_s17 + $0x28] sm:$0xff] %vm319_vm0, %v284_v8  ;;  %v1016_v32 = vld [vmem:[%s1250_s3] ss:$0 sm:$0xff]  ;;  %v1031_v45 = vld [vmem:[%s1250_s3 + $0x6] ss:$0 sm:$0xff] }
  0x13   : > { %720 = vst.msk [vmem:[%s960_s17 + $0x18] sm:$0xff] %vm319_vm0, %v282_v9  ;;  %857 = vmatpush.msra.mxu3 %v638_v25  ;;  %682 = vmatpush.msra.mxu1 %v637_v27  ;;  %v1036_v46 = vld [vmem:[%s1250_s3 + $0x1] ss:$0 sm:$0xff]  ;;  %v1041_v47 = vld [vmem:[%s1250_s3 + $0x4] ss:$0 sm:$0xff] }
  0x14   : > { %724 = vst.msk [vmem:[%s960_s17 + $0x38] sm:$0xff] %vm319_vm0, %v286_v10  ;;  %v474_v34 = vld [vmem:[#allocation2 + $0x7] sm:$0xff]  ;;  %v1052_v53 = vld [vmem:[%s1250_s3 + $0x5] ss:$0 sm:$0xff]  ;;  %v1061_v61 = vld [vmem:[%s1250_s3 + $0x2] ss:$0 sm:$0xff] }
  0x15   : > { %719 = vst.msk [vmem:[%s960_s17 + $0x10] sm:$0xff] %vm319_vm0, %v281_v7  ;;  %858 = vmatpush.msra.mxu3 %v637_v27  ;;  %683 = vmatpush.msra.mxu1 %v636_v28  ;;  %v485_v40 = vmul.f32 %v1016_v32, %v474_v34  ;;  %v415_v49 = vld [vmem:[#allocation2 + $0x8] sm:$0xff]  ;;  %v1047_v51 = vld [vmem:[%s1250_s3 + $0x7] ss:$0 sm:$0xff]  ;;  %v1071_v7 = vsel %vm412_vm3, 1.0, %v892_v20 }
  0x16   : > { %723 = vst.msk [vmem:[%s960_s17 + $0x30] sm:$0xff] %vm319_vm0, %v285_v11  ;;  %v426_v59 = vmul.f32 %v1036_v46, %v415_v49 }
  0x17   : > { %311 = vrot.lane.b32.xlu0 %v283_v6, %s891_s18  ;;  %313 = vrot.lane.b32.xlu1 %v284_v8, %s891_s18  ;;  %389 = vst.msk [vmem:[#allocation2 + $0x58] sm:$0x1] %vm388_vm1, %v892_v20  ;;  %v1076_v8 = vld [vmem:[%s1250_s3 + $0x8] ss:$0 sm:$0xff] }
  0x18   : > { %859 = vmatpush.msra.mxu3 %v636_v28 }
  0x19   : > { %315 = vrot.lane.b32.xlu2 %v285_v11, %s891_s18 }
  0x1f   : > { %309 = vrot.lane.b32.xlu0 %v282_v9, %s891_s18  ;;  %317 = vrot.lane.b32.xlu1 %v286_v10, %s891_s18 }
  0x6b   : > { %v308_v15 = vpop.permute.xlu2 %307 }
  0x73   : > { %v316_v17 = vpop.permute.xlu2 %315 }
  0x81   : > { %v304_v12 = vpop.permute.xlu0 %303  ;;  %v306_v13 = vpop.permute.xlu1 %305 }
  0x82   : > { %830 = vmatmul.msk.f32.vlgmr.msra.gmra.mxu0 %vm319_vm0, %v304_v12 }
  0x89   : > { %v312_v14 = vpop.permute.xlu0 %311  ;;  %v314_v16 = vpop.permute.xlu1 %313 }
  0x8a   : > { %831 = vmatmul.msk.f32.gmra.mxu0 %vm319_vm0, %v306_v13  ;;  %834 = vmatmul.msk.f32.vlgmr.msra.gmra.mxu2 %vm319_vm0, %v312_v14 }
  0x91   : > { %v310_v18 = vpop.permute.xlu0 %309  ;;  %v318_v19 = vpop.permute.xlu1 %317 }
  0x92   : > { %832 = vmatmul.msk.f32.gmra.mxu0 %vm319_vm0, %v308_v15  ;;  %835 = vmatmul.msk.f32.gmra.mxu2 %vm319_vm0, %v314_v16 }
  0x9a   : > { %833 = vmatmul.msk.f32.gmra.mxu0 %vm319_vm0, %v310_v18  ;;  %836 = vmatmul.msk.f32.gmra.mxu2 %vm319_vm0, %v316_v17 }
  0xa2   : > { %837 = vmatmul.msk.f32.gmra.mxu2 %vm319_vm0, %v318_v19 }
  0xff   : > { %v353_v23 = vpop.f32.mrf.mxu0 }
 0x100   : > { %v354_v24 = vadd.f32 %v995_v21, %v353_v23 }
 0x102   : > { %v377_v26 = vmax.f32 %v354_v24, 0.0 }
 0x104   : > { %390 = vst.msk [vmem:[#allocation2 + $0x10] sm:$0xff] %vm319_vm0, %v377_v26 }
 0x107   : > { %v356_v29 = vpop.f32.mrf.mxu0 }
 0x108   : > { %v357_v30 = vadd.f32 %v995_v21, %v356_v29 }
 0x10a   : > { %v378_v31 = vmax.f32 %v357_v30, 0.0 }
 0x10b   : > { %v475_v37 = vld [vmem:[#allocation2 + $0xf] sm:$0xff] }
 0x10c   : > { %391 = vst.msk [vmem:[#allocation2 + $0x18] sm:$0xff] %vm319_vm0, %v378_v31  ;;  %v497_v44 = vmul.f32 %v1022_v35, %v475_v37  ;;  %v416_v50 = vld [vmem:[#allocation2 + $0x10] sm:$0xff]  ;;  %v486_v16 = vmul.f32 %v1016_v32, %v475_v37 }
 0x10d   : > { %v365_v36 = vpop.f32.mrf.mxu2  ;;  %v438_v60 = vmul.f32 %v1041_v47, %v416_v50  ;;  %v533_v0 = vld [vmem:[#allocation2 + $0x9] sm:$0xff]  ;;  %v427_v12 = vmul.f32 %v1036_v46, %v416_v50 }
 0x10e   : > { %v366_v38 = vadd.f32 %v995_v21, %v365_v36  ;;  %v505_v55 = vadd.f32 %v497_v44, %v485_v40  ;;  %v544_v11 = vmul.f32 %v1061_v61, %v533_v0 }
 0x10f   : > { %v359_v39 = vpop.f32.mrf.mxu0  ;;  %v446_v10 = vadd.f32 %v438_v60, %v426_v59 }
 0x110   : > { %v381_v41 = vmax.f32 %v366_v38, 0.0  ;;  %v360_v42 = vadd.f32 %v995_v21, %v359_v39 }
 0x112   : > { %394 = vst.msk [vmem:[#allocation2 + $0x30] sm:$0xff] %vm319_vm0, %v381_v41  ;;  %v379_v48 = vmax.f32 %v360_v42, 0.0 }
 0x113   : > { %v476_v52 = vld [vmem:[#allocation2 + $0x17] sm:$0xff] }
 0x114   : > { %392 = vst.msk [vmem:[#allocation2 + $0x20] sm:$0xff] %vm319_vm0, %v379_v48  ;;  %v417_v54 = vld [vmem:[#allocation2 + $0x18] sm:$0xff]  ;;  %v517_v56 = vmul.f32 %v1031_v45, %v476_v52  ;;  %v498_v9 = vmul.f32 %v1022_v35, %v476_v52  ;;  %v487_v25 = vmul.f32 %v1016_v32, %v476_v52  ;;  %v1106_v52 = vld [vmem:[%s1251_s4] ss:$0 sm:$0xff] }
 0x115   : > { %v534_v57 = vld [vmem:[#allocation2 + $0x11] sm:$0xff]  ;;  %v368_v58 = vpop.f32.mrf.mxu2  ;;  %v458_v3 = vmul.f32 %v1047_v51, %v417_v54  ;;  %v439_v13 = vmul.f32 %v1041_v47, %v417_v54  ;;  %v428_v24 = vmul.f32 %v1036_v46, %v417_v54 }
 0x116   : > { %v369_v62 = vadd.f32 %v995_v21, %v368_v58  ;;  %v525_v63 = vadd.f32 %v517_v56, %v505_v55  ;;  %v556_v4 = vmul.f32 %v1052_v53, %v534_v57  ;;  %v545_v17 = vmul.f32 %v1061_v61, %v534_v57 }
 0x117   : > { %v362_v1 = vpop.f32.mrf.mxu0  ;;  %v466_v18 = vadd.f32 %v458_v3, %v446_v10  ;;  %v506_v28 = vadd.f32 %v498_v9, %v486_v16  ;;  %v447_v33 = vadd.f32 %v439_v13, %v427_v12 }
 0x118   : > { %v382_v5 = vmax.f32 %v369_v62, 0.0  ;;  %v363_v6 = vadd.f32 %v995_v21, %v362_v1  ;;  %v592_v15 = vmul.f32 %v1065_v2, %v525_v63  ;;  %v564_v20 = vadd.f32 %v556_v4, %v544_v11 }
 0x119   : > { %v420_v30 = vld [vmem:[#allocation2 + $0x30] sm:$0xff] }
 0x11a   : > { %395 = vst.msk [vmem:[#allocation2 + $0x38] sm:$0xff] %vm319_vm0, %v382_v5  ;;  %v380_v14 = vmax.f32 %v363_v6, 0.0  ;;  %v600_v40 = vadd.f32 %v592_v15, %v466_v18  ;;  %v442_v42 = vmul.f32 %v1041_v47, %v420_v30  ;;  %v431_v44 = vmul.f32 %v1036_v46, %v420_v30 }
 0x11b   : > { %v535_v19 = vld [vmem:[#allocation2 + $0x19] sm:$0xff]  ;;  %v1100_v48 = vmul.f32 %v1047_v51, %v420_v30 }
 0x11c   : > { %v418_v22 = vld [vmem:[#allocation2 + $0x20] sm:$0xff]  ;;  %393 = vst.msk [vmem:[#allocation2 + $0x28] sm:$0xff] %vm319_vm0, %v380_v14  ;;  %v576_v26 = vmul.f32 %v1076_v8, %v535_v19  ;;  %v557_v34 = vmul.f32 %v1052_v53, %v535_v19  ;;  %v546_v43 = vmul.f32 %v1061_v61, %v535_v19 }
 0x11d   : > { %v477_v23 = vld [vmem:[#allocation2 + $0x1f] sm:$0xff]  ;;  %v459_v27 = vmul.f32 %v1047_v51, %v418_v22  ;;  %v371_v31 = vpop.f32.mrf.mxu2  ;;  %v440_v36 = vmul.f32 %v1041_v47, %v418_v22  ;;  %v1116_v63 = vmul.f32 %v1036_v46, %v418_v22 }
 0x11e   : > { %v518_v29 = vmul.f32 %v1031_v45, %v477_v23  ;;  %v499_v37 = vmul.f32 %v1022_v35, %v477_v23  ;;  %v372_v38 = vadd.f32 %v995_v21, %v371_v31  ;;  %v584_v39 = vadd.f32 %v576_v26, %v564_v20 }
 0x11f   : > { %v467_v54 = vadd.f32 %v459_v27, %v447_v33  ;;  %v565_v56 = vadd.f32 %v557_v34, %v545_v17  ;;  %v448_v60 = vadd.f32 %v440_v36, %v428_v24  ;;  %v1122_v4 = vmul.f32 %v1016_v32, %v477_v23 }
 0x120   : > { %v526_v41 = vadd.f32 %v518_v29, %v506_v28  ;;  %v383_v49 = vmax.f32 %v372_v38, 0.0  ;;  %v608_v50 = vmul.f32 %v1071_v7, %v584_v39  ;;  %v507_v62 = vadd.f32 %v499_v37, %v487_v25 }
 0x121   : > { %v1109_v57 = vld [vmem:[#allocation2 + $0x38] sm:$0xff] }
 0x122   : > { %v593_v55 = vmul.f32 %v1065_v2, %v526_v41  ;;  %v1111_v58 = vld [vmem:[#allocation2 + $0x37] sm:$0xff]  ;;  %396 = vst.msk [vmem:[#allocation2 + $0x40] sm:$0xff] %vm319_vm0, %v383_v49  ;;  %v616_v0 = vadd.f32 %v608_v50, %v600_v40  ;;  %v462_v3 = vmul.f32 %v1047_v51, %v1109_v57  ;;  %v443_v12 = vmul.f32 %v1041_v47, %v1109_v57 }
 0x123   : > { %v1113_v59 = vld [vmem:[#allocation2 + $0x31] sm:$0xff]  ;;  %v1124_v5 = vld [vmem:[#allocation2 + $0x21] sm:$0xff]  ;;  %v521_v10 = vmul.f32 %v1031_v45, %v1111_v58  ;;  %v502_v13 = vmul.f32 %v1022_v35, %v1111_v58  ;;  %v537_v19 = vld [vmem:[#allocation2 + $0x29] sm:$0xff] }
 0x124   : > { %v601_v1 = vadd.f32 %v593_v55, %v467_v54  ;;  %v419_v6 = vld [vmem:[#allocation2 + $0x28] sm:$0xff]  ;;  %v560_v11 = vmul.f32 %v1052_v53, %v1113_v59  ;;  %v628_v14 = vadd.f32 %v1106_v52, %v616_v0  ;;  %v577_v15 = vmul.f32 %v1076_v8, %v1124_v5 }
 0x125   : > { %v478_v9 = vld [vmem:[#allocation2 + $0x27] sm:$0xff]  ;;  %v430_v16 = vmul.f32 %v1036_v46, %v419_v6  ;;  %v479_v17 = vld [vmem:[#allocation2 + $0x2f] sm:$0xff]  ;;  %v374_v20 = vpop.f32.mrf.mxu2  ;;  %v548_v23 = vmul.f32 %v1061_v61, %v537_v19  ;;  %v460_v24 = vmul.f32 %v1047_v51, %v419_v6  ;;  %v558_v28 = vmul.f32 %v1052_v53, %v1124_v5 }
 0x126   : > { %v489_v18 = vmul.f32 %v1016_v32, %v478_v9  ;;  %v501_v22 = vmul.f32 %v1022_v35, %v479_v17  ;;  %v519_v25 = vmul.f32 %v1031_v45, %v478_v9  ;;  %v375_v26 = vadd.f32 %v995_v21, %v374_v20  ;;  %840 = vmatmul.msk.f32.vlgmr.msra.gmra.mxu1 %vm319_vm0, %v628_v14 }
 0x127   : > { %v585_v27 = vadd.f32 %v577_v15, %v565_v56  ;;  %v549_v29 = vmul.f32 %v1061_v61, %v1113_v59  ;;  %v450_v30 = vadd.f32 %v442_v42, %v430_v16  ;;  %v568_v33 = vadd.f32 %v560_v11, %v548_v23 }
 0x128   : > { %v509_v31 = vadd.f32 %v501_v22, %v489_v18  ;;  %v527_v34 = vadd.f32 %v519_v25, %v507_v62  ;;  %v384_v36 = vmax.f32 %v375_v26, 0.0  ;;  %v468_v38 = vadd.f32 %v460_v24, %v448_v60 }
 0x129   : > { %v609_v37 = vmul.f32 %v1071_v7, %v585_v27  ;;  %v566_v39 = vadd.f32 %v558_v28, %v546_v43  ;;  %v539_v21 = vld [vmem:[#allocation2 + $0x39] sm:$0xff]  ;;  %v578_v41 = vmul.f32 %v1076_v8, %v537_v19  ;;  %v451_v54 = vadd.f32 %v443_v12, %v431_v44 }
 0x12a   : > { %v529_v40 = vadd.f32 %v521_v10, %v509_v31  ;;  %v594_v49 = vmul.f32 %v1065_v2, %v527_v34  ;;  %v1152_v50 = vld [vmem:[#allocation2 + $0x40] sm:$0xff]  ;;  %397 = vst.msk [vmem:[#allocation2 + $0x48] sm:$0xff] %vm319_vm0, %v384_v36  ;;  %v580_v56 = vmul.f32 %v1076_v8, %v539_v21  ;;  %v490_v43 = vmul.f32 %v1016_v32, %v479_v17 }
 0x12b   : > { %v1154_v55 = vld [vmem:[#allocation2 + $0x3f] sm:$0xff]  ;;  %v617_v42 = vadd.f32 %v609_v37, %v601_v1  ;;  %v463_v60 = vmul.f32 %v1047_v51, %v1152_v50  ;;  %v586_v0 = vadd.f32 %v578_v41, %v566_v39  ;;  %v470_v12 = vadd.f32 %v462_v3, %v450_v30 }
 0x12c   : > { %v596_v62 = vmul.f32 %v1065_v2, %v529_v40  ;;  %v602_v10 = vadd.f32 %v594_v49, %v468_v38  ;;  %v522_v11 = vmul.f32 %v1031_v45, %v1154_v55  ;;  %v588_v14 = vadd.f32 %v580_v56, %v568_v33 }
 0x12d   : > { %v629_v44 = vadd.f32 %v1106_v52, %v617_v42  ;;  %v510_v15 = vadd.f32 %v502_v13, %v490_v43  ;;  %v610_v1 = vmul.f32 %v1071_v7, %v586_v0  ;;  %v471_v16 = vadd.f32 %v463_v60, %v451_v54 }
 0x12e   : > { %v561_v18 = vmul.f32 %v1052_v53, %v539_v21  ;;  %v441_v20 = vmul.f32 %v1041_v47, %v419_v6  ;;  %v604_v22 = vadd.f32 %v596_v62, %v470_v12  ;;  %v612_v23 = vmul.f32 %v1071_v7, %v588_v14 }
 0x12f   : > { %841 = vmatmul.msk.f32.gmra.mxu1 %vm319_vm0, %v629_v44  ;;  %v530_v24 = vadd.f32 %v522_v11, %v510_v15  ;;  %v500_v25 = vmul.f32 %v1022_v35, %v478_v9  ;;  %v618_v26 = vadd.f32 %v610_v1, %v602_v10  ;;  %v520_v13 = vmul.f32 %v1031_v45, %v479_v17  ;;  %v454_v15 = vld [vmem:[#allocation2 + $0x50] sm:$0xff] }
 0x130   : > { %v449_v3 = vadd.f32 %v441_v20, %v1116_v63  ;;  %v547_v27 = vmul.f32 %v1061_v61, %v1124_v5  ;;  %v620_v28 = vadd.f32 %v612_v23, %v604_v22  ;;  %v569_v30 = vadd.f32 %v561_v18, %v549_v29 }
 0x131   : > { %v508_v6 = vadd.f32 %v500_v25, %v1122_v4  ;;  %v559_v31 = vmul.f32 %v1052_v53, %v537_v19  ;;  %v630_v33 = vadd.f32 %v1106_v52, %v618_v26  ;;  %v540_v34 = vld [vmem:[#allocation2 + $0x41] sm:$0xff]  ;;  %v597_v36 = vmul.f32 %v1065_v2, %v530_v24  ;;  %v513_v22 = vld [vmem:[#allocation2 + $0x4f] sm:$0xff] }
 0x132   : > { %v469_v9 = vadd.f32 %v1100_v48, %v449_v3  ;;  %v579_v63 = vmul.f32 %v1076_v8, %v1113_v59  ;;  %v434_v17 = vld [vmem:[#allocation2 + $0x48] sm:$0xff]  ;;  %v632_v5 = vadd.f32 %v1106_v52, %v620_v28  ;;  %v581_v29 = vmul.f32 %v1076_v8, %v540_v34  ;;  %v572_v26 = vld [vmem:[#allocation2 + $0x51] sm:$0xff] }
 0x133   : > { %v493_v37 = vld [vmem:[#allocation2 + $0x47] sm:$0xff]  ;;  %v528_v38 = vadd.f32 %v520_v13, %v508_v6  ;;  %v432_v4 = vmul.f32 %v1036_v46, %v1109_v57  ;;  %v567_v19 = vadd.f32 %v559_v31, %v547_v27  ;;  %v444_v39 = vmul.f32 %v1041_v47, %v1152_v50 }
 0x134   : > { %v464_v40 = vmul.f32 %v1047_v51, %v434_v17  ;;  %v491_v48 = vmul.f32 %v1016_v32, %v1111_v58  ;;  %844 = vmatmul.msk.f32.vlgmr.msra.gmra.mxu3 %vm319_vm0, %v632_v5  ;;  %v589_v59 = vadd.f32 %v581_v29, %v569_v30  ;;  %v503_v49 = vmul.f32 %v1022_v35, %v1154_v55  ;;  %v552_v57 = vld [vmem:[#allocation2 + $0x49] sm:$0xff] }
 0x135   : > { %v595_v41 = vmul.f32 %v1065_v2, %v528_v38  ;;  %v523_v54 = vmul.f32 %v1031_v45, %v493_v37  ;;  %v587_v42 = vadd.f32 %v579_v63, %v567_v19  ;;  %v452_v56 = vadd.f32 %v444_v39, %v432_v4 }
 0x136   : > { %v550_v60 = vmul.f32 %v1061_v61, %v539_v21  ;;  %v562_v43 = vmul.f32 %v1052_v53, %v540_v34  ;;  %v605_v58 = vadd.f32 %v597_v36, %v471_v16  ;;  %v613_v62 = vmul.f32 %v1071_v7, %v589_v59 }
 0x137   : > { %842 = vmatmul.msk.f32.gmra.mxu1 %vm319_vm0, %v630_v33  ;;  %v603_v0 = vadd.f32 %v595_v41, %v469_v9  ;;  %v511_v10 = vadd.f32 %v503_v49, %v491_v48  ;;  %v611_v11 = vmul.f32 %v1071_v7, %v587_v42  ;;  %v472_v44 = vadd.f32 %v464_v40, %v452_v56 }
 0x138   : > { %v570_v12 = vadd.f32 %v562_v43, %v550_v60  ;;  %v582_v14 = vmul.f32 %v1076_v8, %v552_v57  ;;  %v621_v1 = vadd.f32 %v613_v62, %v605_v58  ;;  %v433_v21 = vmul.f32 %v1036_v46, %v1152_v50 }
 0x139   : > { %v531_v18 = vadd.f32 %v523_v54, %v511_v10  ;;  %v445_v20 = vmul.f32 %v1041_v47, %v434_v17  ;;  %v619_v16 = vadd.f32 %v611_v11, %v603_v0  ;;  %v492_v24 = vmul.f32 %v1016_v32, %v1154_v55 }
 0x13a   : > { %v590_v23 = vadd.f32 %v582_v14, %v570_v12  ;;  %v504_v25 = vmul.f32 %v1022_v35, %v493_v37  ;;  %v633_v3 = vadd.f32 %v1106_v52, %v621_v1  ;;  %v465_v28 = vmul.f32 %v1047_v51, %v454_v15 }
 0x13b   : > { %v598_v13 = vmul.f32 %v1065_v2, %v531_v18  ;;  %v453_v27 = vadd.f32 %v445_v20, %v433_v21  ;;  %v524_v47 = vmul.f32 %v1031_v45, %v513_v22  ;;  %v551_v30 = vmul.f32 %v1061_v61, %v540_v34 }
 0x13c   : > { %v614_v46 = vmul.f32 %v1071_v7, %v590_v23  ;;  %v512_v50 = vadd.f32 %v504_v25, %v492_v24  ;;  %845 = vmatmul.msk.f32.gmra.mxu3 %vm319_vm0, %v633_v3  ;;  %v631_v32 = vadd.f32 %v1106_v52, %v619_v16  ;;  %v563_v55 = vmul.f32 %v1052_v53, %v552_v57 }
 0x13d   : > { %v606_v35 = vadd.f32 %v598_v13, %v472_v44  ;;  %v583_v6 = vmul.f32 %v1076_v8, %v572_v26  ;;  %v473_v9 = vadd.f32 %v465_v28, %v453_v27  ;;  %v882_v8 = vld [vmem:[%s1253_s6] ss:$0 sm:$0xff] }
 0x13e   : > { %v532_v31 = vadd.f32 %v524_v47, %v512_v50  ;;  %v571_v33 = vadd.f32 %v563_v55, %v551_v30 }
 0x13f   : > { %843 = vmatmul.msk.f32.gmra.mxu1 %vm319_vm0, %v631_v32  ;;  %v622_v51 = vadd.f32 %v614_v46, %v606_v35 }
 0x140   : > { %v599_v36 = vmul.f32 %v1065_v2, %v532_v31  ;;  %v591_v45 = vadd.f32 %v583_v6, %v571_v33 }
 0x141   : > { %v634_v61 = vadd.f32 %v1106_v52, %v622_v51 }
 0x142   : > { %v607_v34 = vadd.f32 %v599_v36, %v473_v9  ;;  %v615_v63 = vmul.f32 %v1071_v7, %v591_v45 }
 0x144   : > { %846 = vmatmul.msk.f32.gmra.mxu3 %vm319_vm0, %v634_v61  ;;  %v623_v17 = vadd.f32 %v615_v63, %v607_v34 }
 0x146   : > { %v635_v53 = vadd.f32 %v1106_v52, %v623_v17 }
 0x14c   : > { %847 = vmatmul.msk.f32.gmra.mxu3 %vm319_vm0, %v635_v53 }
 0x1a3   : > { %v685_v37 = vpop.f32.mrf.mxu1 }
 0x1a4   : > { %v686_v2 = vadd.f32 %v882_v8, %v685_v37 }
 0x1a6   : > { %v709_v5 = vmax.f32 %v686_v2, 0.0 }
 0x1a8   : > { %733 = vrot.lane.b32.xlu2 %v709_v5, %s893_s8 }
 0x1ac   : > { %v688_v29 = vpop.f32.mrf.mxu1 }
 0x1ad   : > { %v689_v38 = vadd.f32 %v882_v8, %v688_v29 }
 0x1af   : > { %v710_v4 = vmax.f32 %v689_v38, 0.0 }
 0x1b1   : > { %735 = vrot.lane.b32.xlu0 %v710_v4, %s893_s8 }
 0x1b4   : > { %v691_v19 = vpop.f32.mrf.mxu1 }
 0x1b5   : > { %v692_v7 = vadd.f32 %v882_v8, %v691_v19 }
 0x1b7   : > { %v711_v39 = vmax.f32 %v692_v7, 0.0  ;;  %v697_v40 = vpop.f32.mrf.mxu3 }
 0x1b8   : > { %v698_v52 = vadd.f32 %v882_v8, %v697_v40 }
 0x1b9   : > { %737 = vrot.lane.b32.xlu1 %v711_v39, %s893_s8 }
 0x1ba   : > { %v713_v48 = vmax.f32 %v698_v52, 0.0 }
 0x1bc   : > { %v694_v59 = vpop.f32.mrf.mxu1  ;;  %741 = vrot.lane.b32.xlu0 %v713_v48, %s893_s8 }
 0x1bd   : > { %v695_v41 = vadd.f32 %v882_v8, %v694_v59 }
 0x1bf   : > { %v712_v49 = vmax.f32 %v695_v41, 0.0  ;;  %v700_v54 = vpop.f32.mrf.mxu3 }
 0x1c0   : > { %v701_v57 = vadd.f32 %v882_v8, %v700_v54 }
 0x1c1   : > { %739 = vrot.lane.b32.xlu2 %v712_v49, %s893_s8 }
 0x1c2   : > { %v714_v42 = vmax.f32 %v701_v57, 0.0 }
 0x1c4   : > { %743 = vrot.lane.b32.xlu1 %v714_v42, %s893_s8 }
 0x1c7   : > { %v703_v56 = vpop.f32.mrf.mxu3 }
 0x1c8   : > { %v704_v60 = vadd.f32 %v882_v8, %v703_v56 }
 0x1ca   : > { %v715_v43 = vmax.f32 %v704_v60, 0.0 }
 0x1cc   : > { %745 = vrot.lane.b32.xlu2 %v715_v43, %s893_s8 }
 0x1cf   : > { %v706_v58 = vpop.f32.mrf.mxu3 }
 0x1d0   : > { %v707_v62 = vadd.f32 %v882_v8, %v706_v58 }
 0x1d2   : > { %v716_v0 = vmax.f32 %v707_v62, 0.0 }
 0x1d4   : > { %747 = vrot.lane.b32.xlu0 %v716_v0, %s893_s8 }
 0x202   : > { %v734_v10 = vpop.permute.xlu2 %733 }
 0x203   : > { %758 = vst.msk [vmem:[%s960_s17] sm:$0xff] %vm757_vm4, %v734_v10 }
 0x21b   : > { %v740_v11 = vpop.permute.xlu2 %739 }
 0x21c   : > { %761 = vst.msk [vmem:[%s960_s17 + $0x18] sm:$0xff] %vm757_vm4, %v740_v11 }
 0x223   : > { %v736_v44 = vpop.permute.xlu0 %735 }
 0x224   : > { %759 = vst.msk [vmem:[%s960_s17 + $0x8] sm:$0xff] %vm757_vm4, %v736_v44 }
 0x226   : > { %v746_v12 = vpop.permute.xlu2 %745 }
 0x227   : > { %764 = vst.msk [vmem:[%s960_s17 + $0x30] sm:$0xff] %vm757_vm4, %v746_v12 }
 0x22b   : > { %v738_v14 = vpop.permute.xlu1 %737 }
 0x22c   : > { %760 = vst.msk [vmem:[%s960_s17 + $0x10] sm:$0xff] %vm757_vm4, %v738_v14 }
 0x22e   : > { %v742_v15 = vpop.permute.xlu0 %741 }
 0x22f   : > { %762 = vst.msk [vmem:[%s960_s17 + $0x20] sm:$0xff] %vm757_vm4, %v742_v15 }
 0x236   : > { %v744_v1 = vpop.permute.xlu1 %743 }
 0x237   : > { %763 = vst.msk [vmem:[%s960_s17 + $0x28] sm:$0xff] %vm757_vm4, %v744_v1 }
 0x246   : > { %v748_v18 = vpop.permute.xlu0 %747 }
 0x247   : > { %765 = vst.msk [vmem:[%s960_s17 + $0x38] sm:$0xff] %vm757_vm4, %v748_v18 }
 0x248 PF: > { %s17_s24 = sadd.s32 1, %s889_s24  }
 0x249   : > { %p14_p4 = scmp.ge.s32.totalorder %s17_s24, 4  }
 0x24b   :  { %16 = sbr.rel (!%p14_p4) target bundleno = 1 (0x1), region = 78 }

// kernel: fwd.2
= control target key start
LH: loop header
LB: loop body
LE: loop exit
PB: predicated region body
PF: predicated region fallthrough
CT: control target
= control target key end

     0   :  { %s2897_s0 = inlined_call_operand.hbm [shape: f32[2,256,32], index: 0, kind: input, shape index: {}]   ;;  %s2898_s1 = inlined_call_operand.hbm [shape: f32[3,3,1,32], index: 1, kind: input, shape index: {}]   ;;  %s2899_s2 = inlined_call_operand.vmem [shape: f32[1,32], index: 2, kind: input, shape index: {}]   ;;  %s2900_s3 = inlined_call_operand.hbm [shape: f32[32,32], index: 3, kind: input, shape index: {}]   ;;  %s2901_s4 = inlined_call_operand.vmem [shape: f32[1,32], index: 4, kind: input, shape index: {}]   ;;  %s2902_s5 = inlined_call_operand.hbm [shape: f32[32,32], index: 5, kind: input, shape index: {}]   ;;  %s2903_s6 = inlined_call_operand.vmem [shape: f32[1,32], index: 6, kind: input, shape index: {}]   ;;  %s2904_s7 = inlined_call_operand.vmem [shape: f32[3,3,1,32], index: 7, kind: input, shape index: {}]   ;;  %s2905_s8 = inlined_call_operand.vmem [shape: f32[1,32], index: 8, kind: input, shape index: {}]   ;;  %s2906_s9 = inlined_call_operand.hbm [shape: f32[32,32], index: 9, kind: input, shape index: {}]   ;;  %s2907_s10 = inlined_call_operand.vmem [shape: f32[1,32], index: 10, kind: input, shape index: {}]   ;;  %s2908_s11 = inlined_call_operand.vmem [shape: f32[2,64,64], index: 11, kind: output, shape index: {}]  }
   0x1   :  { %2911 = sst [smem:[#allocation15_spill]] %s2898_s1 }
   0x2   :  { %2912 = sst [smem:[#allocation16_spill]] %s2900_s3 }
   0x3   :  { %16 = vsyncpa [#allocation5], 0 }
   0x4   :  { %18 = vsyncpa [#allocation5 + $0x1], 0 }
   0x5   :  { %19 = vsyncpa [#allocation7], 0 }
   0x6   :  { %20 = vsyncpa [#allocation10], 0  ;;  %s2199_s17 = smov 0   ;;  %s2201_s18 = smov 0  }
   0x7   :  { %s2203_s19 = smov 0   ;;  %s2205_s20 = smov 0  }
   0x8 LB: > { %s2218_s21 = sadd.s32 4294967295, %s2127_s20   ;;  %p46_p0 = scmp.ne.s32.totalorder %s2119_s18, %s2115_s17  ;;  %s2127_s20 = sphi %s2205_s20, %s2925_s20   ;;  %s2123_s19 = sphi %s2203_s19, %s2924_s19   ;;  %s2119_s18 = sphi %s2201_s18, %s2923_s18   ;;  %s2115_s17 = sphi %s2199_s17, %s2922_s17  }
   0x9   : > { %p47_p1 = scmp.eq.s32.totalorder %s2218_s21, 0  ;;  %p1744_p2 = scmp.ge.s32.totalorder %s2127_s20, 1 }
   0xa   : > { %p293_p3 = scmp.lt.s32.totalorder %s2127_s20, 3  ;;  %s2914_s1 = sld [smem:[#allocation15_spill]] }
   0xb   : > { %p2226_p4 = por %p47_p1, %p46_p0  ;;  %s2129_s27 = smov [#allocation6]  }
   0xc   : > { %p2233_p5 = pnand %p1744_p2, %p293_p3  ;;  %s306_s28 = sshll.u32 %s2129_s27, 4  ;;  %s307_s28 = int_to_ptr.vmem [resolvable:$true] %s306_s28 }
   0xd   : > { %s338_s13 = sshll.u32 %s2902_s5, 4  ;;  %s2130_s14 = smov 16   ;;  %s339_s13 = int_to_ptr.hbm [resolvable:$true] %s338_s13 }
   0xe   : > { %p1844_p6 = pneg %p2233_p5  ;;  %s2131_s15 = smov 1  }
   0xf   : > { %s2132_s16 = smov [#allocation9]   ;;  %s2917_s3 = sld [smem:[#allocation16_spill]] }
  0x10   : > { %s304_s25 = sshll.u32 %s2914_s1, 4  ;;  %p2241_p7 = pnand %p1844_p6, %p47_p1  ;;  %s305_s25 = int_to_ptr.hbm [resolvable:$true] %s304_s25 }
  0x11   : > { %s340_s17 = sshll.u32 %s2132_s16, 4  ;;  %s2909_s30 = smov 128   ;;  %s341_s17 = int_to_ptr.vmem [resolvable:$true] %s340_s17 }
  0x12   : > { %1847 = dma.hbm_to_vmem [thread:$0]  (!%p2241_p7), %s305_s25, 144, %s307_s28, [#allocation7], %s2130_s14, %s2130_s14, %s2131_s15  }
  0x13   : > { %s2910_s12 = smov 8   ;;  %s361_s14 = sshll.u32 %s2906_s9, 4  ;;  %s362_s14 = int_to_ptr.hbm [resolvable:$true] %s361_s14 }
  0x14   : > { %1853 = dma.hbm_to_vmem [thread:$0]  (!%p2241_p7), %s339_s13, 512, %s341_s17, [#allocation10], %s2909_s30, %s2909_s30, %s2910_s12  }
  0x15   : > { %s321_s27 = sshll.u32 %s2917_s3, 4  ;;  %s2135_s15 = smov [#allocation8]   ;;  %s322_s27 = int_to_ptr.hbm [resolvable:$true] %s321_s27 }
  0x16   : > { %s323_s16 = sshll.u32 %s2135_s15, 4  ;;  %s2136_s23 = smov [#allocation11]   ;;  %s324_s16 = int_to_ptr.vmem [resolvable:$true] %s323_s16 }
  0x17   : > { %1850 = dma.hbm_to_vmem [thread:$0]  (!%p2241_p7), %s322_s27, 512, %s324_s16, [#allocation7], %s2909_s30, %s2909_s30, %s2910_s12  }
  0x18   : > { %s363_s13 = sshll.u32 %s2136_s23, 4  ;;  %s2272_s17 = sadd.s32 1, %s2127_s20   ;;  %s364_s13 = int_to_ptr.vmem [resolvable:$true] %s363_s13 }
  0x19   : > { %1856 = dma.hbm_to_vmem [thread:$0]  (!%p2241_p7), %s362_s14, 512, %s364_s13, [#allocation10], %s2909_s30, %s2909_s30, %s2910_s12  }
  0x1a   : > { %s33_s24 = sadd.s32 1, %s2123_s19  ;;  %s30_s25 = ssub.s32 %s2127_s20, %s2272_s17 }
  0x1b   : > { %p40_p8 = scmp.ne.s32.totalorder %s2123_s19, %s2119_s18  ;;  %p31_p9 = scmp.eq.s32.totalorder %s30_s25, 0 }
  0x1c   : > { %p41_p10 = scmp.eq.s32.totalorder %s2127_s20, 0  ;;  %s380_s28 = sand.u32 1, %s2123_s19  }
  0x1d   : > { %s2282_s15 = scalar_select %p31_p9, %s2123_s19, %s33_s24  }
  0x1e   : > { %p42_p11 = por %p41_p10, %p40_p8  ;;  %p1865_p12 = scmp.lt.s32.totalorder %s2127_s20, 2 }
  0x1f   : > { %s1750_s27 = sshll.u32 %s380_s28, 8  ;;  %s1812_s16 = sshll.u32 %s2127_s20, 8 }
  0x20   : > { %s389_s1 = scalar_lea.hbm %s2897_s0, %s1812_s16  ;;  %s384_s13 = scalar_lea.vmem [#allocation4], %s1750_s27 }
  0x21   : > { %s390_s14 = sshll.u32 %s389_s1, 4  ;;  %s392_s30 = sshll.u32 %s384_s13, 4  ;;  %s391_s14 = int_to_ptr.hbm [resolvable:$true] %s390_s14  ;;  %s393_s30 = int_to_ptr.vmem [resolvable:$true] %s392_s30 }
  0x22   : > { %p2289_p13 = pnand %p1865_p12, %p42_p11  ;;  %s381_s24 = scalar_lea.sflag [#allocation5], %s380_s28 }
  0x23   : > { %s2055_s25 = sshra.s32 %s391_s14, 4  ;;  %s2062_s27 = scalar_lea.hbm %s2897_s0, 512  ;;  %s2056_s25 = int_to_ptr.hbm [resolvable:$true] %s2055_s25 }
  0x24   : > { %s2057_s3 = scalar_lea.hbm %s2056_s25, 256  ;;  %p2059_p2 = pneg %p2289_p13 }
  0x25   : > { %p2058_p0 = scmp.ne.s32.totalorder %s2056_s25, %s2057_s3  ;;  %p2063_p7 = scmp.lt.s32.totalorder %s2056_s25, %s2897_s0 }
  0x26   : > { %p2064_p8 = scmp.lt.s32.totalorder %s2062_s27, %s2057_s3 }
  0x27   : > { %p2060_p3 = pnand %p2059_p2, %p2058_p0 }
  0x28   : > { %p2065_p9 = por %p2064_p8, %p2063_p7 }
  0x29   : > { %p2061_p6 = pneg %p2060_p3 }
  0x2b   : > { %p2066_p10 = pnand %p2065_p9, %p2061_p6 }
  0x2d   : > { %2069 = shalt.err (!%p2066_p10)
}
  0x2e   : > { %s2919_s28 = smov 8   ;;  %s2920_s23 = smov 128  }
  0x2f   : > { %1860 = dma.hbm_to_vmem [thread:$0]  (!%p2289_p13), %s391_s14, 4096, %s393_s30, %s381_s24, %s2920_s23, %s2920_s23, %s2919_s28  }
  0x30   : > { %404 = sbr.rel (%p2233_p5) target bundleno = 628 (0x274), region = 64  ;;  %s406_s13 = sand.u32 (!%p2233_p5), 1, %s2119_s18  }
  0x31   : > { %s1754_s20 = sshll.u32 (!%p2233_p5), %s406_s13, 8  ;;  %s407_s1 = scalar_lea.sflag (!%p2233_p5), [#allocation5], %s406_s13 }
  0x32   : > { %s2309_s16 = scalar_lea.vmem (!%p2233_p5), [#allocation4], %s1754_s20 }
  0x35   : > { %2102 = dma.done.wait (%p2226_p4), %s407_s1, 4096  }
  0x36   : > { %2104 = vsyncadd (%p2226_p4), %s407_s1, 4294963200 }
  0x37   : > { %2106 = dma.done.wait (%p47_p1), [#allocation7], 656  }
  0x38   : > { %2108 = vsyncadd (%p47_p1), [#allocation7], 4294966640 }
  0x39   : > { %2110 = dma.done.wait (%p47_p1), [#allocation10], 1024  }
  0x3a   : > { %2112 = vsyncadd (%p47_p1), [#allocation10], 4294966272  ;;  %vm507_vm0 = vcmask 261120   ;;  %v2137_v0 = vmov 0.0   ;;  %v930_v1 = vld [vmem:[#allocation9 + $0x18] sm:$0xff]  ;;  %v929_v2 = vld [vmem:[#allocation9 + $0x10] sm:$0xff]  ;;  %v556_v3 = vlaneseq }
  0x3b   : > { %508 = vst.msk [vmem:[#allocation2] sm:$0xff] %vm507_vm0, %v2137_v0  ;;  %1818 = vmatpush.msra.mxu1 %v930_v1  ;;  %v483_v4 = vld [vmem:[%s2309_s16 + $0x40] sm:$0xff]  ;;  %1819 = vmatpush.msra.mxu3 %v930_v1  ;;  %v928_v6 = vld [vmem:[#allocation9 + $0x8] sm:$0xff]  ;;  %v484_v7 = vld [vmem:[%s2309_s16 + $0x48] sm:$0xff]  ;;  %p470_p1 = scmp.lt.s32.totalorder %s2218_s21, 1  ;;  %vm1629_vm2 = vcmask 523520  }
  0x3c   : > { %509 = vst.msk [vmem:[#allocation2 + $0x8] sm:$0xff] %vm507_vm0, %v2137_v0  ;;  %v849_v5 = vld [vmem:[#allocation8 + $0x18] sm:$0xff]  ;;  %v848_v8 = vld [vmem:[#allocation8 + $0x10] sm:$0xff]  ;;  %v847_v10 = vld [vmem:[#allocation8 + $0x8] sm:$0xff]  ;;  %v557_v15 = vshrl.u32 %v556_v3, 7 }
  0x3d   : > { %510 = vst.msk [vmem:[#allocation2 + $0x10] sm:$0xff] %vm507_vm0, %v2137_v0  ;;  %890 = vmatpush.msra.mxu0 %v849_v5  ;;  %1814 = vmatpush.msra.mxu2 %v849_v5  ;;  %v495_v9 = vld [vmem:[%s2309_s16 + $0xa0] sm:$0xff]  ;;  %v927_v12 = vld [vmem:[#allocation9] sm:$0xff]  ;;  %v2345_v16 = vld [vmem:[%s2309_s16 + $0x18] sm:$0xff]  ;;  %s2927_s21 = smov (!%p470_p1, %s2218_s21), 1 }
  0x3e   : > { %523 = vst.msk [vmem:[#allocation2 + $0x58] sm:$0xff] %vm507_vm0, %v483_v4  ;;  %1820 = vmatpush.msra.mxu1 %v929_v2  ;;  %1821 = vmatpush.msra.mxu3 %v929_v2  ;;  %v2335_v11 = vld [vmem:[%s2309_s16] sm:$0xff]  ;;  %v2339_v13 = vld [vmem:[%s2309_s16 + $0x8] sm:$0xff]  ;;  %v2342_v14 = vld [vmem:[%s2309_s16 + $0x10] sm:$0xff]  ;;  %vm558_vm1 = vcmp.ge.s32.totalorder %v557_v15, 1  ;;  %s1813_s24 = sshll.u32 %s2927_s21, 6 }
  0x3f   : > { %524 = vst.msk [vmem:[#allocation2 + $0x60] sm:$0xff] %vm507_vm0, %v484_v7  ;;  %891 = vmatpush.msra.mxu0 %v848_v8  ;;  %1815 = vmatpush.msra.mxu2 %v848_v8  ;;  %v846_v17 = vld [vmem:[#allocation8] sm:$0xff]  ;;  %v2357_v19 = vld [vmem:[#allocation6 + $0x1] ss:$0 sm:$0xff]  ;;  %v2359_v20 = vld [vmem:[#allocation6 + $0x4] ss:$0 sm:$0xff]  ;;  %s2589_s29 = scalar_lea.vmem %s2908_s11, %s1813_s24 }
  0x40   : > { %535 = vst.msk [vmem:[#allocation2 + $0xb8] sm:$0xff] %vm507_vm0, %v495_v9  ;;  %1822 = vmatpush.msra.mxu1 %v928_v6  ;;  %1823 = vmatpush.msra.mxu3 %v928_v6  ;;  %v2361_v21 = vld [vmem:[#allocation6 + $0x7] ss:$0 sm:$0xff]  ;;  %v2363_v23 = vld [vmem:[#allocation6] ss:$0 sm:$0xff]  ;;  %v496_v39 = vld [vmem:[%s2309_s16 + $0xa8] sm:$0xff] }
  0x41   : > { %515 = vst.msk [vmem:[#allocation2 + $0x18] sm:$0xff] %vm507_vm0, %v2335_v11  ;;  %892 = vmatpush.msra.mxu0 %v847_v10  ;;  %1816 = vmatpush.msra.mxu2 %v847_v10  ;;  %v2365_v24 = vld [vmem:[#allocation6 + $0x3] ss:$0 sm:$0xff]  ;;  %v2367_v25 = vld [vmem:[#allocation6 + $0x6] ss:$0 sm:$0xff]  ;;  %v2387_v47 = vsel %vm558_vm1, 1.0, %v2137_v0 }
  0x42   : > { %516 = vst.msk [vmem:[#allocation2 + $0x20] sm:$0xff] %vm507_vm0, %v2339_v13  ;;  %1824 = vmatpush.msra.mxu1 %v927_v12  ;;  %1825 = vmatpush.msra.mxu3 %v927_v12  ;;  %v2370_v28 = vld [vmem:[#allocation6 + $0x2] ss:$0 sm:$0xff]  ;;  %v2372_v29 = vld [vmem:[#allocation6 + $0x5] ss:$0 sm:$0xff]  ;;  %v485_v52 = vld [vmem:[%s2309_s16 + $0x50] sm:$0xff] }
  0x43   : > { %517 = vst.msk [vmem:[#allocation2 + $0x28] sm:$0xff] %vm507_vm0, %v2342_v14  ;;  %1778 = vmatmul.msk.f32.vlgmr.msra.gmra.mxu1 %vm507_vm0, %v483_v4  ;;  %1790 = vmatmul.msk.f32.vlgmr.msra.gmra.mxu3 %vm507_vm0, %v495_v9  ;;  %v2379_v38 = vld [vmem:[#allocation6 + $0x8] ss:$0 sm:$0xff]  ;;  %v2400_v55 = vld [vmem:[%s2899_s2] ss:$0 sm:$0xff]  ;;  %v2413_v59 = vld [vmem:[%s2309_s16 + $0x30] sm:$0xff] }
  0x44   : > { %518 = vst.msk [vmem:[#allocation2 + $0x30] sm:$0xff] %vm507_vm0, %v2345_v16  ;;  %893 = vmatpush.msra.mxu0 %v846_v17  ;;  %v562_v18 = vld [vmem:[#allocation2 + $0x8] ss:$2 sm:$0xff]  ;;  %1817 = vmatpush.msra.mxu2 %v846_v17  ;;  %v645_v22 = vld [vmem:[#allocation2 + $0x7] ss:$2 sm:$0xff]  ;;  %v2417_v61 = vld [vmem:[%s2309_s16 + $0x38] sm:$0xff] }
  0x45   : > { %v580_v26 = vmul.f32 %v2357_v19, %v562_v18  ;;  %v728_v27 = vld [vmem:[#allocation2 + $0x9] ss:$2 sm:$0xff]  ;;  %v663_v31 = vmul.f32 %v2363_v23, %v645_v22  ;;  %1176 = vst.msk [vmem:[#allocation3] sm:$0xff] %vm507_vm0, %v2137_v0  ;;  %v2405_v56 = vld [vmem:[%s2309_s16 + $0x20] sm:$0xff]  ;;  %v486_v63 = vld [vmem:[%s2309_s16 + $0x58] sm:$0xff] }
  0x46   : > { %1043 = vmatpush.msrb.mxu0 %v930_v1  ;;  %v746_v36 = vmul.f32 %v2370_v28, %v728_v27  ;;  %1177 = vst.msk [vmem:[#allocation3 + $0x8] sm:$0xff] %vm507_vm0, %v2137_v0  ;;  %v2409_v57 = vld [vmem:[%s2309_s16 + $0x28] sm:$0xff]  ;;  %v497_v60 = vld [vmem:[%s2309_s16 + $0xb0] sm:$0xff]  ;;  %v2432_v1 = vld [vmem:[%s2309_s16 + $0x60] sm:$0xff] }
  0x47   : > { %1178 = vst.msk [vmem:[#allocation3 + $0x10] sm:$0xff] %vm507_vm0, %v2137_v0  ;;  %v2441_v3 = vld [vmem:[%s2309_s16 + $0x68] sm:$0xff]  ;;  %v2452_v22 = vld [vmem:[%s2309_s16 + $0x70] sm:$0xff] }
  0x48   : > { %1044 = vmatpush.msrb.mxu0 %v929_v2  ;;  %525 = vst.msk [vmem:[#allocation2 + $0x68] sm:$0xff] %vm507_vm0, %v485_v52  ;;  %v498_v2 = vld [vmem:[%s2309_s16 + $0xb8] sm:$0xff] }
  0x49   : > { %v589_v30 = vld [vmem:[#allocation2 + $0x18] ss:$2 sm:$0xff]  ;;  %v672_v32 = vld [vmem:[#allocation2 + $0x17] ss:$2 sm:$0xff]  ;;  %536 = vst.msk [vmem:[#allocation2 + $0xc0] sm:$0xff] %vm507_vm0, %v496_v39 }
  0x4a   : > { %v755_v33 = vld [vmem:[#allocation2 + $0x19] ss:$2 sm:$0xff]  ;;  %v607_v34 = vmul.f32 %v2359_v20, %v589_v30  ;;  %v690_v35 = vmul.f32 %v2365_v24, %v672_v32  ;;  %1045 = vmatpush.msrb.mxu0 %v928_v6  ;;  %519 = vst.msk [vmem:[#allocation2 + $0x38] sm:$0xff] %vm507_vm0, %v2405_v56  ;;  %v593_v6 = vld [vmem:[#allocation2 + $0x58] ss:$2 sm:$0xff] }
  0x4b   : > { %v773_v37 = vmul.f32 %v2372_v29, %v755_v33  ;;  %v564_v40 = vld [vmem:[#allocation2 + $0x28] ss:$2 sm:$0xff]  ;;  %v647_v41 = vld [vmem:[#allocation2 + $0x27] ss:$2 sm:$0xff]  ;;  %1779 = vmatmul.msk.f32.gmra.mxu1 %vm507_vm0, %v484_v7  ;;  %1791 = vmatmul.msk.f32.gmra.mxu3 %vm507_vm0, %v496_v39  ;;  %520 = vst.msk [vmem:[#allocation2 + $0x40] sm:$0xff] %vm507_vm0, %v2409_v57  ;;  %v609_v32 = vmul.f32 %v2359_v20, %v593_v6 }
  0x4c   : > { %v730_v42 = vld [vmem:[#allocation2 + $0x29] ss:$2 sm:$0xff]  ;;  %v615_v43 = vadd.f32 %v607_v34, %v580_v26  ;;  %v628_v44 = vmul.f32 %v2361_v21, %v564_v40  ;;  %v698_v45 = vadd.f32 %v690_v35, %v663_v31  ;;  %v711_v46 = vmul.f32 %v2367_v25, %v647_v41  ;;  %1046 = vmatpush.msrb.mxu0 %v927_v12  ;;  %v759_v7 = vld [vmem:[#allocation2 + $0x59] ss:$2 sm:$0xff] }
  0x4d   : > { %v781_v48 = vadd.f32 %v773_v37, %v746_v36  ;;  %v794_v49 = vmul.f32 %v2379_v38, %v730_v42  ;;  %521 = vst.msk [vmem:[#allocation2 + $0x48] sm:$0xff] %vm507_vm0, %v2413_v59  ;;  %v581_v4 = vmul.f32 %v2357_v19, %v564_v40  ;;  %v664_v5 = vmul.f32 %v2363_v23, %v647_v41  ;;  %v2455_v26 = vld [vmem:[%s2309_s16 + $0x78] sm:$0xff] }
  0x4e   : > { %v636_v50 = vadd.f32 %v628_v44, %v615_v43  ;;  %v719_v51 = vadd.f32 %v711_v46, %v698_v45  ;;  %522 = vst.msk [vmem:[#allocation2 + $0x50] sm:$0xff] %vm507_vm0, %v2417_v61  ;;  %v747_v10 = vmul.f32 %v2370_v28, %v730_v42  ;;  %v775_v33 = vmul.f32 %v2372_v29, %v759_v7 }
  0x4f   : > { %v802_v53 = vadd.f32 %v794_v49, %v781_v48  ;;  %526 = vst.msk [vmem:[#allocation2 + $0x70] sm:$0xff] %vm507_vm0, %v486_v63 }
  0x50   : > { %v810_v54 = vmul.f32 %v2387_v47, %v719_v51  ;;  %537 = vst.msk [vmem:[#allocation2 + $0xc8] sm:$0xff] %vm507_vm0, %v497_v60 }
  0x51   : > { %527 = vst.msk [vmem:[#allocation2 + $0x78] sm:$0xff] %vm507_vm0, %v2432_v1 }
  0x52   : > { %v818_v58 = vadd.f32 %v810_v54, %v636_v50  ;;  %538 = vst.msk [vmem:[#allocation2 + $0xd0] sm:$0xff] %vm507_vm0, %v498_v2  ;;  %v591_v8 = vld [vmem:[#allocation2 + $0x38] ss:$2 sm:$0xff]  ;;  %v674_v9 = vld [vmem:[#allocation2 + $0x37] ss:$2 sm:$0xff] }
  0x53   : > { %1780 = vmatmul.msk.f32.gmra.mxu1 %vm507_vm0, %v485_v52  ;;  %1792 = vmatmul.msk.f32.gmra.mxu3 %vm507_vm0, %v497_v60  ;;  %v757_v12 = vld [vmem:[#allocation2 + $0x39] ss:$2 sm:$0xff]  ;;  %v608_v15 = vmul.f32 %v2359_v20, %v591_v8  ;;  %v691_v17 = vmul.f32 %v2365_v24, %v674_v9  ;;  %528 = vst.msk [vmem:[#allocation2 + $0x80] sm:$0xff] %vm507_vm0, %v2441_v3 }
  0x54   : > { %v826_v62 = vadd.f32 %v818_v58, %v802_v53  ;;  %v774_v18 = vmul.f32 %v2372_v29, %v757_v12  ;;  %529 = vst.msk [vmem:[#allocation2 + $0x88] sm:$0xff] %vm507_vm0, %v2452_v22  ;;  %v499_v52 = vld [vmem:[%s2309_s16 + $0xc0] sm:$0xff] }
  0x55   : > { %v566_v27 = vld [vmem:[#allocation2 + $0x48] ss:$2 sm:$0xff]  ;;  %v649_v30 = vld [vmem:[#allocation2 + $0x47] ss:$2 sm:$0xff]  ;;  %v616_v34 = vadd.f32 %v608_v15, %v581_v4  ;;  %v699_v36 = vadd.f32 %v691_v17, %v664_v5  ;;  %v676_v41 = vld [vmem:[#allocation2 + $0x57] ss:$2 sm:$0xff] }
  0x56   : > { %v838_v0 = vadd.f32 %v2400_v55, %v826_v62  ;;  %v732_v31 = vld [vmem:[#allocation2 + $0x49] ss:$2 sm:$0xff]  ;;  %v629_v35 = vmul.f32 %v2361_v21, %v566_v27  ;;  %v712_v37 = vmul.f32 %v2367_v25, %v649_v30  ;;  %v568_v39 = vld [vmem:[#allocation2 + $0x68] ss:$2 sm:$0xff]  ;;  %v782_v42 = vadd.f32 %v774_v18, %v747_v10  ;;  %530 = vst.msk [vmem:[#allocation2 + $0x90] sm:$0xff] %vm507_vm0, %v2455_v26 }
  0x57   : > { %v651_v40 = vld [vmem:[#allocation2 + $0x67] ss:$2 sm:$0xff]  ;;  %v795_v43 = vmul.f32 %v2379_v38, %v732_v31  ;;  %v582_v44 = vmul.f32 %v2357_v19, %v566_v27  ;;  %v630_v45 = vmul.f32 %v2361_v21, %v568_v39  ;;  %v665_v50 = vmul.f32 %v2363_v23, %v649_v30  ;;  %539 = vst.msk [vmem:[#allocation2 + $0xd8] sm:$0xff] %vm507_vm0, %v499_v52 }
  0x58   : > { %1762 = vmatmul.msk.f32.vlgmr.msra.gmra.mxu0 %vm507_vm0, %v838_v0  ;;  %v734_v46 = vld [vmem:[#allocation2 + $0x69] ss:$2 sm:$0xff]  ;;  %v637_v48 = vadd.f32 %v629_v35, %v616_v34  ;;  %v720_v49 = vadd.f32 %v712_v37, %v699_v36  ;;  %v692_v51 = vmul.f32 %v2365_v24, %v676_v41  ;;  %v713_v58 = vmul.f32 %v2367_v25, %v651_v40 }
  0x59   : > { %v803_v53 = vadd.f32 %v795_v43, %v782_v42  ;;  %v617_v54 = vadd.f32 %v609_v32, %v582_v44  ;;  %v748_v60 = vmul.f32 %v2370_v28, %v732_v31  ;;  %v796_v0 = vmul.f32 %v2379_v38, %v734_v46  ;;  %v500_v18 = vld [vmem:[%s2309_s16 + $0xc8] sm:$0xff] }
  0x5a   : > { %v811_v62 = vmul.f32 %v2387_v47, %v720_v49  ;;  %v595_v6 = vld [vmem:[#allocation2 + $0x78] ss:$2 sm:$0xff]  ;;  %v666_v7 = vmul.f32 %v2363_v23, %v651_v40  ;;  %v678_v8 = vld [vmem:[#allocation2 + $0x77] ss:$2 sm:$0xff]  ;;  %v749_v30 = vmul.f32 %v2370_v28, %v734_v46  ;;  %540 = vst.msk [vmem:[#allocation2 + $0xe0] sm:$0xff] %vm507_vm0, %v500_v18 }
  0x5b   : > { %1781 = vmatmul.msk.f32.gmra.mxu1 %vm507_vm0, %v486_v63  ;;  %1793 = vmatmul.msk.f32.gmra.mxu3 %vm507_vm0, %v498_v2  ;;  %v700_v63 = vadd.f32 %v692_v51, %v665_v50  ;;  %v583_v2 = vmul.f32 %v2357_v19, %v568_v39  ;;  %v638_v4 = vadd.f32 %v630_v45, %v617_v54  ;;  %v761_v9 = vld [vmem:[#allocation2 + $0x79] ss:$2 sm:$0xff]  ;;  %v501_v49 = vld [vmem:[%s2309_s16 + $0xd0] sm:$0xff] }
  0x5c   : > { %v783_v5 = vadd.f32 %v775_v33, %v748_v60  ;;  %v819_v10 = vadd.f32 %v811_v62, %v637_v48  ;;  %v610_v15 = vmul.f32 %v2359_v20, %v595_v6  ;;  %v693_v17 = vmul.f32 %v2365_v24, %v678_v8  ;;  %541 = vst.msk [vmem:[#allocation2 + $0xe8] sm:$0xff] %vm507_vm0, %v501_v49  ;;  %v502_v60 = vld [vmem:[%s2309_s16 + $0xd8] sm:$0xff]  ;;  %v492_v62 = vld [vmem:[%s2309_s16 + $0x88] sm:$0xff] }
  0x5d   : > { %v721_v12 = vadd.f32 %v713_v58, %v700_v63  ;;  %v776_v31 = vmul.f32 %v2372_v29, %v761_v9  ;;  %v2491_v35 = vld [vmem:[#allocation2 + $0x88] ss:$2 sm:$0xff]  ;;  %v2493_v36 = vld [vmem:[#allocation2 + $0x87] ss:$2 sm:$0xff]  ;;  %542 = vst.msk [vmem:[#allocation2 + $0xf0] sm:$0xff] %vm507_vm0, %v502_v60 }
  0x5e   : > { %v804_v27 = vadd.f32 %v796_v0, %v783_v5  ;;  %v827_v32 = vadd.f32 %v819_v10, %v803_v53  ;;  %v618_v34 = vadd.f32 %v610_v15, %v583_v2  ;;  %v2495_v37 = vld [vmem:[#allocation2 + $0x89] ss:$2 sm:$0xff]  ;;  %v631_v41 = vmul.f32 %v2361_v21, %v2491_v35  ;;  %v491_v58 = vld [vmem:[%s2309_s16 + $0x80] sm:$0xff]  ;;  %532 = vst.msk [vmem:[#allocation2 + $0xa0] sm:$0xff] %vm507_vm0, %v492_v62 }
  0x5f   : > { %v812_v33 = vmul.f32 %v2387_v47, %v721_v12  ;;  %v714_v42 = vmul.f32 %v2367_v25, %v2493_v36  ;;  %v784_v43 = vadd.f32 %v776_v31, %v749_v30  ;;  %v797_v48 = vmul.f32 %v2379_v38, %v2495_v37  ;;  %531 = vst.msk [vmem:[#allocation2 + $0x98] sm:$0xff] %vm507_vm0, %v491_v58  ;;  %v503_v63 = vld [vmem:[%s2309_s16 + $0xe0] sm:$0xff]  ;;  %v504_v0 = vld [vmem:[%s2309_s16 + $0xe8] sm:$0xff]  ;;  %v505_v2 = vld [vmem:[%s2309_s16 + $0xf0] sm:$0xff] }
  0x60   : > { %v839_v39 = vadd.f32 %v2400_v55, %v827_v32  ;;  %v639_v45 = vadd.f32 %v631_v41, %v618_v34  ;;  %543 = vst.msk [vmem:[#allocation2 + $0xf8] sm:$0xff] %vm507_vm0, %v503_v63  ;;  %v2580_v10 = vld [vmem:[%s2901_s4] ss:$0 sm:$0xff] }
  0x61   : > { %v820_v40 = vadd.f32 %v812_v33, %v638_v4  ;;  %544 = vst.msk [vmem:[#allocation2 + $0x100] sm:$0xff] %vm507_vm0, %v504_v0 }
  0x62   : > { %1763 = vmatmul.msk.f32.gmra.mxu0 %vm507_vm0, %v839_v39  ;;  %545 = vst.msk [vmem:[#allocation2 + $0x108] sm:$0xff] %vm507_vm0, %v505_v2 }
  0x63   : > { %1782 = vmatmul.msk.f32.gmra.mxu1 %vm507_vm0, %v2432_v1  ;;  %1794 = vmatmul.msk.f32.gmra.mxu3 %vm507_vm0, %v499_v52  ;;  %v701_v1 = vadd.f32 %v693_v17, %v666_v7  ;;  %v828_v44 = vadd.f32 %v820_v40, %v804_v27  ;;  %v805_v52 = vadd.f32 %v797_v48, %v784_v43 }
  0x65   : > { %v722_v46 = vadd.f32 %v714_v42, %v701_v1  ;;  %v840_v51 = vadd.f32 %v2400_v55, %v828_v44 }
  0x66   : > { %v680_v43 = vld [vmem:[#allocation2 + $0x97] ss:$2 sm:$0xff] }
  0x67   : > { %v813_v50 = vmul.f32 %v2387_v47, %v722_v46  ;;  %v694_v46 = vmul.f32 %v2365_v24, %v680_v43 }
  0x69   : > { %v821_v53 = vadd.f32 %v813_v50, %v639_v45  ;;  %v667_v45 = vmul.f32 %v2363_v23, %v2493_v36 }
  0x6a   : > { %1764 = vmatmul.msk.f32.gmra.mxu0 %vm507_vm0, %v840_v51 }
  0x6b   : > { %1783 = vmatmul.msk.f32.gmra.mxu1 %vm507_vm0, %v2441_v3  ;;  %1795 = vmatmul.msk.f32.gmra.mxu3 %vm507_vm0, %v500_v18  ;;  %v829_v54 = vadd.f32 %v821_v53, %v805_v52  ;;  %v584_v52 = vmul.f32 %v2357_v19, %v2491_v35 }
  0x6d   : > { %v841_v3 = vadd.f32 %v2400_v55, %v829_v54  ;;  %v702_v54 = vadd.f32 %v694_v46, %v667_v45  ;;  %v740_v46 = vld [vmem:[#allocation2 + $0xc9] ss:$2 sm:$0xff] }
  0x72   : > { %1765 = vmatmul.msk.f32.gmra.mxu0 %vm507_vm0, %v841_v3  ;;  %v763_v3 = vld [vmem:[#allocation2 + $0x99] ss:$2 sm:$0xff] }
  0x73   : > { %1784 = vmatmul.msk.f32.gmra.mxu1 %vm507_vm0, %v2452_v22  ;;  %1796 = vmatmul.msk.f32.gmra.mxu3 %vm507_vm0, %v501_v49  ;;  %v493_v22 = vld [vmem:[%s2309_s16 + $0x90] sm:$0xff]  ;;  %v597_v49 = vld [vmem:[#allocation2 + $0x98] ss:$2 sm:$0xff] }
  0x74   : > { %533 = vst.msk [vmem:[#allocation2 + $0xa8] sm:$0xff] %vm507_vm0, %v493_v22  ;;  %v611_v53 = vmul.f32 %v2359_v20, %v597_v49 }
  0x76   : > { %v619_v36 = vadd.f32 %v611_v53, %v584_v52  ;;  %v799_v52 = vmul.f32 %v2379_v38, %v740_v46 }
  0x7a   : > { %1770 = vmatmul.msk.f32.vlgmr.msrb.gmra.mxu0 %vm507_vm0, %v2335_v11  ;;  %v506_v11 = vld [vmem:[%s2309_s16 + $0xf8] sm:$0xff] }
  0x7b   : > { %1785 = vmatmul.msk.f32.gmra.mxu1 %vm507_vm0, %v2455_v26  ;;  %1797 = vmatmul.msk.f32.gmra.mxu3 %vm507_vm0, %v502_v60  ;;  %v494_v26 = vld [vmem:[%s2309_s16 + $0x98] sm:$0xff]  ;;  %546 = vst.msk [vmem:[#allocation2 + $0x110] sm:$0xff] %vm507_vm0, %v506_v11  ;;  %s2138_s16 = smov 32  }
  0x7c   : > { %534 = vst.msk [vmem:[#allocation2 + $0xb0] sm:$0xff] %vm507_vm0, %v494_v26 }
  0x82   : > { %1771 = vmatmul.msk.f32.gmra.mxu0 %vm507_vm0, %v2339_v13  ;;  %v2566_v13 = vld [vmem:[%s2903_s6] ss:$0 sm:$0xff] }
  0x83   : > { %1786 = vmatmul.msk.f32.gmra.mxu1 %vm507_vm0, %v491_v58  ;;  %1798 = vmatmul.msk.f32.gmra.mxu3 %vm507_vm0, %v503_v63  ;;  %v655_v50 = vld [vmem:[#allocation2 + $0xa7] ss:$2 sm:$0xff]  ;;  %v572_v58 = vld [vmem:[#allocation2 + $0xa8] ss:$2 sm:$0xff]  ;;  %v750_v63 = vmul.f32 %v2370_v28, %v2495_v37 }
  0x84   : > { %v715_v60 = vmul.f32 %v2367_v25, %v655_v50 }
  0x8a   : > { %1772 = vmatmul.msk.f32.gmra.mxu0 %vm507_vm0, %v2342_v14 }
  0x8b   : > { %1787 = vmatmul.msk.f32.gmra.mxu1 %vm507_vm0, %v492_v62  ;;  %1799 = vmatmul.msk.f32.gmra.mxu3 %vm507_vm0, %v504_v0  ;;  %v632_v62 = vmul.f32 %v2361_v21, %v572_v58  ;;  %v723_v0 = vadd.f32 %v715_v60, %v702_v54  ;;  %v684_v60 = vld [vmem:[#allocation2 + $0xd7] ss:$2 sm:$0xff] }
  0x92   : > { %1773 = vmatmul.msk.f32.gmra.mxu0 %vm507_vm0, %v2345_v16 }
  0x93   : > { %1788 = vmatmul.msk.f32.gmra.mxu1 %vm507_vm0, %v493_v22  ;;  %1800 = vmatmul.msk.f32.gmra.mxu3 %vm507_vm0, %v505_v2  ;;  %v777_v22 = vmul.f32 %v2372_v29, %v763_v3 }
  0x9a   : > { %1774 = vmatmul.msk.f32.gmra.mxu0 %vm507_vm0, %v2405_v56 }
  0x9b   : > { %1789 = vmatmul.msk.f32.gmra.mxu1 %vm507_vm0, %v494_v26  ;;  %1801 = vmatmul.msk.f32.gmra.mxu3 %vm507_vm0, %v506_v11  ;;  %v738_v26 = vld [vmem:[#allocation2 + $0xa9] ss:$2 sm:$0xff] }
  0xa2   : > { %1775 = vmatmul.msk.f32.gmra.mxu0 %vm507_vm0, %v2409_v57 }
  0xaa   : > { %1776 = vmatmul.msk.f32.gmra.mxu0 %vm507_vm0, %v2413_v59 }
  0xb2   : > { %1777 = vmatmul.msk.f32.gmra.mxu0 %vm507_vm0, %v2417_v61 }
  0xc0   : > { %v1072_v14 = vpop.f32.mrf.mxu1 }
  0xc1   : > { %v1073_v16 = vadd.f32 %v2566_v13, %v1072_v14  ;;  %v640_v14 = vadd.f32 %v632_v62, %v619_v36 }
  0xc3   : > { %v1152_v4 = vmax.f32 %v1073_v16, 0.0  ;;  %v785_v16 = vadd.f32 %v777_v22, %v750_v63 }
  0xc5   : > { %1190 = vst.msk [vmem:[#allocation3 + $0x58] sm:$0xff] %vm507_vm0, %v1152_v4  ;;  %v798_v4 = vmul.f32 %v2379_v38, %v738_v26 }
  0xc6   : > { %v1108_v56 = vpop.f32.mrf.mxu3 }
  0xc7   : > { %v1109_v57 = vadd.f32 %v2566_v13, %v1108_v56 }
  0xc8   : > { %v1075_v5 = vpop.f32.mrf.mxu1 }
  0xc9   : > { %v1076_v59 = vadd.f32 %v2566_v13, %v1075_v5  ;;  %v1164_v6 = vmax.f32 %v1109_v57, 0.0  ;;  %v814_v5 = vmul.f32 %v2387_v47, %v723_v0  ;;  %v601_v0 = vld [vmem:[#allocation2 + $0xd8] ss:$2 sm:$0xff] }
  0xcb   : > { %v1153_v7 = vmax.f32 %v1076_v59, 0.0  ;;  %1202 = vst.msk [vmem:[#allocation3 + $0xb8] sm:$0xff] %vm507_vm0, %v1164_v6  ;;  %v682_v59 = vld [vmem:[#allocation2 + $0xb7] ss:$2 sm:$0xff] }
  0xcd   : > { %1191 = vst.msk [vmem:[#allocation3 + $0x60] sm:$0xff] %vm507_vm0, %v1153_v7  ;;  %v806_v7 = vadd.f32 %v798_v4, %v785_v16  ;;  %v613_v16 = vmul.f32 %v2359_v20, %v601_v0 }
  0xce   : > { %v1111_v61 = vpop.f32.mrf.mxu3 }
  0xcf   : > { %v1112_v9 = vadd.f32 %v2566_v13, %v1111_v61  ;;  %v668_v61 = vmul.f32 %v2363_v23, %v655_v50 }
  0xd0   : > { %v1078_v8 = vpop.f32.mrf.mxu1 }
  0xd1   : > { %v1079_v12 = vadd.f32 %v2566_v13, %v1078_v8  ;;  %v1165_v15 = vmax.f32 %v1112_v9, 0.0  ;;  %v822_v9 = vadd.f32 %v814_v5, %v640_v14 }
  0xd3   : > { %v1154_v17 = vmax.f32 %v1079_v12, 0.0  ;;  %1203 = vst.msk [vmem:[#allocation3 + $0xc0] sm:$0xff] %vm507_vm0, %v1165_v15  ;;  %v599_v12 = vld [vmem:[#allocation2 + $0xb8] ss:$2 sm:$0xff]  ;;  %v657_v15 = vld [vmem:[#allocation2 + $0xc7] ss:$2 sm:$0xff] }
  0xd4   : > { %v669_v63 = vmul.f32 %v2363_v23, %v657_v15 }
  0xd5   : > { %v895_v18 = vpop.f32.mrf.mxu0  ;;  %1192 = vst.msk [vmem:[#allocation3 + $0x68] sm:$0xff] %vm507_vm0, %v1154_v17  ;;  %v695_v17 = vmul.f32 %v2365_v24, %v682_v59  ;;  %v767_v59 = vld [vmem:[#allocation2 + $0xd9] ss:$2 sm:$0xff] }
  0xd6   : > { %v896_v27 = vadd.f32 %v2580_v10, %v895_v18  ;;  %v1114_v31 = vpop.f32.mrf.mxu3 }
  0xd7   : > { %v1115_v33 = vadd.f32 %v2566_v13, %v1114_v31  ;;  %v716_v31 = vmul.f32 %v2367_v25, %v657_v15  ;;  %v742_v15 = vld [vmem:[#allocation2 + $0xe9] ss:$2 sm:$0xff] }
  0xd8   : > { %v919_v30 = vmax.f32 %v896_v27, 0.0  ;;  %v1081_v32 = vpop.f32.mrf.mxu1  ;;  %v585_v27 = vmul.f32 %v2357_v19, %v572_v58 }
  0xd9   : > { %v1082_v34 = vadd.f32 %v2566_v13, %v1081_v32  ;;  %v1166_v1 = vmax.f32 %v1115_v33, 0.0  ;;  %v830_v32 = vadd.f32 %v822_v9, %v806_v7  ;;  %v574_v33 = vld [vmem:[#allocation2 + $0xc8] ss:$2 sm:$0xff]  ;;  %v752_v7 = vmul.f32 %v2370_v28, %v740_v46 }
  0xda   : > { %1589 = vst.msk [vmem:[%s2589_s29] sm:$0xff] %vm507_vm0, %v919_v30  ;;  %v612_v30 = vmul.f32 %v2359_v20, %v599_v12  ;;  %v586_v14 = vmul.f32 %v2357_v19, %v574_v33 }
  0xdb   : > { %v1155_v39 = vmax.f32 %v1082_v34, 0.0  ;;  %1204 = vst.msk [vmem:[#allocation3 + $0xc8] sm:$0xff] %vm507_vm0, %v1166_v1  ;;  %v703_v34 = vadd.f32 %v695_v17, %v668_v61  ;;  %v765_v1 = vld [vmem:[#allocation2 + $0xb9] ss:$2 sm:$0xff]  ;;  %v779_v61 = vmul.f32 %v2372_v29, %v767_v59 }
  0xdd   : > { %1193 = vst.msk [vmem:[#allocation3 + $0x70] sm:$0xff] %vm507_vm0, %v1155_v39  ;;  %v620_v39 = vadd.f32 %v612_v30, %v585_v27  ;;  %v724_v45 = vadd.f32 %v716_v31, %v703_v34  ;;  %v787_v30 = vadd.f32 %v779_v61, %v752_v7  ;;  %v800_v31 = vmul.f32 %v2379_v38, %v742_v15 }
  0xde   : > { %v1117_v40 = vpop.f32.mrf.mxu3 }
  0xdf   : > { %v1118_v42 = vadd.f32 %v2566_v13, %v1117_v40  ;;  %v898_v35 = vpop.f32.mrf.mxu0  ;;  %v633_v40 = vmul.f32 %v2361_v21, %v574_v33  ;;  %v815_v58 = vmul.f32 %v2387_v47, %v724_v45  ;;  %v603_v45 = vld [vmem:[#allocation2 + $0xf8] ss:$2 sm:$0xff] }
  0xe0   : > { %v1084_v41 = vpop.f32.mrf.mxu1  ;;  %v899_v2 = vadd.f32 %v2580_v10, %v898_v35 }
  0xe1   : > { %v1085_v44 = vadd.f32 %v2566_v13, %v1084_v41  ;;  %v1167_v48 = vmax.f32 %v1118_v42, 0.0  ;;  %v751_v41 = vmul.f32 %v2370_v28, %v738_v26  ;;  %v778_v42 = vmul.f32 %v2372_v29, %v765_v1  ;;  %v659_v26 = vld [vmem:[#allocation2 + $0xe7] ss:$2 sm:$0xff]  ;;  %v686_v1 = vld [vmem:[#allocation2 + $0xf7] ss:$2 sm:$0xff] }
  0xe2   : > { %v920_v37 = vmax.f32 %v899_v2, 0.0  ;;  %v641_v50 = vadd.f32 %v633_v40, %v620_v39  ;;  %v696_v2 = vmul.f32 %v2365_v24, %v684_v60  ;;  %v717_v4 = vmul.f32 %v2367_v25, %v659_v26 }
  0xe3   : > { %v1156_v51 = vmax.f32 %v1085_v44, 0.0  ;;  %1205 = vst.msk [vmem:[#allocation3 + $0xd0] sm:$0xff] %vm507_vm0, %v1167_v48  ;;  %v842_v44 = vadd.f32 %v2400_v55, %v830_v32  ;;  %v697_v46 = vmul.f32 %v2365_v24, %v686_v1 }
  0xe4   : > { %1590 = vst.msk [vmem:[%s2589_s29 + $0x8] sm:$0xff] %vm507_vm0, %v920_v37  ;;  %v823_v35 = vadd.f32 %v815_v58, %v641_v50  ;;  %v704_v5 = vadd.f32 %v696_v2, %v669_v63  ;;  %v621_v37 = vadd.f32 %v613_v16, %v586_v14  ;;  %v769_v58 = vld [vmem:[#allocation2 + $0xf9] ss:$2 sm:$0xff] }
  0xe5   : > { %1194 = vst.msk [vmem:[#allocation3 + $0x78] sm:$0xff] %vm507_vm0, %v1156_v51  ;;  %v786_v51 = vadd.f32 %v778_v42, %v751_v41  ;;  %1766 = vmatmul.msk.f32.vlgmr.msra.gmra.mxu2 %vm507_vm0, %v842_v44  ;;  %v808_v41 = vadd.f32 %v800_v31, %v787_v30  ;;  %v670_v42 = vmul.f32 %v2363_v23, %v659_v26 }
  0xe6   : > { %v1120_v11 = vpop.f32.mrf.mxu3  ;;  %v725_v12 = vadd.f32 %v717_v4, %v704_v5 }
  0xe7   : > { %v1121_v57 = vadd.f32 %v2566_v13, %v1120_v11  ;;  %v901_v43 = vpop.f32.mrf.mxu0  ;;  %v807_v62 = vadd.f32 %v799_v52, %v786_v51  ;;  %v614_v51 = vmul.f32 %v2359_v20, %v603_v45  ;;  %v705_v23 = vadd.f32 %v697_v46, %v670_v42 }
  0xe8   : > { %v1087_v56 = vpop.f32.mrf.mxu1  ;;  %v902_v48 = vadd.f32 %v2580_v10, %v901_v43  ;;  %v816_v34 = vmul.f32 %v2387_v47, %v725_v12  ;;  %v1510_v12 = vld [vmem:[#allocation11 + $0x10] sm:$0xff] }
  0xe9   : > { %v1088_v6 = vadd.f32 %v2566_v13, %v1087_v56  ;;  %v1168_v8 = vmax.f32 %v1121_v57, 0.0  ;;  %v831_v56 = vadd.f32 %v823_v35, %v807_v62  ;;  %v576_v57 = vld [vmem:[#allocation2 + $0xe8] ss:$2 sm:$0xff] }
  0xea   : > { %v921_v3 = vmax.f32 %v902_v48, 0.0  ;;  %v707_v48 = vld [vmem:[#allocation2 + $0x107] ss:$2 sm:$0xff]  ;;  %v587_v50 = vmul.f32 %v2357_v19, %v576_v57 }
  0xeb   : > { %v1157_v18 = vmax.f32 %v1088_v6, 0.0  ;;  %1206 = vst.msk [vmem:[#allocation3 + $0xd8] sm:$0xff] %vm507_vm0, %v1168_v8  ;;  %v634_v6 = vmul.f32 %v2361_v21, %v576_v57  ;;  %v843_v9 = vadd.f32 %v2400_v55, %v831_v56  ;;  %v718_v52 = vmul.f32 %v2367_v25, %v707_v48  ;;  %v790_v25 = vld [vmem:[#allocation2 + $0x109] ss:$2 sm:$0xff] }
  0xec   : > { %1591 = vst.msk [vmem:[%s2589_s29 + $0x10] sm:$0xff] %vm507_vm0, %v921_v3  ;;  %v622_v60 = vadd.f32 %v614_v51, %v587_v50  ;;  %v753_v3 = vmul.f32 %v2370_v28, %v742_v15  ;;  %v801_v26 = vmul.f32 %v2379_v38, %v790_v25  ;;  %v2698_v51 = vld [vmem:[%s2904_s7] ss:$0 sm:$0xff]  ;;  %v1390_v25 = vld [vmem:[#allocation3 + $0x9] ss:$2 sm:$0xff] }
  0xed   : > { %1195 = vst.msk [vmem:[#allocation3 + $0x80] sm:$0xff] %vm507_vm0, %v1157_v18  ;;  %v642_v27 = vadd.f32 %v634_v6, %v621_v37  ;;  %1767 = vmatmul.msk.f32.gmra.mxu2 %vm507_vm0, %v843_v9  ;;  %v726_v62 = vadd.f32 %v718_v52, %v705_v23  ;;  %v1511_v6 = vld [vmem:[#allocation11 + $0x18] sm:$0xff] }
  0xee   : > { %v1123_v49 = vpop.f32.mrf.mxu3  ;;  %1552 = vmatpush.msrb.mxu2 %v1511_v6  ;;  %v1307_v52 = vld [vmem:[#allocation3 + $0x7] ss:$2 sm:$0xff] }
  0xef   : > { %v1124_v54 = vadd.f32 %v2566_v13, %v1123_v49  ;;  %v904_v8 = vpop.f32.mrf.mxu0  ;;  %v824_v44 = vadd.f32 %v816_v34, %v642_v27  ;;  %v2710_v23 = vld [vmem:[%s2904_s7 + $0x3] ss:$0 sm:$0xff] }
  0xf0   : > { %v1090_v53 = vpop.f32.mrf.mxu1  ;;  %v905_v17 = vadd.f32 %v2580_v10, %v904_v8  ;;  %1553 = vmatpush.msrb.mxu2 %v1510_v12 }
  0xf1   : > { %v1091_v36 = vadd.f32 %v2566_v13, %v1090_v53  ;;  %v1169_v22 = vmax.f32 %v1124_v54, 0.0  ;;  %v832_v53 = vadd.f32 %v824_v44, %v808_v41  ;;  %v624_v54 = vld [vmem:[#allocation2 + $0x108] ss:$2 sm:$0xff] }
  0xf2   : > { %v922_v39 = vmax.f32 %v905_v17, 0.0  ;;  %v635_v24 = vmul.f32 %v2361_v21, %v624_v54  ;;  %v817_v21 = vmul.f32 %v2387_v47, %v726_v62  ;;  %v2705_v54 = vld [vmem:[%s2904_s7 + $0x1] ss:$0 sm:$0xff] }
  0xf3   : > { %v1158_v11 = vmax.f32 %v1091_v36, 0.0  ;;  %1207 = vst.msk [vmem:[#allocation3 + $0xe0] sm:$0xff] %vm507_vm0, %v1169_v22  ;;  %v780_v36 = vmul.f32 %v2372_v29, %v769_v58  ;;  %v844_v20 = vadd.f32 %v2400_v55, %v832_v53 }
  0xf4   : > { %1592 = vst.msk [vmem:[%s2589_s29 + $0x18] sm:$0xff] %vm507_vm0, %v922_v39  ;;  %v643_v35 = vadd.f32 %v635_v24, %v622_v60  ;;  %v1224_v60 = vld [vmem:[#allocation3 + $0x8] ss:$2 sm:$0xff] }
  0xf5   : > { %1196 = vst.msk [vmem:[#allocation3 + $0x88] sm:$0xff] %vm507_vm0, %v1158_v11  ;;  %v788_v0 = vadd.f32 %v780_v36, %v753_v3  ;;  %1768 = vmatmul.msk.f32.gmra.mxu2 %vm507_vm0, %v844_v20  ;;  %v2715_v3 = vld [vmem:[%s2904_s7 + $0x2] ss:$0 sm:$0xff]  ;;  %v1325_v20 = vmul.f32 %v2698_v51, %v1307_v52 }
  0xf6   : > { %v1126_v18 = vpop.f32.mrf.mxu3  ;;  %v825_v4 = vadd.f32 %v817_v21, %v643_v35  ;;  %v2728_v35 = vld [vmem:[%s2904_s7 + $0x5] ss:$0 sm:$0xff]  ;;  %v2736_v21 = vld [vmem:[%s2904_s7 + $0x7] ss:$0 sm:$0xff] }
  0xf7   : > { %v1127_v33 = vadd.f32 %v2566_v13, %v1126_v18  ;;  %v1048_v19 = vpop.f32.mrf.mxu0  ;;  %v809_v14 = vadd.f32 %v801_v26, %v788_v0  ;;  %v1508_v18 = vld [vmem:[#allocation11] sm:$0xff] }
  0xf8   : > { %v1093_v32 = vpop.f32.mrf.mxu1  ;;  %v1049_v63 = vadd.f32 %v2566_v13, %v1048_v19  ;;  %v2721_v19 = vld [vmem:[%s2904_s7 + $0x4] ss:$0 sm:$0xff] }
  0xf9   : > { %v1094_v40 = vadd.f32 %v2566_v13, %v1093_v32  ;;  %v1170_v43 = vmax.f32 %v1127_v33, 0.0  ;;  %v833_v57 = vadd.f32 %v825_v4, %v809_v14  ;;  %v1408_v4 = vmul.f32 %v2715_v3, %v1390_v25 }
  0xfa   : > { %v1144_v28 = vmax.f32 %v1049_v63, 0.0 }
  0xfb   : > { %v1159_v49 = vmax.f32 %v1094_v40, 0.0  ;;  %1208 = vst.msk [vmem:[#allocation3 + $0xe8] sm:$0xff] %vm507_vm0, %v1170_v43  ;;  %v845_v5 = vadd.f32 %v2400_v55, %v833_v57  ;;  %v1509_v55 = vld [vmem:[#allocation11 + $0x8] sm:$0xff] }
  0xfc   : > { %1182 = vst.msk [vmem:[#allocation3 + $0x18] sm:$0xff] %vm507_vm0, %v1144_v28  ;;  %1554 = vmatpush.msrb.mxu2 %v1509_v55  ;;  %v2741_v28 = vld [vmem:[%s2904_s7 + $0x6] ss:$0 sm:$0xff] }
  0xfd   : > { %1197 = vst.msk [vmem:[#allocation3 + $0x90] sm:$0xff] %vm507_vm0, %v1159_v49  ;;  %1769 = vmatmul.msk.f32.gmra.mxu2 %vm507_vm0, %v845_v5 }
  0xfe   : > { %v1129_v22 = vpop.f32.mrf.mxu3  ;;  %1555 = vmatpush.msrb.mxu2 %v1508_v18 }
  0xff   : > { %v1130_v11 = vadd.f32 %v2566_v13, %v1129_v22  ;;  %v1051_v38 = vpop.f32.mrf.mxu0 }
 0x100   : > { %v1096_v2 = vpop.f32.mrf.mxu1  ;;  %v1052_v59 = vadd.f32 %v2566_v13, %v1051_v38 }
 0x101   : > { %v1097_v29 = vadd.f32 %v2566_v13, %v1096_v2  ;;  %v1171_v16 = vmax.f32 %v1130_v11, 0.0  ;;  %v1242_v2 = vmul.f32 %v2705_v54, %v1224_v60 }
 0x102   : > { %v1145_v8 = vmax.f32 %v1052_v59, 0.0  ;;  %v2751_v59 = vld [vmem:[%s2904_s7 + $0x8] ss:$0 sm:$0xff] }
 0x103   : > { %v1160_v56 = vmax.f32 %v1097_v29, 0.0  ;;  %1209 = vst.msk [vmem:[#allocation3 + $0xf0] sm:$0xff] %vm507_vm0, %v1171_v16 }
 0x104   : > { %1183 = vst.msk [vmem:[#allocation3 + $0x20] sm:$0xff] %vm507_vm0, %v1145_v8 }
 0x105   : > { %1198 = vst.msk [vmem:[#allocation3 + $0x98] sm:$0xff] %vm507_vm0, %v1160_v56 }
 0x106   : > { %v1132_v37 = vpop.f32.mrf.mxu3 }
 0x107   : > { %v1133_v61 = vadd.f32 %v2566_v13, %v1132_v37  ;;  %v1054_v27 = vpop.f32.mrf.mxu0 }
 0x108   : > { %v1099_v7 = vpop.f32.mrf.mxu1  ;;  %v1055_v30 = vadd.f32 %v2566_v13, %v1054_v27 }
 0x109   : > { %v1100_v9 = vadd.f32 %v2566_v13, %v1099_v7  ;;  %v1172_v15 = vmax.f32 %v1133_v61, 0.0 }
 0x10a   : > { %v1146_v34 = vmax.f32 %v1055_v30, 0.0 }
 0x10b   : > { %v1161_v17 = vmax.f32 %v1100_v9, 0.0  ;;  %1210 = vst.msk [vmem:[#allocation3 + $0xf8] sm:$0xff] %vm507_vm0, %v1172_v15  ;;  %v1334_v53 = vld [vmem:[#allocation3 + $0x17] ss:$2 sm:$0xff]  ;;  %v1251_v24 = vld [vmem:[#allocation3 + $0x18] ss:$2 sm:$0xff] }
 0x10c   : > { %1184 = vst.msk [vmem:[#allocation3 + $0x28] sm:$0xff] %vm507_vm0, %v1146_v34  ;;  %v1352_v62 = vmul.f32 %v2710_v23, %v1334_v53  ;;  %v1417_v63 = vld [vmem:[#allocation3 + $0x19] ss:$2 sm:$0xff]  ;;  %v1269_v11 = vmul.f32 %v2721_v19, %v1251_v24 }
 0x10d   : > { %1199 = vst.msk [vmem:[#allocation3 + $0xa0] sm:$0xff] %vm507_vm0, %v1161_v17  ;;  %v1435_v56 = vmul.f32 %v2728_v35, %v1417_v63  ;;  %v1340_v63 = vld [vmem:[#allocation3 + $0x77] ss:$2 sm:$0xff] }
 0x10e   : > { %v1135_v31 = vpop.f32.mrf.mxu3  ;;  %v1360_v38 = vadd.f32 %v1352_v62, %v1325_v20  ;;  %v1277_v6 = vadd.f32 %v1269_v11, %v1242_v2 }
 0x10f   : > { %v1136_v33 = vadd.f32 %v2566_v13, %v1135_v31  ;;  %v1057_v41 = vpop.f32.mrf.mxu0  ;;  %v1443_v15 = vadd.f32 %v1435_v56, %v1408_v4  ;;  %v2761_v31 = vld [vmem:[%s2905_s8] ss:$0 sm:$0xff]  ;;  %v1257_v56 = vld [vmem:[#allocation3 + $0x78] ss:$2 sm:$0xff] }
 0x110   : > { %v1102_v32 = vpop.f32.mrf.mxu1  ;;  %v1058_v42 = vadd.f32 %v2566_v13, %v1057_v41  ;;  %v1230_v4 = vld [vmem:[#allocation3 + $0x68] ss:$2 sm:$0xff] }
 0x111   : > { %v1103_v1 = vadd.f32 %v2566_v13, %v1102_v32  ;;  %v1173_v39 = vmax.f32 %v1136_v33, 0.0 }
 0x112   : > { %v1147_v46 = vmax.f32 %v1058_v42, 0.0 }
 0x113   : > { %v1162_v40 = vmax.f32 %v1103_v1, 0.0  ;;  %1211 = vst.msk [vmem:[#allocation3 + $0x100] sm:$0xff] %vm507_vm0, %v1173_v39 }
 0x114   : > { %1185 = vst.msk [vmem:[#allocation3 + $0x30] sm:$0xff] %vm507_vm0, %v1147_v46 }
 0x115   : > { %1200 = vst.msk [vmem:[#allocation3 + $0xa8] sm:$0xff] %vm507_vm0, %v1162_v40 }
 0x116   : > { %v1138_v43 = vpop.f32.mrf.mxu3 }
 0x117   : > { %v1139_v45 = vadd.f32 %v2566_v13, %v1138_v43  ;;  %v1060_v58 = vpop.f32.mrf.mxu0 }
 0x118   : > { %v1105_v44 = vpop.f32.mrf.mxu1  ;;  %v1061_v36 = vadd.f32 %v2566_v13, %v1060_v58 }
 0x119   : > { %v1106_v48 = vadd.f32 %v2566_v13, %v1105_v44  ;;  %v1174_v49 = vmax.f32 %v1139_v45, 0.0 }
 0x11a   : > { %v1148_v26 = vmax.f32 %v1061_v36, 0.0 }
 0x11b   : > { %v1163_v50 = vmax.f32 %v1106_v48, 0.0  ;;  %1212 = vst.msk [vmem:[#allocation3 + $0x108] sm:$0xff] %vm507_vm0, %v1174_v49  ;;  %v1226_v29 = vld [vmem:[#allocation3 + $0x28] ss:$2 sm:$0xff]  ;;  %v1309_v14 = vld [vmem:[#allocation3 + $0x27] ss:$2 sm:$0xff] }
 0x11c   : > { %v1392_v16 = vld [vmem:[#allocation3 + $0x29] ss:$2 sm:$0xff]  ;;  %1186 = vst.msk [vmem:[#allocation3 + $0x38] sm:$0xff] %vm507_vm0, %v1148_v26  ;;  %v1290_v57 = vmul.f32 %v2736_v21, %v1226_v29  ;;  %v1373_v5 = vmul.f32 %v2741_v28, %v1309_v14  ;;  %v1326_v48 = vmul.f32 %v2698_v51, %v1309_v14  ;;  %v1255_v49 = vld [vmem:[#allocation3 + $0x58] ss:$2 sm:$0xff]  ;;  %v1243_v53 = vmul.f32 %v2705_v54, %v1226_v29 }
 0x11d   : > { %1201 = vst.msk [vmem:[#allocation3 + $0xb0] sm:$0xff] %vm507_vm0, %v1163_v50  ;;  %v1456_v61 = vmul.f32 %v2751_v59, %v1392_v16  ;;  %v1313_v50 = vld [vmem:[#allocation3 + $0x67] ss:$2 sm:$0xff] }
 0x11e   : > { %v1141_v22 = vpop.f32.mrf.mxu3  ;;  %v1381_v7 = vadd.f32 %v1373_v5, %v1360_v38  ;;  %v1298_v12 = vadd.f32 %v1290_v57, %v1277_v6  ;;  %v1315_v57 = vld [vmem:[#allocation3 + $0x87] ss:$2 sm:$0xff]  ;;  %v1328_v38 = vmul.f32 %v2698_v51, %v1313_v50  ;;  %v1375_v6 = vmul.f32 %v2741_v28, %v1313_v50 }
 0x11f   : > { %v1142_v0 = vadd.f32 %v2566_v13, %v1141_v22  ;;  %v1063_v8 = vpop.f32.mrf.mxu0  ;;  %v1464_v18 = vadd.f32 %v1456_v61, %v1443_v15  ;;  %v1409_v22 = vmul.f32 %v2715_v3, %v1392_v16  ;;  %v1421_v16 = vld [vmem:[#allocation3 + $0x59] ss:$2 sm:$0xff] }
 0x120   : > { %v1064_v9 = vadd.f32 %v2566_v13, %v1063_v8  ;;  %v1472_v17 = vmul.f32 %v2387_v47, %v1381_v7  ;;  %v1355_v7 = vmul.f32 %v2710_v23, %v1340_v63  ;;  %v1398_v63 = vld [vmem:[#allocation3 + $0x89] ss:$2 sm:$0xff] }
 0x121   : > { %v1175_v37 = vmax.f32 %v1142_v0, 0.0  ;;  %v1271_v0 = vmul.f32 %v2721_v19, %v1255_v49  ;;  %v1342_v49 = vld [vmem:[#allocation3 + $0x97] ss:$2 sm:$0xff] }
 0x122   : > { %v1149_v55 = vmax.f32 %v1064_v9, 0.0  ;;  %v1480_v27 = vadd.f32 %v1472_v17, %v1298_v12  ;;  %v1245_v17 = vmul.f32 %v2705_v54, %v1230_v4 }
 0x123   : > { %1213 = vst.msk [vmem:[#allocation3 + $0x110] sm:$0xff] %vm507_vm0, %v1175_v37 }
 0x124   : > { %1187 = vst.msk [vmem:[#allocation3 + $0x40] sm:$0xff] %vm507_vm0, %v1149_v55  ;;  %v1488_v30 = vadd.f32 %v1480_v27, %v1464_v18  ;;  %v1272_v55 = vmul.f32 %v2721_v19, %v1257_v56  ;;  %v1376_v18 = vmul.f32 %v2741_v28, %v1315_v57  ;;  %v1459_v56 = vmul.f32 %v2751_v59, %v1398_v63 }
 0x126   : > { %v1500_v32 = vadd.f32 %v2761_v31, %v1488_v30 }
 0x127   : > { %v1066_v33 = vpop.f32.mrf.mxu0 }
 0x128   : > { %v1067_v34 = vadd.f32 %v2566_v13, %v1066_v33  ;;  %1802 = vmatmul.msk.f32.vlgmr.msrb.gmra.mxu2 %vm507_vm0, %v1500_v32  ;;  %v1292_v32 = vmul.f32 %v2736_v21, %v1230_v4  ;;  %v1437_v33 = vmul.f32 %v2728_v35, %v1421_v16 }
 0x12a   : > { %v1150_v1 = vmax.f32 %v1067_v34, 0.0  ;;  %v1232_v34 = vld [vmem:[#allocation3 + $0x88] ss:$2 sm:$0xff] }
 0x12b   : > { %v1336_v42 = vld [vmem:[#allocation3 + $0x37] ss:$2 sm:$0xff]  ;;  %v1253_v43 = vld [vmem:[#allocation3 + $0x38] ss:$2 sm:$0xff] }
 0x12c   : > { %1188 = vst.msk [vmem:[#allocation3 + $0x48] sm:$0xff] %vm507_vm0, %v1150_v1  ;;  %v1353_v44 = vmul.f32 %v2710_v23, %v1336_v42  ;;  %v1419_v45 = vld [vmem:[#allocation3 + $0x39] ss:$2 sm:$0xff]  ;;  %v1270_v46 = vmul.f32 %v2721_v19, %v1253_v43  ;;  %v1396_v1 = vld [vmem:[#allocation3 + $0x69] ss:$2 sm:$0xff] }
 0x12e   : > { %v1361_v36 = vadd.f32 %v1353_v44, %v1326_v48  ;;  %v1278_v11 = vadd.f32 %v1270_v46, %v1243_v53  ;;  %v1280_v44 = vadd.f32 %v1272_v55, %v1245_v17  ;;  %v1423_v48 = vld [vmem:[#allocation3 + $0x79] ss:$2 sm:$0xff]  ;;  %v1400_v17 = vld [vmem:[#allocation3 + $0xa9] ss:$2 sm:$0xff] }
 0x12f   : > { %v1069_v39 = vpop.f32.mrf.mxu0  ;;  %v1319_v55 = vld [vmem:[#allocation3 + $0xc7] ss:$2 sm:$0xff] }
 0x130   : > { %v1070_v40 = vadd.f32 %v2566_v13, %v1069_v39  ;;  %v1436_v13 = vmul.f32 %v2728_v35, %v1419_v45  ;;  %v1293_v45 = vmul.f32 %v2736_v21, %v1232_v34 }
 0x132   : > { %v1151_v41 = vmax.f32 %v1070_v40, 0.0  ;;  %v1444_v5 = vadd.f32 %v1436_v13, %v1409_v22  ;;  %v1363_v40 = vadd.f32 %v1355_v7, %v1328_v38  ;;  %v1317_v13 = vld [vmem:[#allocation3 + $0xa7] ss:$2 sm:$0xff] }
 0x134   : > { %1189 = vst.msk [vmem:[#allocation3 + $0x50] sm:$0xff] %vm507_vm0, %v1151_v41  ;;  %v1384_v46 = vadd.f32 %v1376_v18, %v1363_v40 }
 0x136   : > { %v1475_v22 = vmul.f32 %v2387_v47, %v1384_v46  ;;  %v1236_v46 = vld [vmem:[#allocation3 + $0xc8] ss:$2 sm:$0xff] }
 0x13b   : > { %v1228_v52 = vld [vmem:[#allocation3 + $0x48] ss:$2 sm:$0xff]  ;;  %v1311_v58 = vld [vmem:[#allocation3 + $0x47] ss:$2 sm:$0xff]  ;;  %v1338_v25 = vld [vmem:[#allocation3 + $0x57] ss:$2 sm:$0xff] }
 0x13c   : > { %v1394_v60 = vld [vmem:[#allocation3 + $0x49] ss:$2 sm:$0xff]  ;;  %v1291_v24 = vmul.f32 %v2736_v21, %v1228_v52  ;;  %v1374_v20 = vmul.f32 %v2741_v28, %v1311_v58  ;;  %v1244_v62 = vmul.f32 %v2705_v54, %v1228_v52  ;;  %v1327_v26 = vmul.f32 %v2698_v51, %v1311_v58  ;;  %v1259_v58 = vld [vmem:[#allocation3 + $0x98] ss:$2 sm:$0xff] }
 0x13d   : > { %v1354_v2 = vmul.f32 %v2710_v23, %v1338_v25  ;;  %v1457_v14 = vmul.f32 %v2751_v59, %v1394_v60  ;;  %v1410_v12 = vmul.f32 %v2715_v3, %v1394_v60  ;;  %v1458_v52 = vmul.f32 %v2751_v59, %v1396_v1 }
 0x13e   : > { %v1382_v29 = vadd.f32 %v1374_v20, %v1361_v36  ;;  %v1299_v61 = vadd.f32 %v1291_v24, %v1278_v11  ;;  %v1279_v9 = vadd.f32 %v1271_v0, %v1244_v62  ;;  %v1411_v60 = vmul.f32 %v2715_v3, %v1396_v1  ;;  %v1234_v11 = vld [vmem:[#allocation3 + $0xa8] ss:$2 sm:$0xff] }
 0x13f   : > { %v1362_v37 = vadd.f32 %v1354_v2, %v1327_v26  ;;  %v1465_v27 = vadd.f32 %v1457_v14, %v1444_v5  ;;  %v1445_v43 = vadd.f32 %v1437_v33, %v1410_v12  ;;  %v1438_v36 = vmul.f32 %v2728_v35, %v1423_v48  ;;  %v1344_v14 = vld [vmem:[#allocation3 + $0xb7] ss:$2 sm:$0xff] }
 0x140   : > { %v1473_v8 = vmul.f32 %v2387_v47, %v1382_v29  ;;  %v1300_v42 = vadd.f32 %v1292_v32, %v1279_v9  ;;  %v1329_v20 = vmul.f32 %v2698_v51, %v1315_v57  ;;  %v1356_v62 = vmul.f32 %v2710_v23, %v1342_v49  ;;  %v1346_v33 = vld [vmem:[#allocation3 + $0xd7] ss:$2 sm:$0xff] }
 0x141   : > { %v1383_v15 = vadd.f32 %v1375_v6, %v1362_v37  ;;  %v1466_v24 = vadd.f32 %v1458_v52, %v1445_v43  ;;  %v1301_v25 = vadd.f32 %v1293_v45, %v1280_v44  ;;  %v1246_v0 = vmul.f32 %v2705_v54, %v1232_v34  ;;  %v1425_v6 = vld [vmem:[#allocation3 + $0x99] ss:$2 sm:$0xff]  ;;  %v1261_v34 = vld [vmem:[#allocation3 + $0xb8] ss:$2 sm:$0xff] }
 0x142   : > { %v1481_v30 = vadd.f32 %v1473_v8, %v1299_v61  ;;  %v1273_v26 = vmul.f32 %v2721_v19, %v1259_v58  ;;  %v1377_v29 = vmul.f32 %v2741_v28, %v1317_v13  ;;  %v1446_v4 = vadd.f32 %v1438_v36, %v1411_v60  ;;  %v1321_v52 = vld [vmem:[#allocation3 + $0xe7] ss:$2 sm:$0xff] }
 0x143   : > { %v1474_v39 = vmul.f32 %v2387_v47, %v1383_v15  ;;  %v1364_v38 = vadd.f32 %v1356_v62, %v1329_v20  ;;  %v1483_v57 = vadd.f32 %v1475_v22, %v1301_v25  ;;  %v1294_v37 = vmul.f32 %v2736_v21, %v1234_v11 }
 0x144   : > { %v1489_v41 = vadd.f32 %v1481_v30, %v1465_v27  ;;  %v1281_v5 = vadd.f32 %v1273_v26, %v1246_v0  ;;  %v1330_v61 = vmul.f32 %v2698_v51, %v1317_v13  ;;  %v1357_v8 = vmul.f32 %v2710_v23, %v1344_v14 }
 0x145   : > { %v1482_v53 = vadd.f32 %v1474_v39, %v1300_v42  ;;  %v1385_v7 = vadd.f32 %v1377_v29, %v1364_v38  ;;  %v1467_v9 = vadd.f32 %v1459_v56, %v1446_v4  ;;  %v1412_v12 = vmul.f32 %v2715_v3, %v1398_v63  ;;  %v1429_v63 = vld [vmem:[#allocation3 + $0xd9] ss:$2 sm:$0xff] }
 0x146   : > { %v1501_v50 = vadd.f32 %v2761_v31, %v1489_v41  ;;  %v1439_v15 = vmul.f32 %v2728_v35, %v1425_v6  ;;  %v1302_v27 = vadd.f32 %v1294_v37, %v1281_v5  ;;  %v1365_v32 = vadd.f32 %v1357_v8, %v1330_v61  ;;  %v1348_v29 = vld [vmem:[#allocation3 + $0xf7] ss:$2 sm:$0xff]  ;;  %v1265_v8 = vld [vmem:[#allocation3 + $0xf8] ss:$2 sm:$0xff] }
 0x147   : > { %v1490_v2 = vadd.f32 %v1482_v53, %v1466_v24  ;;  %v1491_v18 = vadd.f32 %v1483_v57, %v1467_v9  ;;  %v1476_v30 = vmul.f32 %v2387_v47, %v1385_v7  ;;  %v1460_v39 = vmul.f32 %v2751_v59, %v1400_v17  ;;  %v1427_v53 = vld [vmem:[#allocation3 + $0xb9] ss:$2 sm:$0xff]  ;;  %v1402_v24 = vld [vmem:[#allocation3 + $0xc9] ss:$2 sm:$0xff] }
 0x148   : > { %1803 = vmatmul.msk.f32.gmra.mxu2 %vm507_vm0, %v1501_v50  ;;  %v1447_v1 = vadd.f32 %v1439_v15, %v1412_v12  ;;  %v1247_v40 = vmul.f32 %v2705_v54, %v1234_v11  ;;  %v1378_v41 = vmul.f32 %v2741_v28, %v1319_v55  ;;  %v1331_v42 = vmul.f32 %v2698_v51, %v1319_v55  ;;  %v1263_v50 = vld [vmem:[#allocation3 + $0xd8] ss:$2 sm:$0xff]  ;;  %v1238_v11 = vld [vmem:[#allocation3 + $0xe8] ss:$2 sm:$0xff]  ;;  %v1369_v15 = vld [vmem:[#allocation3 + $0x107] ss:$2 sm:$0xff] }
 0x149   : > { %v1502_v16 = vadd.f32 %v2761_v31, %v1490_v2  ;;  %v1358_v43 = vmul.f32 %v2710_v23, %v1346_v33  ;;  %v1503_v44 = vadd.f32 %v2761_v31, %v1491_v18  ;;  %v1484_v45 = vadd.f32 %v1476_v30, %v1302_v27 }
 0x14a   : > { %v1274_v48 = vmul.f32 %v2721_v19, %v1261_v34  ;;  %v1386_v49 = vadd.f32 %v1378_v41, %v1365_v32  ;;  %v1468_v58 = vadd.f32 %v1460_v39, %v1447_v1  ;;  %v1413_v13 = vmul.f32 %v2715_v3, %v1400_v17  ;;  %v1286_v39 = vld [vmem:[#allocation3 + $0x108] ss:$2 sm:$0xff] }
 0x14b   : > { %v1248_v36 = vmul.f32 %v2705_v54, %v1236_v46  ;;  %v1275_v20 = vmul.f32 %v2721_v19, %v1263_v50  ;;  %v1366_v62 = vadd.f32 %v1358_v43, %v1331_v42  ;;  %v1379_v25 = vmul.f32 %v2741_v28, %v1321_v52 }
 0x14c   : > { %v1282_v60 = vadd.f32 %v1274_v48, %v1247_v40  ;;  %v1492_v22 = vadd.f32 %v1484_v45, %v1468_v58  ;;  %v1295_v0 = vmul.f32 %v2736_v21, %v1236_v46  ;;  %v1440_v26 = vmul.f32 %v2728_v35, %v1427_v53 }
 0x14d   : > { %v1477_v2 = vmul.f32 %v2387_v47, %v1386_v49  ;;  %v1414_v56 = vmul.f32 %v2715_v3, %v1402_v24  ;;  %v1441_v38 = vmul.f32 %v2728_v35, %v1429_v63  ;;  %v1461_v57 = vmul.f32 %v2751_v59, %v1402_v24 }
 0x14e   : > { %v1303_v14 = vadd.f32 %v1295_v0, %v1282_v60  ;;  %v1448_v4 = vadd.f32 %v1440_v26, %v1413_v13  ;;  %v1283_v5 = vadd.f32 %v1275_v20, %v1248_v36  ;;  %v1296_v37 = vmul.f32 %v2736_v21, %v1238_v11 }
 0x14f   : > { %v1387_v6 = vadd.f32 %v1379_v25, %v1366_v62  ;;  %v1504_v7 = vadd.f32 %v2761_v31, %v1492_v22  ;;  %v1332_v9 = vmul.f32 %v2698_v51, %v1321_v52  ;;  %v1359_v12 = vmul.f32 %v2710_v23, %v1348_v29  ;;  %v1431_v23 = vld [vmem:[#allocation3 + $0xf9] ss:$2 sm:$0xff] }
 0x150   : > { %1804 = vmatmul.msk.f32.gmra.mxu2 %vm507_vm0, %v1502_v16  ;;  %v1404_v16 = vld [vmem:[#allocation3 + $0xe9] ss:$2 sm:$0xff]  ;;  %v1485_v61 = vadd.f32 %v1477_v2, %v1303_v14  ;;  %v1469_v17 = vadd.f32 %v1461_v57, %v1448_v4  ;;  %v1449_v55 = vadd.f32 %v1441_v38, %v1414_v56  ;;  %v1304_v27 = vadd.f32 %v1296_v37, %v1283_v5 }
 0x151   : > { %v1462_v18 = vmul.f32 %v2751_v59, %v1404_v16  ;;  %v1478_v30 = vmul.f32 %v2387_v47, %v1387_v6  ;;  %v1249_v32 = vmul.f32 %v2705_v54, %v1238_v11  ;;  %v1276_v33 = vmul.f32 %v2721_v19, %v1265_v8  ;;  %v1452_v19 = vld [vmem:[#allocation3 + $0x109] ss:$2 sm:$0xff] }
 0x152   : > { %v1493_v34 = vadd.f32 %v1485_v61, %v1469_v17  ;;  %v1367_v1 = vadd.f32 %v1359_v12, %v1332_v9  ;;  %v1380_v51 = vmul.f32 %v2741_v28, %v1369_v15  ;;  %v1415_v43 = vmul.f32 %v2715_v3, %v1404_v16 }
 0x153   : > { %v1470_v40 = vadd.f32 %v1462_v18, %v1449_v55  ;;  %v1486_v41 = vadd.f32 %v1478_v30, %v1304_v27  ;;  %v1284_v42 = vadd.f32 %v1276_v33, %v1249_v32  ;;  %v1297_v45 = vmul.f32 %v2736_v21, %v1286_v39 }
 0x154   : > { %v1388_v46 = vadd.f32 %v1380_v51, %v1367_v1  ;;  %v1442_v54 = vmul.f32 %v2728_v35, %v1431_v23  ;;  %v1463_v50 = vmul.f32 %v2751_v59, %v1452_v19 }
 0x155   : > { %v1494_v48 = vadd.f32 %v1486_v41, %v1470_v40  ;;  %v1305_v28 = vadd.f32 %v1297_v45, %v1284_v42 }
 0x156   : > { %v1450_v49 = vadd.f32 %v1442_v54, %v1415_v43  ;;  %v1479_v52 = vmul.f32 %v2387_v47, %v1388_v46 }
 0x157   : > { %v1506_v21 = vadd.f32 %v2761_v31, %v1494_v48 }
 0x158   : > { %1805 = vmatmul.msk.f32.gmra.mxu2 %vm507_vm0, %v1503_v44  ;;  %v1505_v44 = vadd.f32 %v2761_v31, %v1493_v34  ;;  %v1471_v58 = vadd.f32 %v1463_v50, %v1450_v49  ;;  %v1487_v60 = vadd.f32 %v1479_v52, %v1305_v28 }
 0x15a   : > { %v1495_v13 = vadd.f32 %v1487_v60, %v1471_v58 }
 0x15c   : > { %v1507_v47 = vadd.f32 %v2761_v31, %v1495_v13  ;;  %v1934_v31 = vld [vmem:[%s2907_s10] ss:$0 sm:$0xff] }
 0x160   : > { %1806 = vmatmul.msk.f32.gmra.mxu2 %vm507_vm0, %v1504_v7 }
 0x168   : > { %1807 = vmatmul.msk.f32.gmra.mxu2 %vm507_vm0, %v1505_v44  ;;  %v907_v3 = vpop.f32.mrf.mxu2 }
 0x169   : > { %v908_v53 = vadd.f32 %v2580_v10, %v907_v3 }
 0x16b   : > { %v923_v35 = vmax.f32 %v908_v53, 0.0 }
 0x16d   : > { %1593 = vst.msk [vmem:[%s2589_s29 + $0x20] sm:$0xff] %vm507_vm0, %v923_v35 }
 0x170   : > { %1808 = vmatmul.msk.f32.gmra.mxu2 %vm507_vm0, %v1506_v21  ;;  %v910_v24 = vpop.f32.mrf.mxu2 }
 0x171   : > { %v911_v59 = vadd.f32 %v2580_v10, %v910_v24 }
 0x173   : > { %v924_v36 = vmax.f32 %v911_v59, 0.0 }
 0x175   : > { %1594 = vst.msk [vmem:[%s2589_s29 + $0x28] sm:$0xff] %vm507_vm0, %v924_v36 }
 0x178   : > { %1809 = vmatmul.msk.f32.gmra.mxu2 %vm507_vm0, %v1507_v47  ;;  %v913_v20 = vpop.f32.mrf.mxu2 }
 0x179   : > { %v914_v62 = vadd.f32 %v2580_v10, %v913_v20 }
 0x17b   : > { %v925_v25 = vmax.f32 %v914_v62, 0.0 }
 0x17d   : > { %1595 = vst.msk [vmem:[%s2589_s29 + $0x30] sm:$0xff] %vm507_vm0, %v925_v25 }
 0x180   : > { %v916_v63 = vpop.f32.mrf.mxu2 }
 0x181   : > { %v917_v22 = vadd.f32 %v2580_v10, %v916_v63 }
 0x183   : > { %v926_v0 = vmax.f32 %v917_v22, 0.0 }
 0x185   : > { %1596 = vst.msk [vmem:[%s2589_s29 + $0x38] sm:$0xff] %vm507_vm0, %v926_v0 }
 0x1ab   : > { %v1557_v26 = vpop.f32.mrf.mxu2 }
 0x1ac   : > { %v1558_v2 = vadd.f32 %v1934_v31, %v1557_v26 }
 0x1ae   : > { %v1581_v11 = vmax.f32 %v1558_v2, 0.0 }
 0x1b0   : > { %1605 = vrot.lane.b32.xlu0 %v1581_v11, %s2138_s16 }
 0x1cb   : > { %v1560_v29 = vpop.f32.mrf.mxu2 }
 0x1cc   : > { %v1561_v14 = vadd.f32 %v1934_v31, %v1560_v29 }
 0x1ce   : > { %v1582_v4 = vmax.f32 %v1561_v14, 0.0 }
 0x1d0   : > { %1607 = vrot.lane.b32.xlu0 %v1582_v4, %s2138_s16 }
 0x1d3   : > { %v1563_v56 = vpop.f32.mrf.mxu2 }
 0x1d4   : > { %v1564_v38 = vadd.f32 %v1934_v31, %v1563_v56 }
 0x1d6   : > { %v1583_v57 = vmax.f32 %v1564_v38, 0.0 }
 0x1d8   : > { %1609 = vrot.lane.b32.xlu1 %v1583_v57, %s2138_s16 }
 0x1db   : > { %v1566_v10 = vpop.f32.mrf.mxu2 }
 0x1dc   : > { %v1567_v5 = vadd.f32 %v1934_v31, %v1566_v10 }
 0x1de   : > { %v1584_v37 = vmax.f32 %v1567_v5, 0.0 }
 0x1e0   : > { %1611 = vrot.lane.b32.xlu1 %v1584_v37, %s2138_s16 }
 0x1e3   : > { %v1569_v6 = vpop.f32.mrf.mxu2 }
 0x1e4   : > { %v1570_v16 = vadd.f32 %v1934_v31, %v1569_v6 }
 0x1e6   : > { %v1585_v7 = vmax.f32 %v1570_v16, 0.0 }
 0x1e8   : > { %1613 = vrot.lane.b32.xlu2 %v1585_v7, %s2138_s16 }
 0x1eb   : > { %v1572_v61 = vpop.f32.mrf.mxu2 }
 0x1ec   : > { %v1573_v8 = vadd.f32 %v1934_v31, %v1572_v61 }
 0x1ee   : > { %v1586_v9 = vmax.f32 %v1573_v8, 0.0 }
 0x1f0   : > { %1615 = vrot.lane.b32.xlu2 %v1586_v9, %s2138_s16 }
 0x1f3   : > { %v1575_v12 = vpop.f32.mrf.mxu2 }
 0x1f4   : > { %v1576_v15 = vadd.f32 %v1934_v31, %v1575_v12 }
 0x1f6   : > { %v1587_v17 = vmax.f32 %v1576_v15, 0.0 }
 0x1f8   : > { %1617 = vrot.lane.b32.xlu0 %v1587_v17, %s2138_s16 }
 0x1fb   : > { %v1578_v55 = vpop.f32.mrf.mxu2 }
 0x1fc   : > { %v1579_v18 = vadd.f32 %v1934_v31, %v1578_v55 }
 0x1fe   : > { %v1588_v27 = vmax.f32 %v1579_v18, 0.0 }
 0x200   : > { %1619 = vrot.lane.b32.xlu1 %v1588_v27, %s2138_s16 }
 0x222   : > { %v1606_v30 = vpop.permute.xlu0 %1605 }
 0x223   : > { %1630 = vst.msk [vmem:[%s2589_s29] sm:$0xff] %vm1629_vm2, %v1606_v30 }
 0x242   : > { %v1614_v32 = vpop.permute.xlu2 %1613  ;;  %v1608_v33 = vpop.permute.xlu0 %1607 }
 0x243   : > { %1634 = vst.msk [vmem:[%s2589_s29 + $0x20] sm:$0xff] %vm1629_vm2, %v1614_v32 }
 0x244   : > { %1631 = vst.msk [vmem:[%s2589_s29 + $0x8] sm:$0xff] %vm1629_vm2, %v1608_v33 }
 0x24a   : > { %v1616_v34 = vpop.permute.xlu2 %1615  ;;  %v1610_v1 = vpop.permute.xlu1 %1609 }
 0x24b   : > { %1635 = vst.msk [vmem:[%s2589_s29 + $0x28] sm:$0xff] %vm1629_vm2, %v1616_v34 }
 0x24c   : > { %1632 = vst.msk [vmem:[%s2589_s29 + $0x10] sm:$0xff] %vm1629_vm2, %v1610_v1 }
 0x252   : > { %v1612_v51 = vpop.permute.xlu1 %1611 }
 0x253   : > { %1633 = vst.msk [vmem:[%s2589_s29 + $0x18] sm:$0xff] %vm1629_vm2, %v1612_v51 }
 0x26a   : > { %v1618_v39 = vpop.permute.xlu0 %1617 }
 0x26b   : > { %1636 = vst.msk [vmem:[%s2589_s29 + $0x30] sm:$0xff] %vm1629_vm2, %v1618_v39 }
 0x272   : > { %v1620_v23 = vpop.permute.xlu1 %1619 }
 0x273   : > { %1637 = vst.msk [vmem:[%s2589_s29 + $0x38] sm:$0xff] %vm1629_vm2, %v1620_v23 }
 0x274 PF: > { %s2921_s3 = smov %s2272_s17  ;;  %p23_p4 = scmp.ge.s32.totalorder %s2272_s17, 4  }
 0x275   : > { %s2922_s17 = smov %s2119_s18  ;;  %s2923_s18 = smov %s2123_s19 }
 0x276   : > { %s2924_s19 = smov %s2282_s15  ;;  %s2925_s20 = smov %s2921_s3 }
 0x277   :  { %25 = sbr.rel (!%p23_p4) target bundleno = 8 (0x8), region = 222 }
 0x27c   :  { %1659 = vsyncpa [#allocation5], 1 }
 0x27d   :  { %1661 = vsyncpa [#allocation5 + $0x1], 1 }
 0x27e   :  { %1662 = vsyncpa [#allocation7], 1 }
 0x27f   :  { %1663 = vsyncpa [#allocation10], 1 }

</bundles_post_ra>
